<compile_context>
chip_gen: v7x
topology: tpu7x:2x2x1
jax: 0.10.0
libtpu: 0.0.40
codegen_flags: <defaults>
</compile_context>

<pallas_src>
import functools

import numpy as np

import jax
import jax.numpy as jnp
from jax.experimental import pallas as pl
from jax.experimental.pallas import tpu as pltpu


K = 3                              # kernel size of every ConvTranspose2d layer
N_LAYERS = 3
PAD_TOTAL = (K - 1) * N_LAYERS     # total one-sided spatial growth over the stack (=6)


def _round_up(x, m):
    return (x + m - 1) // m * m


# ---------------------------------------------------------------------------
# One-time probe: pin down pltpu.roll's rotation convention so the in-kernel
# "fetch element at s+off" shift is always correct.
# ---------------------------------------------------------------------------
def _roll_probe_kernel(o_ref):
    idx = jax.lax.broadcasted_iota(jnp.int32, (8, 128), 1)
    o_ref[...] = pltpu.roll(idx, 1, axis=1)


@functools.lru_cache(maxsize=1)
def _roll_matches_numpy():
    """True iff pltpu.roll follows np.roll semantics (out[i] = in[i - shift])."""
    # Tiny (8,128)-shaped device probe (native vreg shape).  Falls back to the
    # np.roll convention if the probe cannot run (AOT / interpret-only flows).
    try:
        out = pl.pallas_call(
            _roll_probe_kernel,
            out_shape=jax.ShapeDtypeStruct((8, 128), jnp.int32),
        )()
        return int(jax.device_get(out)[0, 0]) == 127
    except Exception:
        return True


# ---------------------------------------------------------------------------
# Fused kernel: 3 x (transposed conv [+bias] [+ReLU]) entirely in VMEM.
# Activations live on a fixed flattened working grid (grid_h x grid_w), padded
# to s_pad (multiple of 128) lanes -> every matmul and the output store are
# lane-dense.  `stack_ref` is a single (36, s_pad) VMEM scratch reused as:
#   - the zeroed working grid + the 9-tap stacked operand (gather layers)
#   - the per-tap partial-output staging buffer (scatter layer)
# ---------------------------------------------------------------------------
def _fused_convt_kernel(x_ref, w0_ref, w1_ref, w2_ref,
                        b0_ref, b1_ref, b2_ref, m_ref,
                        o_ref, stack_ref,
                        *, h_in, w_in, grid_w, s_pad, offs, roll_np):
    kk = K * K

    def shift_left(a, off):
        # r[:, s] == a[:, (s + off) % s_pad]; wrap-around only ever lands in
        # masked / cropped lanes (asserted at build time in make_forward).
        if off == 0:
            return a
        return pltpu.roll(a, (s_pad - off) if roll_np else off, axis=1)

    def finish(acc, b_ref, mask, relu):
        acc = acc + b_ref[...]                       # (Co,1) lane-broadcast bias
        if relu:
            acc = jnp.maximum(acc, 0.0)
        if mask is not None:
            acc = acc * mask                         # kill bias/ReLU leakage
        return acc

    def gather_layer(act, w_ref, b_ref, mask, relu):
        # Roll the (small) activation 8x, stack all 9 taps in VMEM, contract
        # them with ONE MXU matmul (contraction depth 9*Ci): no per-tap
        # accumulator adds, no per-tap MXU push/pop sequences.
        ci = act.shape[0]
        stack_ref[0:ci, :] = act
        for t in range(1, kk):
            stack_ref[t * ci:(t + 1) * ci, :] = shift_left(act, offs[t])
        out = jnp.dot(w_ref[...], stack_ref[0:kk * ci, :],
                      preferred_element_type=jnp.float32)
        return finish(out, b_ref, mask, relu)

    def scatter_layer(act, w_ref, b_ref, mask, relu):
        # ONE MXU matmul produces all 9 tap partials at once (staged through
        # the VMEM scratch so the wide activation / partials never spill);
        # only the small (Co, s_pad) partials are rolled and summed.
        nrows = w_ref.shape[0]                       # 9 * Co
        co = nrows // kk
        stack_ref[0:nrows, :] = jnp.dot(w_ref[...], act,
                                        preferred_element_type=jnp.float32)
        acc = stack_ref[0:co, :]                     # tap 0 has offset 0
        for t in range(1, kk):
            acc = acc + shift_left(stack_ref[t * co:(t + 1) * co, :], offs[t])
        return finish(acc, b_ref, mask, relu)

    # --- place the input rows onto the zeroed, flattened working grid -------
    # (moved in-kernel so the wrapper has no pad/reshape HLO kernels)
    ci0 = x_ref.shape[0]
    stack_ref[0:ci0, :] = jnp.zeros((ci0, s_pad), jnp.float32)
    base = PAD_TOTAL * grid_w + PAD_TOTAL
    for r in range(h_in):
        stack_ref[0:ci0, pl.ds(base + r * grid_w, w_in)] = x_ref[:, r, :]
    act0 = stack_ref[0:ci0, :]

    # --- 3 fused ConvTranspose(+ReLU) layers; intermediates never leave VMEM -
    # TODO(synk): on v6e/v7x, bf16 activations/weights (f32 MXU accumulation)
    # would halve VPU/XLU traffic; kept f32 so one code path also serves v5e.
    a1 = gather_layer(act0, w0_ref, b0_ref, m_ref[0:1, :], relu=True)   # 3 -> 16
    a2 = scatter_layer(a1, w1_ref, b1_ref, m_ref[1:2, :], relu=True)    # 16 -> 4
    y = gather_layer(a2, w2_ref, b2_ref, None, relu=False)              # 4 -> 1
    # Layer 2 adds its bias across the whole padded grid; harmless because the
    # wrapper crops to the valid (h_out, w_out) window.
    o_ref[...] = y


# ---------------------------------------------------------------------------
# One-time parameter / constant preparation (hoisted out of the forward path).
# ---------------------------------------------------------------------------
def _prepare_params(params):
    """Repack ConvTranspose2d weights once.

    Per layer, w9[t, co, ci] = w_torch[ci, co, K-1-ky, K-1-kx], t = ky*K + kx.
    Layers 0 and 2 run in 'gather' form  -> packed as (Co, 9*Ci).
    Layer 1 runs in 'scatter' form       -> packed as (9*Co, Ci).
    Biases become (Co, 1) columns for a lane-broadcast add.
    """
    forms = ("gather", "scatter", "gather")          # must match the kernel
    prepped = []
    for form, (w, b) in zip(forms, params):
        ci, co, k, k2 = w.shape
        assert k == K and k2 == K
        wf = jnp.transpose(jnp.asarray(w, jnp.float32)[:, :, ::-1, ::-1],
                           (2, 3, 1, 0))             # (ky, kx, co, ci)
        w9 = wf.reshape(K * K, co, ci)               # (t, co, ci)
        if form == "scatter":
            wp = w9.reshape(K * K * co, ci)          # rows: t*Co + co
        else:
            wp = jnp.transpose(w9, (1, 0, 2)).reshape(co, K * K * ci)
        prepped.append((wp, jnp.asarray(b, jnp.float32).reshape(co, 1)))
    return prepped


def _build_masks(grid_h, grid_w, s_pad, h_in, w_in):
    """Valid-support masks for layers 0 and 1, stacked into one (2, s_pad)."""
    rows = []
    for l in range(N_LAYERS - 1):
        lo = PAD_TOTAL - (K - 1) * (l + 1)
        hi_r = h_in + PAD_TOTAL
        hi_c = w_in + PAD_TOTAL
        m = np.zeros((grid_h, grid_w), np.float32)
        m[lo:hi_r, lo:hi_c] = 1.0
        flat = np.zeros((s_pad,), np.float32)
        flat[:grid_h * grid_w] = m.reshape(-1)
        rows.append(flat)
    return np.stack(rows)                            # (2, s_pad)


def make_forward(params, in_shape):
    """Builds a jitted forward pass specialized to `in_shape` = (1, Ci, H, W)."""
    n, c_in, h_in, w_in = in_shape
    assert n == 1, "specialized to batch 1, matching the reference module"
    # TODO(synk): for batch > 1 add a leading 'parallel' grid axis over batch
    # (dimension_semantics=("parallel",)) so the second v7x TensorCore is used.

    grid_h = h_in + 2 * PAD_TOTAL
    grid_w = w_in + 2 * PAD_TOTAL
    s_true = grid_h * grid_w
    s_pad = _round_up(s_true, 128)
    offs = tuple(ky * grid_w + kx for ky in range(K) for kx in range(K))

    (w0, b0), (w1, b1), (w2, b2) = _prepare_params(params)
    co_last = w2.shape[0]
    h_out = h_in + N_LAYERS * (K - 1)
    w_out = w_in + N_LAYERS * (K - 1)

    masks_np = _build_masks(grid_h, grid_w, s_pad, h_in, w_in)

    # --- build-time wrap-around / row-bleed safety checks (review feedback) --
    off_max = offs[-1]
    assert not masks_np[:, s_pad - off_max:].any(), (
        "roll wrap-around would land on unmasked lanes")
    last_kept = (h_out - 1) * grid_w + (w_out - 1)
    assert last_kept < s_pad - off_max, (
        "roll wrap-around would land on lanes kept by the output crop")
    assert (h_in + PAD_TOTAL + (K - 1) <= grid_h
            and w_in + PAD_TOTAL + (K - 1) <= grid_w), (
        "flattened-grid row bleed would reach valid outputs")

    stack_rows = max(w0.shape[1], w1.shape[0], w2.shape[1])   # 27 / 36 / 36

    kernel = functools.partial(
        _fused_convt_kernel,
        h_in=h_in, w_in=w_in, grid_w=grid_w, s_pad=s_pad, offs=offs,
        roll_np=_roll_matches_numpy())

    flops = int(2 * s_pad * (w0.shape[0] * w0.shape[1]
                             + w1.shape[0] * w1.shape[1]
                             + w2.shape[0] * w2.shape[1]))
    bytes_accessed = int(4 * (c_in * h_in * w_in + masks_np.size
                              + co_last * s_pad
                              + sum(int(a.size) for a in (w0, w1, w2, b0, b1, b2))))

    vmem_spec = pl.BlockSpec(memory_space=pltpu.MemorySpace.VMEM)
    fused = pl.pallas_call(
        kernel,
        out_shape=jax.ShapeDtypeStruct((co_last, s_pad), jnp.float32),
        in_specs=[vmem_spec] * 8,
        out_specs=vmem_spec,
        scratch_shapes=[pltpu.VMEM((stack_rows, s_pad), jnp.float32)],
        cost_estimate=pl.CostEstimate(flops=flops, transcendentals=0,
                                      bytes_accessed=bytes_accessed),
    )

    masks = jnp.asarray(masks_np)

    def forward(x):
        # Input side is free bitcast reshapes only (placement onto the working
        # grid is done inside the kernel); the lane-dense kernel output is
        # cropped to the valid window here, per review.
        xr = x.reshape(c_in, h_in, w_in).astype(jnp.float32)
        y = fused(xr, w0, w1, w2, b0, b1, b2, masks)
        y = y[:, :s_true].reshape(co_last, grid_h, grid_w)[:, :h_out, :w_out]
        return y[None]                                   # (1, 1, H+6, W+6)

    return jax.jit(forward)


# ---------------------------------------------------------------------------
# Independent (definition-based) reference, for a numeric sanity check.
# ---------------------------------------------------------------------------
def _conv_transpose_ref(x, w, b):
    # definition: out[:, co, i+ky, j+kx] += x[:, ci, i, j] * w[ci, co, ky, kx]
    n, _, h, wd = x.shape
    _, co, k, _ = w.shape
    out = jnp.zeros((n, co, h + k - 1, wd + k - 1), jnp.float32)
    for ky in range(k):
        for kx in range(k):
            out = out.at[:, :, ky:ky + h, kx:kx + wd].add(
                jnp.einsum('nihw,io->nohw', x, w[:, :, ky, kx],
                           precision=jax.lax.Precision.HIGHEST))
    return out + b.reshape(1, co, 1, 1)


def _model_ref(x, params):
    (w0, b0), (w1, b1), (w2, b2) = params
    v = jax.nn.relu(_conv_transpose_ref(x, w0, b0))
    v = jax.nn.relu(_conv_transpose_ref(v, w1, b1))
    return _conv_transpose_ref(v, w2, b2)


def _init_convT(kw, kb, ci, co, k=K):
    # Deterministic, PyTorch-flavoured uniform init (synthetic weights).
    bound = 1.0 / float(ci * k * k) ** 0.5
    w = jax.random.uniform(kw, (ci, co, k, k), minval=-bound, maxval=bound,
                           dtype=jnp.float32)
    b = jax.random.uniform(kb, (co,), minval=-bound, maxval=bound,
                           dtype=jnp.float32)
    return w, b


if __name__ == "__main__":
    key = jax.random.PRNGKey(0)
    ks = jax.random.split(key, 7)

    # Matches the reference module's input: NCHW, 3 channels, 32x32.
    x = jax.random.normal(ks[0], (1, 3, 32, 32), dtype=jnp.float32)

    params = (
        _init_convT(ks[1], ks[2], 3, 16),
        _init_convT(ks[3], ks[4], 16, 4),
        _init_convT(ks[5], ks[6], 4, 1),
    )

    forward = make_forward(params, x.shape)
    out = forward(x)
    jax.block_until_ready(out)
    assert out.shape == (1, 1, 38, 38), out.shape     # 32 -> 34 -> 36 -> 38

    ref = _model_ref(x, params)
    np.testing.assert_allclose(np.asarray(out), np.asarray(ref),
                               rtol=2e-2, atol=2e-2)

    print("KERNEL_OK")
</pallas_src>

<mosaic_0001>
module attributes {stable_mosaic.version = 11 : i64} {
  func.func @_fused_convt_kernel(%arg0: memref<3x32x32xf32, #tpu.memory_space<vmem>>, %arg1: memref<16x27xf32, #tpu.memory_space<vmem>>, %arg2: memref<36x16xf32, #tpu.memory_space<vmem>>, %arg3: memref<1x36xf32, #tpu.memory_space<vmem>>, %arg4: memref<16x1xf32, #tpu.memory_space<vmem>>, %arg5: memref<4x1xf32, #tpu.memory_space<vmem>>, %arg6: memref<1x1xf32, #tpu.memory_space<vmem>>, %arg7: memref<2x2048xf32, #tpu.memory_space<vmem>>, %arg8: memref<1x2048xf32, #tpu.memory_space<vmem>>, %arg9: memref<36x2048xf32, #tpu.memory_space<vmem>>) attributes {dimension_semantics = [], scalar_prefetch = 0 : i64, scratch_operands = 1 : i64, tpu.core_type = #tpu.core_type<tc>} {
    %cst = arith.constant 0.000000e+00 : f32
    %0 = vector.broadcast %cst : f32 to vector<3x2048xf32>
    %c0 = arith.constant 0 : index
    %c0_0 = arith.constant 0 : index
    %1 = vector.load %arg9[%c0, %c0_0] : memref<36x2048xf32, #tpu.memory_space<vmem>>, vector<3x2048xf32>
    tpu.vector_store %arg9[%c0, %c0_0], %0 {strides = array<i32>} : memref<36x2048xf32, #tpu.memory_space<vmem>>, vector<3x2048xf32>,
    %c0_1 = arith.constant 0 : index
    %c0_2 = arith.constant 0 : index
    %c0_3 = arith.constant 0 : index
    %2 = vector.load %arg0[%c0_1, %c0_2, %c0_3] : memref<3x32x32xf32, #tpu.memory_space<vmem>>, vector<3x1x32xf32>
    %3 = vector.shape_cast %2 : vector<3x1x32xf32> to vector<3x32xf32>
    %c0_4 = arith.constant 0 : index
    %c270 = arith.constant 270 : index
    %4 = vector.load %arg9[%c0_4, %c270] : memref<36x2048xf32, #tpu.memory_space<vmem>>, vector<3x32xf32>
    tpu.vector_store %arg9[%c0_4, %c270], %3 {strides = array<i32>} : memref<36x2048xf32, #tpu.memory_space<vmem>>, vector<3x32xf32>,
    %c0_5 = arith.constant 0 : index
    %c1 = arith.constant 1 : index
    %c0_6 = arith.constant 0 : index
    %5 = vector.load %arg0[%c0_5, %c1, %c0_6] : memref<3x32x32xf32, #tpu.memory_space<vmem>>, vector<3x1x32xf32>
    %6 = vector.shape_cast %5 : vector<3x1x32xf32> to vector<3x32xf32>
    %c0_7 = arith.constant 0 : index
    %c314 = arith.constant 314 : index
    %7 = vector.load %arg9[%c0_7, %c314] : memref<36x2048xf32, #tpu.memory_space<vmem>>, vector<3x32xf32>
    tpu.vector_store %arg9[%c0_7, %c314], %6 {strides = array<i32>} : memref<36x2048xf32, #tpu.memory_space<vmem>>, vector<3x32xf32>,
    %c0_8 = arith.constant 0 : index
    %c2 = arith.constant 2 : index
    %c0_9 = arith.constant 0 : index
    %8 = vector.load %arg0[%c0_8, %c2, %c0_9] : memref<3x32x32xf32, #tpu.memory_space<vmem>>, vector<3x1x32xf32>
    %9 = vector.shape_cast %8 : vector<3x1x32xf32> to vector<3x32xf32>
    %c0_10 = arith.constant 0 : index
    %c358 = arith.constant 358 : index
    %10 = vector.load %arg9[%c0_10, %c358] : memref<36x2048xf32, #tpu.memory_space<vmem>>, vector<3x32xf32>
    tpu.vector_store %arg9[%c0_10, %c358], %9 {strides = array<i32>} : memref<36x2048xf32, #tpu.memory_space<vmem>>, vector<3x32xf32>,
    %c0_11 = arith.constant 0 : index
    %c3 = arith.constant 3 : index
    %c0_12 = arith.constant 0 : index
    %11 = vector.load %arg0[%c0_11, %c3, %c0_12] : memref<3x32x32xf32, #tpu.memory_space<vmem>>, vector<3x1x32xf32>
    %12 = vector.shape_cast %11 : vector<3x1x32xf32> to vector<3x32xf32>
    %c0_13 = arith.constant 0 : index
    %c402 = arith.constant 402 : index
    %13 = vector.load %arg9[%c0_13, %c402] : memref<36x2048xf32, #tpu.memory_space<vmem>>, vector<3x32xf32>
    tpu.vector_store %arg9[%c0_13, %c402], %12 {strides = array<i32>} : memref<36x2048xf32, #tpu.memory_space<vmem>>, vector<3x32xf32>,
    %c0_14 = arith.constant 0 : index
    %c4 = arith.constant 4 : index
    %c0_15 = arith.constant 0 : index
    %14 = vector.load %arg0[%c0_14, %c4, %c0_15] : memref<3x32x32xf32, #tpu.memory_space<vmem>>, vector<3x1x32xf32>
    %15 = vector.shape_cast %14 : vector<3x1x32xf32> to vector<3x32xf32>
    %c0_16 = arith.constant 0 : index
    %c446 = arith.constant 446 : index
    %16 = vector.load %arg9[%c0_16, %c446] : memref<36x2048xf32, #tpu.memory_space<vmem>>, vector<3x32xf32>
    tpu.vector_store %arg9[%c0_16, %c446], %15 {strides = array<i32>} : memref<36x2048xf32, #tpu.memory_space<vmem>>, vector<3x32xf32>,
    %c0_17 = arith.constant 0 : index
    %c5 = arith.constant 5 : index
    %c0_18 = arith.constant 0 : index
    %17 = vector.load %arg0[%c0_17, %c5, %c0_18] : memref<3x32x32xf32, #tpu.memory_space<vmem>>, vector<3x1x32xf32>
    %18 = vector.shape_cast %17 : vector<3x1x32xf32> to vector<3x32xf32>
    %c0_19 = arith.constant 0 : index
    %c490 = arith.constant 490 : index
    %19 = vector.load %arg9[%c0_19, %c490] : memref<36x2048xf32, #tpu.memory_space<vmem>>, vector<3x32xf32>
    tpu.vector_store %arg9[%c0_19, %c490], %18 {strides = array<i32>} : memref<36x2048xf32, #tpu.memory_space<vmem>>, vector<3x32xf32>,
    %c0_20 = arith.constant 0 : index
    %c6 = arith.constant 6 : index
    %c0_21 = arith.constant 0 : index
    %20 = vector.load %arg0[%c0_20, %c6, %c0_21] : memref<3x32x32xf32, #tpu.memory_space<vmem>>, vector<3x1x32xf32>
    %21 = vector.shape_cast %20 : vector<3x1x32xf32> to vector<3x32xf32>
    %c0_22 = arith.constant 0 : index
    %c534 = arith.constant 534 : index
    %22 = vector.load %arg9[%c0_22, %c534] : memref<36x2048xf32, #tpu.memory_space<vmem>>, vector<3x32xf32>
    tpu.vector_store %arg9[%c0_22, %c534], %21 {strides = array<i32>} : memref<36x2048xf32, #tpu.memory_space<vmem>>, vector<3x32xf32>,
    %c0_23 = arith.constant 0 : index
    %c7 = arith.constant 7 : index
    %c0_24 = arith.constant 0 : index
    %23 = vector.load %arg0[%c0_23, %c7, %c0_24] : memref<3x32x32xf32, #tpu.memory_space<vmem>>, vector<3x1x32xf32>
    %24 = vector.shape_cast %23 : vector<3x1x32xf32> to vector<3x32xf32>
    %c0_25 = arith.constant 0 : index
    %c578 = arith.constant 578 : index
    %25 = vector.load %arg9[%c0_25, %c578] : memref<36x2048xf32, #tpu.memory_space<vmem>>, vector<3x32xf32>
    tpu.vector_store %arg9[%c0_25, %c578], %24 {strides = array<i32>} : memref<36x2048xf32, #tpu.memory_space<vmem>>, vector<3x32xf32>,
    %c0_26 = arith.constant 0 : index
    %c8 = arith.constant 8 : index
    %c0_27 = arith.constant 0 : index
    %26 = vector.load %arg0[%c0_26, %c8, %c0_27] : memref<3x32x32xf32, #tpu.memory_space<vmem>>, vector<3x1x32xf32>
    %27 = vector.shape_cast %26 : vector<3x1x32xf32> to vector<3x32xf32>
    %c0_28 = arith.constant 0 : index
    %c622 = arith.constant 622 : index
    %28 = vector.load %arg9[%c0_28, %c622] : memref<36x2048xf32, #tpu.memory_space<vmem>>, vector<3x32xf32>
    tpu.vector_store %arg9[%c0_28, %c622], %27 {strides = array<i32>} : memref<36x2048xf32, #tpu.memory_space<vmem>>, vector<3x32xf32>,
    %c0_29 = arith.constant 0 : index
    %c9 = arith.constant 9 : index
    %c0_30 = arith.constant 0 : index
    %29 = vector.load %arg0[%c0_29, %c9, %c0_30] : memref<3x32x32xf32, #tpu.memory_space<vmem>>, vector<3x1x32xf32>
    %30 = vector.shape_cast %29 : vector<3x1x32xf32> to vector<3x32xf32>
    %c0_31 = arith.constant 0 : index
    %c666 = arith.constant 666 : index
    %31 = vector.load %arg9[%c0_31, %c666] : memref<36x2048xf32, #tpu.memory_space<vmem>>, vector<3x32xf32>
    tpu.vector_store %arg9[%c0_31, %c666], %30 {strides = array<i32>} : memref<36x2048xf32, #tpu.memory_space<vmem>>, vector<3x32xf32>,
    %c0_32 = arith.constant 0 : index
    %c10 = arith.constant 10 : index
    %c0_33 = arith.constant 0 : index
    %32 = vector.load %arg0[%c0_32, %c10, %c0_33] : memref<3x32x32xf32, #tpu.memory_space<vmem>>, vector<3x1x32xf32>
    %33 = vector.shape_cast %32 : vector<3x1x32xf32> to vector<3x32xf32>
    %c0_34 = arith.constant 0 : index
    %c710 = arith.constant 710 : index
    %34 = vector.load %arg9[%c0_34, %c710] : memref<36x2048xf32, #tpu.memory_space<vmem>>, vector<3x32xf32>
    tpu.vector_store %arg9[%c0_34, %c710], %33 {strides = array<i32>} : memref<36x2048xf32, #tpu.memory_space<vmem>>, vector<3x32xf32>,
    %c0_35 = arith.constant 0 : index
    %c11 = arith.constant 11 : index
    %c0_36 = arith.constant 0 : index
    %35 = vector.load %arg0[%c0_35, %c11, %c0_36] : memref<3x32x32xf32, #tpu.memory_space<vmem>>, vector<3x1x32xf32>
    %36 = vector.shape_cast %35 : vector<3x1x32xf32> to vector<3x32xf32>
    %c0_37 = arith.constant 0 : index
    %c754 = arith.constant 754 : index
    %37 = vector.load %arg9[%c0_37, %c754] : memref<36x2048xf32, #tpu.memory_space<vmem>>, vector<3x32xf32>
    tpu.vector_store %arg9[%c0_37, %c754], %36 {strides = array<i32>} : memref<36x2048xf32, #tpu.memory_space<vmem>>, vector<3x32xf32>,
    %c0_38 = arith.constant 0 : index
    %c12 = arith.constant 12 : index
    %c0_39 = arith.constant 0 : index
    %38 = vector.load %arg0[%c0_38, %c12, %c0_39] : memref<3x32x32xf32, #tpu.memory_space<vmem>>, vector<3x1x32xf32>
    %39 = vector.shape_cast %38 : vector<3x1x32xf32> to vector<3x32xf32>
    %c0_40 = arith.constant 0 : index
    %c798 = arith.constant 798 : index
    %40 = vector.load %arg9[%c0_40, %c798] : memref<36x2048xf32, #tpu.memory_space<vmem>>, vector<3x32xf32>
    tpu.vector_store %arg9[%c0_40, %c798], %39 {strides = array<i32>} : memref<36x2048xf32, #tpu.memory_space<vmem>>, vector<3x32xf32>,
    %c0_41 = arith.constant 0 : index
    %c13 = arith.constant 13 : index
    %c0_42 = arith.constant 0 : index
    %41 = vector.load %arg0[%c0_41, %c13, %c0_42] : memref<3x32x32xf32, #tpu.memory_space<vmem>>, vector<3x1x32xf32>
    %42 = vector.shape_cast %41 : vector<3x1x32xf32> to vector<3x32xf32>
    %c0_43 = arith.constant 0 : index
    %c842 = arith.constant 842 : index
    %43 = vector.load %arg9[%c0_43, %c842] : memref<36x2048xf32, #tpu.memory_space<vmem>>, vector<3x32xf32>
    tpu.vector_store %arg9[%c0_43, %c842], %42 {strides = array<i32>} : memref<36x2048xf32, #tpu.memory_space<vmem>>, vector<3x32xf32>,
    %c0_44 = arith.constant 0 : index
    %c14 = arith.constant 14 : index
    %c0_45 = arith.constant 0 : index
    %44 = vector.load %arg0[%c0_44, %c14, %c0_45] : memref<3x32x32xf32, #tpu.memory_space<vmem>>, vector<3x1x32xf32>
    %45 = vector.shape_cast %44 : vector<3x1x32xf32> to vector<3x32xf32>
    %c0_46 = arith.constant 0 : index
    %c886 = arith.constant 886 : index
    %46 = vector.load %arg9[%c0_46, %c886] : memref<36x2048xf32, #tpu.memory_space<vmem>>, vector<3x32xf32>
    tpu.vector_store %arg9[%c0_46, %c886], %45 {strides = array<i32>} : memref<36x2048xf32, #tpu.memory_space<vmem>>, vector<3x32xf32>,
    %c0_47 = arith.constant 0 : index
    %c15 = arith.constant 15 : index
    %c0_48 = arith.constant 0 : index
    %47 = vector.load %arg0[%c0_47, %c15, %c0_48] : memref<3x32x32xf32, #tpu.memory_space<vmem>>, vector<3x1x32xf32>
    %48 = vector.shape_cast %47 : vector<3x1x32xf32> to vector<3x32xf32>
    %c0_49 = arith.constant 0 : index
    %c930 = arith.constant 930 : index
    %49 = vector.load %arg9[%c0_49, %c930] : memref<36x2048xf32, #tpu.memory_space<vmem>>, vector<3x32xf32>
    tpu.vector_store %arg9[%c0_49, %c930], %48 {strides = array<i32>} : memref<36x2048xf32, #tpu.memory_space<vmem>>, vector<3x32xf32>,
    %c0_50 = arith.constant 0 : index
    %c16 = arith.constant 16 : index
    %c0_51 = arith.constant 0 : index
    %50 = vector.load %arg0[%c0_50, %c16, %c0_51] : memref<3x32x32xf32, #tpu.memory_space<vmem>>, vector<3x1x32xf32>
    %51 = vector.shape_cast %50 : vector<3x1x32xf32> to vector<3x32xf32>
    %c0_52 = arith.constant 0 : index
    %c974 = arith.constant 974 : index
    %52 = vector.load %arg9[%c0_52, %c974] : memref<36x2048xf32, #tpu.memory_space<vmem>>, vector<3x32xf32>
    tpu.vector_store %arg9[%c0_52, %c974], %51 {strides = array<i32>} : memref<36x2048xf32, #tpu.memory_space<vmem>>, vector<3x32xf32>,
    %c0_53 = arith.constant 0 : index
    %c17 = arith.constant 17 : index
    %c0_54 = arith.constant 0 : index
    %53 = vector.load %arg0[%c0_53, %c17, %c0_54] : memref<3x32x32xf32, #tpu.memory_space<vmem>>, vector<3x1x32xf32>
    %54 = vector.shape_cast %53 : vector<3x1x32xf32> to vector<3x32xf32>
    %c0_55 = arith.constant 0 : index
    %c1018 = arith.constant 1018 : index
    %55 = vector.load %arg9[%c0_55, %c1018] : memref<36x2048xf32, #tpu.memory_space<vmem>>, vector<3x32xf32>
    tpu.vector_store %arg9[%c0_55, %c1018], %54 {strides = array<i32>} : memref<36x2048xf32, #tpu.memory_space<vmem>>, vector<3x32xf32>,
    %c0_56 = arith.constant 0 : index
    %c18 = arith.constant 18 : index
    %c0_57 = arith.constant 0 : index
    %56 = vector.load %arg0[%c0_56, %c18, %c0_57] : memref<3x32x32xf32, #tpu.memory_space<vmem>>, vector<3x1x32xf32>
    %57 = vector.shape_cast %56 : vector<3x1x32xf32> to vector<3x32xf32>
    %c0_58 = arith.constant 0 : index
    %c1062 = arith.constant 1062 : index
    %58 = vector.load %arg9[%c0_58, %c1062] : memref<36x2048xf32, #tpu.memory_space<vmem>>, vector<3x32xf32>
    tpu.vector_store %arg9[%c0_58, %c1062], %57 {strides = array<i32>} : memref<36x2048xf32, #tpu.memory_space<vmem>>, vector<3x32xf32>,
    %c0_59 = arith.constant 0 : index
    %c19 = arith.constant 19 : index
    %c0_60 = arith.constant 0 : index
    %59 = vector.load %arg0[%c0_59, %c19, %c0_60] : memref<3x32x32xf32, #tpu.memory_space<vmem>>, vector<3x1x32xf32>
    %60 = vector.shape_cast %59 : vector<3x1x32xf32> to vector<3x32xf32>
    %c0_61 = arith.constant 0 : index
    %c1106 = arith.constant 1106 : index
    %61 = vector.load %arg9[%c0_61, %c1106] : memref<36x2048xf32, #tpu.memory_space<vmem>>, vector<3x32xf32>
    tpu.vector_store %arg9[%c0_61, %c1106], %60 {strides = array<i32>} : memref<36x2048xf32, #tpu.memory_space<vmem>>, vector<3x32xf32>,
    %c0_62 = arith.constant 0 : index
    %c20 = arith.constant 20 : index
    %c0_63 = arith.constant 0 : index
    %62 = vector.load %arg0[%c0_62, %c20, %c0_63] : memref<3x32x32xf32, #tpu.memory_space<vmem>>, vector<3x1x32xf32>
    %63 = vector.shape_cast %62 : vector<3x1x32xf32> to vector<3x32xf32>
    %c0_64 = arith.constant 0 : index
    %c1150 = arith.constant 1150 : index
    %64 = vector.load %arg9[%c0_64, %c1150] : memref<36x2048xf32, #tpu.memory_space<vmem>>, vector<3x32xf32>
    tpu.vector_store %arg9[%c0_64, %c1150], %63 {strides = array<i32>} : memref<36x2048xf32, #tpu.memory_space<vmem>>, vector<3x32xf32>,
    %c0_65 = arith.constant 0 : index
    %c21 = arith.constant 21 : index
    %c0_66 = arith.constant 0 : index
    %65 = vector.load %arg0[%c0_65, %c21, %c0_66] : memref<3x32x32xf32, #tpu.memory_space<vmem>>, vector<3x1x32xf32>
    %66 = vector.shape_cast %65 : vector<3x1x32xf32> to vector<3x32xf32>
    %c0_67 = arith.constant 0 : index
    %c1194 = arith.constant 1194 : index
    %67 = vector.load %arg9[%c0_67, %c1194] : memref<36x2048xf32, #tpu.memory_space<vmem>>, vector<3x32xf32>
    tpu.vector_store %arg9[%c0_67, %c1194], %66 {strides = array<i32>} : memref<36x2048xf32, #tpu.memory_space<vmem>>, vector<3x32xf32>,
    %c0_68 = arith.constant 0 : index
    %c22 = arith.constant 22 : index
    %c0_69 = arith.constant 0 : index
    %68 = vector.load %arg0[%c0_68, %c22, %c0_69] : memref<3x32x32xf32, #tpu.memory_space<vmem>>, vector<3x1x32xf32>
    %69 = vector.shape_cast %68 : vector<3x1x32xf32> to vector<3x32xf32>
    %c0_70 = arith.constant 0 : index
    %c1238 = arith.constant 1238 : index
    %70 = vector.load %arg9[%c0_70, %c1238] : memref<36x2048xf32, #tpu.memory_space<vmem>>, vector<3x32xf32>
    tpu.vector_store %arg9[%c0_70, %c1238], %69 {strides = array<i32>} : memref<36x2048xf32, #tpu.memory_space<vmem>>, vector<3x32xf32>,
    %c0_71 = arith.constant 0 : index
    %c23 = arith.constant 23 : index
    %c0_72 = arith.constant 0 : index
    %71 = vector.load %arg0[%c0_71, %c23, %c0_72] : memref<3x32x32xf32, #tpu.memory_space<vmem>>, vector<3x1x32xf32>
    %72 = vector.shape_cast %71 : vector<3x1x32xf32> to vector<3x32xf32>
    %c0_73 = arith.constant 0 : index
    %c1282 = arith.constant 1282 : index
    %73 = vector.load %arg9[%c0_73, %c1282] : memref<36x2048xf32, #tpu.memory_space<vmem>>, vector<3x32xf32>
    tpu.vector_store %arg9[%c0_73, %c1282], %72 {strides = array<i32>} : memref<36x2048xf32, #tpu.memory_space<vmem>>, vector<3x32xf32>,
    %c0_74 = arith.constant 0 : index
    %c24 = arith.constant 24 : index
    %c0_75 = arith.constant 0 : index
    %74 = vector.load %arg0[%c0_74, %c24, %c0_75] : memref<3x32x32xf32, #tpu.memory_space<vmem>>, vector<3x1x32xf32>
    %75 = vector.shape_cast %74 : vector<3x1x32xf32> to vector<3x32xf32>
    %c0_76 = arith.constant 0 : index
    %c1326 = arith.constant 1326 : index
    %76 = vector.load %arg9[%c0_76, %c1326] : memref<36x2048xf32, #tpu.memory_space<vmem>>, vector<3x32xf32>
    tpu.vector_store %arg9[%c0_76, %c1326], %75 {strides = array<i32>} : memref<36x2048xf32, #tpu.memory_space<vmem>>, vector<3x32xf32>,
    %c0_77 = arith.constant 0 : index
    %c25 = arith.constant 25 : index
    %c0_78 = arith.constant 0 : index
    %77 = vector.load %arg0[%c0_77, %c25, %c0_78] : memref<3x32x32xf32, #tpu.memory_space<vmem>>, vector<3x1x32xf32>
    %78 = vector.shape_cast %77 : vector<3x1x32xf32> to vector<3x32xf32>
    %c0_79 = arith.constant 0 : index
    %c1370 = arith.constant 1370 : index
    %79 = vector.load %arg9[%c0_79, %c1370] : memref<36x2048xf32, #tpu.memory_space<vmem>>, vector<3x32xf32>
    tpu.vector_store %arg9[%c0_79, %c1370], %78 {strides = array<i32>} : memref<36x2048xf32, #tpu.memory_space<vmem>>, vector<3x32xf32>,
    %c0_80 = arith.constant 0 : index
    %c26 = arith.constant 26 : index
    %c0_81 = arith.constant 0 : index
    %80 = vector.load %arg0[%c0_80, %c26, %c0_81] : memref<3x32x32xf32, #tpu.memory_space<vmem>>, vector<3x1x32xf32>
    %81 = vector.shape_cast %80 : vector<3x1x32xf32> to vector<3x32xf32>
    %c0_82 = arith.constant 0 : index
    %c1414 = arith.constant 1414 : index
    %82 = vector.load %arg9[%c0_82, %c1414] : memref<36x2048xf32, #tpu.memory_space<vmem>>, vector<3x32xf32>
    tpu.vector_store %arg9[%c0_82, %c1414], %81 {strides = array<i32>} : memref<36x2048xf32, #tpu.memory_space<vmem>>, vector<3x32xf32>,
    %c0_83 = arith.constant 0 : index
    %c27 = arith.constant 27 : index
    %c0_84 = arith.constant 0 : index
    %83 = vector.load %arg0[%c0_83, %c27, %c0_84] : memref<3x32x32xf32, #tpu.memory_space<vmem>>, vector<3x1x32xf32>
    %84 = vector.shape_cast %83 : vector<3x1x32xf32> to vector<3x32xf32>
    %c0_85 = arith.constant 0 : index
    %c1458 = arith.constant 1458 : index
    %85 = vector.load %arg9[%c0_85, %c1458] : memref<36x2048xf32, #tpu.memory_space<vmem>>, vector<3x32xf32>
    tpu.vector_store %arg9[%c0_85, %c1458], %84 {strides = array<i32>} : memref<36x2048xf32, #tpu.memory_space<vmem>>, vector<3x32xf32>,
    %c0_86 = arith.constant 0 : index
    %c28 = arith.constant 28 : index
    %c0_87 = arith.constant 0 : index
    %86 = vector.load %arg0[%c0_86, %c28, %c0_87] : memref<3x32x32xf32, #tpu.memory_space<vmem>>, vector<3x1x32xf32>
    %87 = vector.shape_cast %86 : vector<3x1x32xf32> to vector<3x32xf32>
    %c0_88 = arith.constant 0 : index
    %c1502 = arith.constant 1502 : index
    %88 = vector.load %arg9[%c0_88, %c1502] : memref<36x2048xf32, #tpu.memory_space<vmem>>, vector<3x32xf32>
    tpu.vector_store %arg9[%c0_88, %c1502], %87 {strides = array<i32>} : memref<36x2048xf32, #tpu.memory_space<vmem>>, vector<3x32xf32>,
    %c0_89 = arith.constant 0 : index
    %c29 = arith.constant 29 : index
    %c0_90 = arith.constant 0 : index
    %89 = vector.load %arg0[%c0_89, %c29, %c0_90] : memref<3x32x32xf32, #tpu.memory_space<vmem>>, vector<3x1x32xf32>
    %90 = vector.shape_cast %89 : vector<3x1x32xf32> to vector<3x32xf32>
    %c0_91 = arith.constant 0 : index
    %c1546 = arith.constant 1546 : index
    %91 = vector.load %arg9[%c0_91, %c1546] : memref<36x2048xf32, #tpu.memory_space<vmem>>, vector<3x32xf32>
    tpu.vector_store %arg9[%c0_91, %c1546], %90 {strides = array<i32>} : memref<36x2048xf32, #tpu.memory_space<vmem>>, vector<3x32xf32>,
    %c0_92 = arith.constant 0 : index
    %c30 = arith.constant 30 : index
    %c0_93 = arith.constant 0 : index
    %92 = vector.load %arg0[%c0_92, %c30, %c0_93] : memref<3x32x32xf32, #tpu.memory_space<vmem>>, vector<3x1x32xf32>
    %93 = vector.shape_cast %92 : vector<3x1x32xf32> to vector<3x32xf32>
    %c0_94 = arith.constant 0 : index
    %c1590 = arith.constant 1590 : index
    %94 = vector.load %arg9[%c0_94, %c1590] : memref<36x2048xf32, #tpu.memory_space<vmem>>, vector<3x32xf32>
    tpu.vector_store %arg9[%c0_94, %c1590], %93 {strides = array<i32>} : memref<36x2048xf32, #tpu.memory_space<vmem>>, vector<3x32xf32>,
    %c0_95 = arith.constant 0 : index
    %c31 = arith.constant 31 : index
    %c0_96 = arith.constant 0 : index
    %95 = vector.load %arg0[%c0_95, %c31, %c0_96] : memref<3x32x32xf32, #tpu.memory_space<vmem>>, vector<3x1x32xf32>
    %96 = vector.shape_cast %95 : vector<3x1x32xf32> to vector<3x32xf32>
    %c0_97 = arith.constant 0 : index
    %c1634 = arith.constant 1634 : index
    %97 = vector.load %arg9[%c0_97, %c1634] : memref<36x2048xf32, #tpu.memory_space<vmem>>, vector<3x32xf32>
    tpu.vector_store %arg9[%c0_97, %c1634], %96 {strides = array<i32>} : memref<36x2048xf32, #tpu.memory_space<vmem>>, vector<3x32xf32>,
    %c0_98 = arith.constant 0 : index
    %c0_99 = arith.constant 0 : index
    %98 = vector.load %arg9[%c0_98, %c0_99] : memref<36x2048xf32, #tpu.memory_space<vmem>>, vector<3x2048xf32>
    %c0_100 = arith.constant 0 : index
    %c0_101 = arith.constant 0 : index
    %99 = vector.load %arg7[%c0_100, %c0_101] : memref<2x2048xf32, #tpu.memory_space<vmem>>, vector<1x2048xf32>
    %c0_102 = arith.constant 0 : index
    %c0_103 = arith.constant 0 : index
    %100 = vector.load %arg9[%c0_102, %c0_103] : memref<36x2048xf32, #tpu.memory_space<vmem>>, vector<3x2048xf32>
    tpu.vector_store %arg9[%c0_102, %c0_103], %98 {strides = array<i32>} : memref<36x2048xf32, #tpu.memory_space<vmem>>, vector<3x2048xf32>,
    %c2047_i32 = arith.constant 2047 : i32
    %101 = tpu.dynamic_rotate %98 by %c2047_i32 dim 1 : vector<3x2048xf32>, i32 -> vector<3x2048xf32>
    %c3_104 = arith.constant 3 : index
    %c0_105 = arith.constant 0 : index
    %102 = vector.load %arg9[%c3_104, %c0_105] : memref<36x2048xf32, #tpu.memory_space<vmem>>, vector<3x2048xf32>
    tpu.vector_store %arg9[%c3_104, %c0_105], %101 {strides = array<i32>} : memref<36x2048xf32, #tpu.memory_space<vmem>>, vector<3x2048xf32>,
    %c2046_i32 = arith.constant 2046 : i32
    %103 = tpu.dynamic_rotate %98 by %c2046_i32 dim 1 : vector<3x2048xf32>, i32 -> vector<3x2048xf32>
    %c6_106 = arith.constant 6 : index
    %c0_107 = arith.constant 0 : index
    %104 = vector.load %arg9[%c6_106, %c0_107] : memref<36x2048xf32, #tpu.memory_space<vmem>>, vector<3x2048xf32>
    tpu.vector_store %arg9[%c6_106, %c0_107], %103 {strides = array<i32>} : memref<36x2048xf32, #tpu.memory_space<vmem>>, vector<3x2048xf32>,
    %c2004_i32 = arith.constant 2004 : i32
    %105 = tpu.dynamic_rotate %98 by %c2004_i32 dim 1 : vector<3x2048xf32>, i32 -> vector<3x2048xf32>
    %c9_108 = arith.constant 9 : index
    %c0_109 = arith.constant 0 : index
    %106 = vector.load %arg9[%c9_108, %c0_109] : memref<36x2048xf32, #tpu.memory_space<vmem>>, vector<3x2048xf32>
    tpu.vector_store %arg9[%c9_108, %c0_109], %105 {strides = array<i32>} : memref<36x2048xf32, #tpu.memory_space<vmem>>, vector<3x2048xf32>,
    %c2003_i32 = arith.constant 2003 : i32
    %107 = tpu.dynamic_rotate %98 by %c2003_i32 dim 1 : vector<3x2048xf32>, i32 -> vector<3x2048xf32>
    %c12_110 = arith.constant 12 : index
    %c0_111 = arith.constant 0 : index
    %108 = vector.load %arg9[%c12_110, %c0_111] : memref<36x2048xf32, #tpu.memory_space<vmem>>, vector<3x2048xf32>
    tpu.vector_store %arg9[%c12_110, %c0_111], %107 {strides = array<i32>} : memref<36x2048xf32, #tpu.memory_space<vmem>>, vector<3x2048xf32>,
    %c2002_i32 = arith.constant 2002 : i32
    %109 = tpu.dynamic_rotate %98 by %c2002_i32 dim 1 : vector<3x2048xf32>, i32 -> vector<3x2048xf32>
    %c15_112 = arith.constant 15 : index
    %c0_113 = arith.constant 0 : index
    %110 = vector.load %arg9[%c15_112, %c0_113] : memref<36x2048xf32, #tpu.memory_space<vmem>>, vector<3x2048xf32>
    tpu.vector_store %arg9[%c15_112, %c0_113], %109 {strides = array<i32>} : memref<36x2048xf32, #tpu.memory_space<vmem>>, vector<3x2048xf32>,
    %c1960_i32 = arith.constant 1960 : i32
    %111 = tpu.dynamic_rotate %98 by %c1960_i32 dim 1 : vector<3x2048xf32>, i32 -> vector<3x2048xf32>
    %c18_114 = arith.constant 18 : index
    %c0_115 = arith.constant 0 : index
    %112 = vector.load %arg9[%c18_114, %c0_115] : memref<36x2048xf32, #tpu.memory_space<vmem>>, vector<3x2048xf32>
    tpu.vector_store %arg9[%c18_114, %c0_115], %111 {strides = array<i32>} : memref<36x2048xf32, #tpu.memory_space<vmem>>, vector<3x2048xf32>,
    %c1959_i32 = arith.constant 1959 : i32
    %113 = tpu.dynamic_rotate %98 by %c1959_i32 dim 1 : vector<3x2048xf32>, i32 -> vector<3x2048xf32>
    %c21_116 = arith.constant 21 : index
    %c0_117 = arith.constant 0 : index
    %114 = vector.load %arg9[%c21_116, %c0_117] : memref<36x2048xf32, #tpu.memory_space<vmem>>, vector<3x2048xf32>
    tpu.vector_store %arg9[%c21_116, %c0_117], %113 {strides = array<i32>} : memref<36x2048xf32, #tpu.memory_space<vmem>>, vector<3x2048xf32>,
    %c1958_i32 = arith.constant 1958 : i32
    %115 = tpu.dynamic_rotate %98 by %c1958_i32 dim 1 : vector<3x2048xf32>, i32 -> vector<3x2048xf32>
    %c24_118 = arith.constant 24 : index
    %c0_119 = arith.constant 0 : index
    %116 = vector.load %arg9[%c24_118, %c0_119] : memref<36x2048xf32, #tpu.memory_space<vmem>>, vector<3x2048xf32>
    tpu.vector_store %arg9[%c24_118, %c0_119], %115 {strides = array<i32>} : memref<36x2048xf32, #tpu.memory_space<vmem>>, vector<3x2048xf32>,
    %c0_120 = arith.constant 0 : index
    %c0_121 = arith.constant 0 : index
    %117 = vector.load %arg1[%c0_120, %c0_121] : memref<16x27xf32, #tpu.memory_space<vmem>>, vector<16x27xf32>
    %c0_122 = arith.constant 0 : index
    %c0_123 = arith.constant 0 : index
    %118 = vector.load %arg9[%c0_122, %c0_123] : memref<36x2048xf32, #tpu.memory_space<vmem>>, vector<27x2048xf32>
    %cst_124 = arith.constant dense<0.000000e+00> : vector<16x2048xf32>
    %119 = tpu.matmul %117, %118, %cst_124 {dimension_numbers = #tpu.dot_dimension_numbers<[1], [0], [0], [1], [0, 0, 1, 1], [], []>} : vector<16x27xf32>, vector<27x2048xf32>, vector<16x2048xf32> -> vector<16x2048xf32>
    %c0_125 = arith.constant 0 : index
    %c0_126 = arith.constant 0 : index
    %120 = vector.load %arg4[%c0_125, %c0_126] : memref<16x1xf32, #tpu.memory_space<vmem>>, vector<16x1xf32>
    %121 = vector.broadcast %120 : vector<16x1xf32> to vector<16x2048xf32>
    %122 = arith.addf %119, %121 : vector<16x2048xf32>
    %cst_127 = arith.constant 0.000000e+00 : f32
    %123 = vector.broadcast %cst_127 : f32 to vector<16x2048xf32>
    %124 = arith.maximumf %122, %123 : vector<16x2048xf32>
    %125 = vector.broadcast %99 : vector<1x2048xf32> to vector<16x2048xf32>
    %126 = arith.mulf %124, %125 : vector<16x2048xf32>
    %c1_128 = arith.constant 1 : index
    %c0_129 = arith.constant 0 : index
    %127 = vector.load %arg7[%c1_128, %c0_129] : memref<2x2048xf32, #tpu.memory_space<vmem>>, vector<1x2048xf32>
    %c0_130 = arith.constant 0 : index
    %c0_131 = arith.constant 0 : index
    %128 = vector.load %arg2[%c0_130, %c0_131] : memref<36x16xf32, #tpu.memory_space<vmem>>, vector<36x16xf32>
    %cst_132 = arith.constant dense<0.000000e+00> : vector<36x2048xf32>
    %129 = tpu.matmul %128, %126, %cst_132 {dimension_numbers = #tpu.dot_dimension_numbers<[1], [0], [0], [1], [0, 0, 1, 1], [], []>} : vector<36x16xf32>, vector<16x2048xf32>, vector<36x2048xf32> -> vector<36x2048xf32>
    %c0_133 = arith.constant 0 : index
    %c0_134 = arith.constant 0 : index
    %130 = vector.load %arg9[%c0_133, %c0_134] : memref<36x2048xf32, #tpu.memory_space<vmem>>, vector<36x2048xf32>
    tpu.vector_store %arg9[%c0_133, %c0_134], %129 {strides = array<i32>} : memref<36x2048xf32, #tpu.memory_space<vmem>>, vector<36x2048xf32>,
    %c0_135 = arith.constant 0 : index
    %c0_136 = arith.constant 0 : index
    %131 = vector.load %arg9[%c0_135, %c0_136] : memref<36x2048xf32, #tpu.memory_space<vmem>>, vector<4x2048xf32>
    %c4_137 = arith.constant 4 : index
    %c0_138 = arith.constant 0 : index
    %132 = vector.load %arg9[%c4_137, %c0_138] : memref<36x2048xf32, #tpu.memory_space<vmem>>, vector<4x2048xf32>
    %c2047_i32_139 = arith.constant 2047 : i32
    %133 = tpu.dynamic_rotate %132 by %c2047_i32_139 dim 1 : vector<4x2048xf32>, i32 -> vector<4x2048xf32>
    %134 = arith.addf %131, %133 : vector<4x2048xf32>
    %c8_140 = arith.constant 8 : index
    %c0_141 = arith.constant 0 : index
    %135 = vector.load %arg9[%c8_140, %c0_141] : memref<36x2048xf32, #tpu.memory_space<vmem>>, vector<4x2048xf32>
    %c2046_i32_142 = arith.constant 2046 : i32
    %136 = tpu.dynamic_rotate %135 by %c2046_i32_142 dim 1 : vector<4x2048xf32>, i32 -> vector<4x2048xf32>
    %137 = arith.addf %134, %136 : vector<4x2048xf32>
    %c12_143 = arith.constant 12 : index
    %c0_144 = arith.constant 0 : index
    %138 = vector.load %arg9[%c12_143, %c0_144] : memref<36x2048xf32, #tpu.memory_space<vmem>>, vector<4x2048xf32>
    %c2004_i32_145 = arith.constant 2004 : i32
    %139 = tpu.dynamic_rotate %138 by %c2004_i32_145 dim 1 : vector<4x2048xf32>, i32 -> vector<4x2048xf32>
    %140 = arith.addf %137, %139 : vector<4x2048xf32>
    %c16_146 = arith.constant 16 : index
    %c0_147 = arith.constant 0 : index
    %141 = vector.load %arg9[%c16_146, %c0_147] : memref<36x2048xf32, #tpu.memory_space<vmem>>, vector<4x2048xf32>
    %c2003_i32_148 = arith.constant 2003 : i32
    %142 = tpu.dynamic_rotate %141 by %c2003_i32_148 dim 1 : vector<4x2048xf32>, i32 -> vector<4x2048xf32>
    %143 = arith.addf %140, %142 : vector<4x2048xf32>
    %c20_149 = arith.constant 20 : index
    %c0_150 = arith.constant 0 : index
    %144 = vector.load %arg9[%c20_149, %c0_150] : memref<36x2048xf32, #tpu.memory_space<vmem>>, vector<4x2048xf32>
    %c2002_i32_151 = arith.constant 2002 : i32
    %145 = tpu.dynamic_rotate %144 by %c2002_i32_151 dim 1 : vector<4x2048xf32>, i32 -> vector<4x2048xf32>
    %146 = arith.addf %143, %145 : vector<4x2048xf32>
    %c24_152 = arith.constant 24 : index
    %c0_153 = arith.constant 0 : index
    %147 = vector.load %arg9[%c24_152, %c0_153] : memref<36x2048xf32, #tpu.memory_space<vmem>>, vector<4x2048xf32>
    %c1960_i32_154 = arith.constant 1960 : i32
    %148 = tpu.dynamic_rotate %147 by %c1960_i32_154 dim 1 : vector<4x2048xf32>, i32 -> vector<4x2048xf32>
    %149 = arith.addf %146, %148 : vector<4x2048xf32>
    %c28_155 = arith.constant 28 : index
    %c0_156 = arith.constant 0 : index
    %150 = vector.load %arg9[%c28_155, %c0_156] : memref<36x2048xf32, #tpu.memory_space<vmem>>, vector<4x2048xf32>
    %c1959_i32_157 = arith.constant 1959 : i32
    %151 = tpu.dynamic_rotate %150 by %c1959_i32_157 dim 1 : vector<4x2048xf32>, i32 -> vector<4x2048xf32>
    %152 = arith.addf %149, %151 : vector<4x2048xf32>
    %c32 = arith.constant 32 : index
    %c0_158 = arith.constant 0 : index
    %153 = vector.load %arg9[%c32, %c0_158] : memref<36x2048xf32, #tpu.memory_space<vmem>>, vector<4x2048xf32>
    %c1958_i32_159 = arith.constant 1958 : i32
    %154 = tpu.dynamic_rotate %153 by %c1958_i32_159 dim 1 : vector<4x2048xf32>, i32 -> vector<4x2048xf32>
    %155 = arith.addf %152, %154 : vector<4x2048xf32>
    %c0_160 = arith.constant 0 : index
    %c0_161 = arith.constant 0 : index
    %156 = vector.load %arg5[%c0_160, %c0_161] : memref<4x1xf32, #tpu.memory_space<vmem>>, vector<4x1xf32>
    %157 = vector.broadcast %156 : vector<4x1xf32> to vector<4x2048xf32>
    %158 = arith.addf %155, %157 : vector<4x2048xf32>
    %cst_162 = arith.constant 0.000000e+00 : f32
    %159 = vector.broadcast %cst_162 : f32 to vector<4x2048xf32>
    %160 = arith.maximumf %158, %159 : vector<4x2048xf32>
    %161 = vector.broadcast %127 : vector<1x2048xf32> to vector<4x2048xf32>
    %162 = arith.mulf %160, %161 : vector<4x2048xf32>
    %c0_163 = arith.constant 0 : index
    %c0_164 = arith.constant 0 : index
    %163 = vector.load %arg9[%c0_163, %c0_164] : memref<36x2048xf32, #tpu.memory_space<vmem>>, vector<4x2048xf32>
    tpu.vector_store %arg9[%c0_163, %c0_164], %162 {strides = array<i32>} : memref<36x2048xf32, #tpu.memory_space<vmem>>, vector<4x2048xf32>,
    %c2047_i32_165 = arith.constant 2047 : i32
    %164 = tpu.dynamic_rotate %162 by %c2047_i32_165 dim 1 : vector<4x2048xf32>, i32 -> vector<4x2048xf32>
    %c4_166 = arith.constant 4 : index
    %c0_167 = arith.constant 0 : index
    %165 = vector.load %arg9[%c4_166, %c0_167] : memref<36x2048xf32, #tpu.memory_space<vmem>>, vector<4x2048xf32>
    tpu.vector_store %arg9[%c4_166, %c0_167], %164 {strides = array<i32>} : memref<36x2048xf32, #tpu.memory_space<vmem>>, vector<4x2048xf32>,
    %c2046_i32_168 = arith.constant 2046 : i32
    %166 = tpu.dynamic_rotate %162 by %c2046_i32_168 dim 1 : vector<4x2048xf32>, i32 -> vector<4x2048xf32>
    %c8_169 = arith.constant 8 : index
    %c0_170 = arith.constant 0 : index
    %167 = vector.load %arg9[%c8_169, %c0_170] : memref<36x2048xf32, #tpu.memory_space<vmem>>, vector<4x2048xf32>
    tpu.vector_store %arg9[%c8_169, %c0_170], %166 {strides = array<i32>} : memref<36x2048xf32, #tpu.memory_space<vmem>>, vector<4x2048xf32>,
    %c2004_i32_171 = arith.constant 2004 : i32
    %168 = tpu.dynamic_rotate %162 by %c2004_i32_171 dim 1 : vector<4x2048xf32>, i32 -> vector<4x2048xf32>
    %c12_172 = arith.constant 12 : index
    %c0_173 = arith.constant 0 : index
    %169 = vector.load %arg9[%c12_172, %c0_173] : memref<36x2048xf32, #tpu.memory_space<vmem>>, vector<4x2048xf32>
    tpu.vector_store %arg9[%c12_172, %c0_173], %168 {strides = array<i32>} : memref<36x2048xf32, #tpu.memory_space<vmem>>, vector<4x2048xf32>,
    %c2003_i32_174 = arith.constant 2003 : i32
    %170 = tpu.dynamic_rotate %162 by %c2003_i32_174 dim 1 : vector<4x2048xf32>, i32 -> vector<4x2048xf32>
    %c16_175 = arith.constant 16 : index
    %c0_176 = arith.constant 0 : index
    %171 = vector.load %arg9[%c16_175, %c0_176] : memref<36x2048xf32, #tpu.memory_space<vmem>>, vector<4x2048xf32>
    tpu.vector_store %arg9[%c16_175, %c0_176], %170 {strides = array<i32>} : memref<36x2048xf32, #tpu.memory_space<vmem>>, vector<4x2048xf32>,
    %c2002_i32_177 = arith.constant 2002 : i32
    %172 = tpu.dynamic_rotate %162 by %c2002_i32_177 dim 1 : vector<4x2048xf32>, i32 -> vector<4x2048xf32>
    %c20_178 = arith.constant 20 : index
    %c0_179 = arith.constant 0 : index
    %173 = vector.load %arg9[%c20_178, %c0_179] : memref<36x2048xf32, #tpu.memory_space<vmem>>, vector<4x2048xf32>
    tpu.vector_store %arg9[%c20_178, %c0_179], %172 {strides = array<i32>} : memref<36x2048xf32, #tpu.memory_space<vmem>>, vector<4x2048xf32>,
    %c1960_i32_180 = arith.constant 1960 : i32
    %174 = tpu.dynamic_rotate %162 by %c1960_i32_180 dim 1 : vector<4x2048xf32>, i32 -> vector<4x2048xf32>
    %c24_181 = arith.constant 24 : index
    %c0_182 = arith.constant 0 : index
    %175 = vector.load %arg9[%c24_181, %c0_182] : memref<36x2048xf32, #tpu.memory_space<vmem>>, vector<4x2048xf32>
    tpu.vector_store %arg9[%c24_181, %c0_182], %174 {strides = array<i32>} : memref<36x2048xf32, #tpu.memory_space<vmem>>, vector<4x2048xf32>,
    %c1959_i32_183 = arith.constant 1959 : i32
    %176 = tpu.dynamic_rotate %162 by %c1959_i32_183 dim 1 : vector<4x2048xf32>, i32 -> vector<4x2048xf32>
    %c28_184 = arith.constant 28 : index
    %c0_185 = arith.constant 0 : index
    %177 = vector.load %arg9[%c28_184, %c0_185] : memref<36x2048xf32, #tpu.memory_space<vmem>>, vector<4x2048xf32>
    tpu.vector_store %arg9[%c28_184, %c0_185], %176 {strides = array<i32>} : memref<36x2048xf32, #tpu.memory_space<vmem>>, vector<4x2048xf32>,
    %c1958_i32_186 = arith.constant 1958 : i32
    %178 = tpu.dynamic_rotate %162 by %c1958_i32_186 dim 1 : vector<4x2048xf32>, i32 -> vector<4x2048xf32>
    %c32_187 = arith.constant 32 : index
    %c0_188 = arith.constant 0 : index
    %179 = vector.load %arg9[%c32_187, %c0_188] : memref<36x2048xf32, #tpu.memory_space<vmem>>, vector<4x2048xf32>
    tpu.vector_store %arg9[%c32_187, %c0_188], %178 {strides = array<i32>} : memref<36x2048xf32, #tpu.memory_space<vmem>>, vector<4x2048xf32>,
    %c0_189 = arith.constant 0 : index
    %c0_190 = arith.constant 0 : index
    %180 = vector.load %arg3[%c0_189, %c0_190] : memref<1x36xf32, #tpu.memory_space<vmem>>, vector<1x36xf32>
    %c0_191 = arith.constant 0 : index
    %c0_192 = arith.constant 0 : index
    %181 = vector.load %arg9[%c0_191, %c0_192] : memref<36x2048xf32, #tpu.memory_space<vmem>>, vector<36x2048xf32>
    %cst_193 = arith.constant dense<0.000000e+00> : vector<1x2048xf32>
    %182 = tpu.matmul %180, %181, %cst_193 {dimension_numbers = #tpu.dot_dimension_numbers<[1], [0], [0], [1], [0, 0, 1, 1], [], []>} : vector<1x36xf32>, vector<36x2048xf32>, vector<1x2048xf32> -> vector<1x2048xf32>
    %c0_194 = arith.constant 0 : index
    %c0_195 = arith.constant 0 : index
    %183 = vector.load %arg6[%c0_194, %c0_195] : memref<1x1xf32, #tpu.memory_space<vmem>>, vector<1x1xf32>
    %184 = vector.broadcast %183 : vector<1x1xf32> to vector<1x2048xf32>
    %185 = arith.addf %182, %184 : vector<1x2048xf32>
    %c0_196 = arith.constant 0 : index
    %c0_197 = arith.constant 0 : index
    %186 = vector.load %arg8[%c0_196, %c0_197] : memref<1x2048xf32, #tpu.memory_space<vmem>>, vector<1x2048xf32>
    tpu.vector_store %arg8[%c0_196, %c0_197], %185 {strides = array<i32>} : memref<1x2048xf32, #tpu.memory_space<vmem>>, vector<1x2048xf32>,
    return
  }
}

</mosaic_0001>

<bundles_post_ra>
// kernel: forward.1
= control target key start
LH: loop header
LB: loop body
LE: loop exit
PB: predicated region body
PF: predicated region fallthrough
CT: control target
= control target key end

     0   :  { %s9107_s0 = inlined_call_operand.hbm [shape: f32[3,32,32], index: 0, kind: input, shape index: {}]   ;;  %s9108_s1 = inlined_call_operand.hbm [shape: f32[16,27], index: 1, kind: input, shape index: {}]   ;;  %s9109_s2 = inlined_call_operand.hbm [shape: f32[36,16], index: 2, kind: input, shape index: {}]   ;;  %s9110_s3 = inlined_call_operand.vmem [shape: f32[1,36], index: 3, kind: input, shape index: {}]   ;;  %s9111_s4 = inlined_call_operand.vmem [shape: f32[16,1], index: 4, kind: input, shape index: {}]   ;;  %s9112_s5 = inlined_call_operand.vmem [shape: f32[4,1], index: 5, kind: input, shape index: {}]   ;;  %s9113_s6 = inlined_call_operand.<no memory space> [shape: f32[1,1], index: 6, kind: input, shape index: {}]   ;;  %s9114_s7 = inlined_call_operand.hbm [shape: f32[2,2048], index: 7, kind: input, shape index: {}]   ;;  %s9115_s8 = inlined_call_operand.vmem [shape: f32[1,2048], index: 8, kind: output, shape index: {}]  }
   0x1   :  { %v13_v0 = vstv %s9113_s6 }
   0x2   :  { %14 = vst [vmem:[#allocation3] sm:$0x1] %v13_v0 }
   0x3   :  { %15 = vsyncpa [#allocation5], 0 }
   0x4   :  { %16 = vsyncpa [#allocation7], 0 }
   0x5   :  { %17 = vsyncpa [#allocation10], 0  ;;  %s6243_s29 = smov [#allocation6]   ;;  %s6244_s9 = smov [#allocation4]  }
   0x6   :  { %s35_s30 = sshll.u32 %s6243_s29, 4  ;;  %s23_s10 = sshll.u32 %s6244_s9, 4  ;;  %s36_s30 = int_to_ptr.vmem [resolvable:$true] %s35_s30  ;;  %s6338_s10 = int_to_ptr.vmem [resolvable:$true] %s23_s10 }
   0x7   :  { %s6149_s13 = scalar_lea.hbm %s9108_s1, 256 }
   0x8   :  { %p6150_p0 = scmp.ne.s32.totalorder %s9108_s1, %s6149_s13  ;;  %p6153_p1 = scmp.lt.u32.totalorder %s6149_s13, %s9108_s1 }
   0xa   :  { %p6155_p2 = pnand %p6153_p1, %p6150_p0 }
   0xc   :  { %6158 = shalt.err (!%p6155_p2)
}
   0xd   :  { %s6159_s17 = scalar_lea.vmem %s36_s30, 256  ;;  %p6164_p4 = scmp.lt.s32.totalorder %s36_s30, %s36_s30 }
   0xe   :  { %p6160_p3 = scmp.ne.s32.totalorder %s36_s30, %s6159_s17  ;;  %p6165_p5 = scmp.lt.s32.totalorder %s6159_s17, %s6159_s17 }
  0x10   :  { %p6166_p6 = por %p6165_p5, %p6164_p4 }
  0x12   :  { %p6167_p7 = pnand %p6166_p6, %p6160_p3 }
  0x14   :  { %6170 = shalt.err (!%p6167_p7)
}
  0x15   :  { %s6245_s18 = smov 128   ;;  %s6246_s19 = smov 8  }
  0x16   :  { %41 = dma.hbm_to_vmem [thread:$0]  %s9108_s1, 256, %s36_s30, [#allocation7], %s6245_s18, %s6245_s18, %s6246_s19  }
  0x17   :  { %s6171_s24 = scalar_lea.hbm %s9107_s0, 1536 }
  0x18   :  { %p6172_p8 = scmp.ne.s32.totalorder %s9107_s0, %s6171_s24  ;;  %p6175_p9 = scmp.lt.u32.totalorder %s6171_s24, %s9107_s0 }
  0x1a   :  { %p6177_p10 = pnand %p6175_p9, %p6172_p8 }
  0x1c   :  { %6180 = shalt.err (!%p6177_p10)
}
  0x1d   :  { %s6181_s29 = scalar_lea.vmem %s6338_s10, 1536  ;;  %p6186_p12 = scmp.lt.s32.totalorder %s6338_s10, %s6338_s10 }
  0x1e   :  { %p6182_p11 = scmp.ne.s32.totalorder %s6338_s10, %s6181_s29  ;;  %p6187_p13 = scmp.lt.s32.totalorder %s6181_s29, %s6181_s29 }
  0x20   :  { %p6188_p0 = por %p6187_p13, %p6186_p12 }
  0x22   :  { %p6189_p1 = pnand %p6188_p0, %p6182_p11 }
  0x24   :  { %6192 = shalt.err (!%p6189_p1)
}
  0x25   :  { %29 = dma.hbm_to_vmem [thread:$0]  %s9107_s0, 1536, %s6338_s10, [#allocation5], %s6245_s18, %s6245_s18, %s6246_s19  }
  0x26   :  { %s6247_s9 = smov [#allocation8]   ;;  %s6248_s12 = smov [#allocation9]  }
  0x27   :  { %s47_s11 = sshll.u32 %s6247_s9, 4  ;;  %s68_s13 = sshll.u32 %s6248_s12, 4  ;;  %s48_s11 = int_to_ptr.vmem [resolvable:$true] %s47_s11  ;;  %s69_s13 = int_to_ptr.vmem [resolvable:$true] %s68_s13 }
  0x28   :  { %s6193_s6 = scalar_lea.hbm %s9109_s2, 640 }
  0x29   :  { %p6194_p2 = scmp.ne.s32.totalorder %s9109_s2, %s6193_s6  ;;  %p6197_p3 = scmp.lt.u32.totalorder %s6193_s6, %s9109_s2 }
  0x2b   :  { %p6199_p4 = pnand %p6197_p3, %p6194_p2 }
  0x2d   :  { %6202 = shalt.err (!%p6199_p4)
}
  0x2e   :  { %s6203_s0 = scalar_lea.vmem %s48_s11, 640  ;;  %p6208_p6 = scmp.lt.s32.totalorder %s48_s11, %s48_s11 }
  0x2f   :  { %p6204_p5 = scmp.ne.s32.totalorder %s48_s11, %s6203_s0  ;;  %p6209_p7 = scmp.lt.s32.totalorder %s6203_s0, %s6203_s0 }
  0x31   :  { %p6210_p8 = por %p6209_p7, %p6208_p6 }
  0x33   :  { %p6211_p9 = pnand %p6210_p8, %p6204_p5 }
  0x35   :  { %6214 = shalt.err (!%p6211_p9)
}
  0x36   :  { %53 = dma.hbm_to_vmem [thread:$0]  %s9109_s2, 640, %s48_s11, [#allocation7], %s6245_s18, %s6245_s18, %s6246_s19  }
  0x37   :  { %s6215_s25 = scalar_lea.hbm %s9114_s7, 512 }
  0x38   :  { %p6216_p10 = scmp.ne.s32.totalorder %s9114_s7, %s6215_s25  ;;  %p6219_p11 = scmp.lt.u32.totalorder %s6215_s25, %s9114_s7 }
  0x3a   :  { %p6221_p12 = pnand %p6219_p11, %p6216_p10 }
  0x3c   :  { %6224 = shalt.err (!%p6221_p12)
}
  0x3d   :  { %s6225_s1 = scalar_lea.vmem %s69_s13, 512  ;;  %p6230_p0 = scmp.lt.s32.totalorder %s69_s13, %s69_s13 }
  0x3e   :  { %p6226_p13 = scmp.ne.s32.totalorder %s69_s13, %s6225_s1  ;;  %p6231_p1 = scmp.lt.s32.totalorder %s6225_s1, %s6225_s1 }
  0x40   :  { %p6232_p2 = por %p6231_p1, %p6230_p0 }
  0x42   :  { %p6233_p3 = pnand %p6232_p2, %p6226_p13 }
  0x44   :  { %6236 = shalt.err (!%p6233_p3)
}
  0x45   :  { %71 = dma.hbm_to_vmem [thread:$0]  %s9114_s7, 512, %s69_s13, [#allocation10]  }
  0x46   :  { %6237 = dma.done.wait [#allocation5], 1536  }
  0x47   :  { %6238 = vsyncadd [#allocation5], 4294965760 }
  0x48   :  { %6239 = dma.done.wait [#allocation7], 896  }
  0x49   :  { %6240 = vsyncadd [#allocation7], 4294966400 }
  0x4a   :  { %6241 = dma.done.wait [#allocation10], 512  }
  0x4b   :  { %6242 = vsyncadd [#allocation10], 4294966784  ;;  %v9116_v1 = vmov 0.0   ;;  %vm107_vm0 = vcmask 1041409   ;;  %vm110_vm1 = vcmask 1042434   ;;  %s6250_s7 = smov 14  }
  0x4c   :  { %85 = vst [vmem:[#allocation2 + $0x8] sm:$0x7] %v9116_v1  ;;  %84 = vst [vmem:[#allocation2] sm:$0x7] %v9116_v1  ;;  %1721 = vmatprep.mubr.f32.mxu0 %v9116_v1  ;;  %1798 = vmatprep.mubr.f32.mxu1 %v9116_v1  ;;  %v100_v2 = vld [vmem:[#allocation4] sm:$0x1] }
  0x4d   :  { %86 = vst [vmem:[#allocation2 + $0x10] sm:$0x7] %v9116_v1  ;;  %87 = vst [vmem:[#allocation2 + $0x18] sm:$0x7] %v9116_v1  ;;  %v101_v3 = vld [vmem:[#allocation4 + $0x20] sm:$0x1] }
  0x4e   :  { %88 = vst [vmem:[#allocation2 + $0x20] sm:$0x7] %v9116_v1  ;;  %89 = vst [vmem:[#allocation2 + $0x28] sm:$0x7] %v9116_v1  ;;  %v102_v4 = vld [vmem:[#allocation4 + $0x40] sm:$0x1] }
  0x4f   :  { %90 = vst [vmem:[#allocation2 + $0x30] sm:$0x7] %v9116_v1  ;;  %91 = vst [vmem:[#allocation2 + $0x38] sm:$0x7] %v9116_v1  ;;  %v106_v5 = vrot.slane %v101_v3, 7  ;;  %v109_v6 = vrot.slane %v102_v4, 6 }
  0x50   :  { %92 = vst [vmem:[#allocation2 + $0x40] sm:$0x7] %v9116_v1  ;;  %93 = vst [vmem:[#allocation2 + $0x48] sm:$0x7] %v9116_v1  ;;  %v117_v7 = vld [vmem:[#allocation4 + $0x1] sm:$0x1] }
  0x51   :  { %94 = vst [vmem:[#allocation2 + $0x50] sm:$0x7] %v9116_v1  ;;  %95 = vst [vmem:[#allocation2 + $0x58] sm:$0x7] %v9116_v1  ;;  %v118_v8 = vld [vmem:[#allocation4 + $0x21] sm:$0x1]  ;;  %v108_v12 = vsel %vm107_vm0, %v106_v5, %v100_v2 }
  0x52   :  { %96 = vst [vmem:[#allocation2 + $0x60] sm:$0x7] %v9116_v1  ;;  %97 = vst [vmem:[#allocation2 + $0x68] sm:$0x7] %v9116_v1  ;;  %v119_v9 = vld [vmem:[#allocation4 + $0x41] sm:$0x1]  ;;  %v111_v16 = vsel %vm110_vm1, %v109_v6, %v108_v12 }
  0x53   :  { %98 = vst [vmem:[#allocation2 + $0x70] sm:$0x7] %v9116_v1  ;;  %99 = vst [vmem:[#allocation2 + $0x78] sm:$0x7] %v9116_v1  ;;  %v123_v10 = vrot.slane %v118_v8, 7  ;;  %v125_v13 = vrot.slane %v119_v9, 6  ;;  %112 = vrot.lane.b32.xlu0 %v111_v16, %s6250_s7 }
  0x54   :  { %v132_v11 = vld [vmem:[#allocation4 + $0x2] sm:$0x1]  ;;  %v149_v20 = vld [vmem:[#allocation4 + $0x3] sm:$0x1]  ;;  %v164_v27 = vld [vmem:[#allocation4 + $0x4] sm:$0x1] }
  0x55   :  { %v133_v14 = vld [vmem:[#allocation4 + $0x22] sm:$0x1]  ;;  %v124_v17 = vsel %vm107_vm0, %v123_v10, %v117_v7  ;;  %v150_v21 = vld [vmem:[#allocation4 + $0x23] sm:$0x1]  ;;  %v165_v28 = vld [vmem:[#allocation4 + $0x24] sm:$0x1] }
  0x56   :  { %v134_v15 = vld [vmem:[#allocation4 + $0x42] sm:$0x1]  ;;  %v138_v18 = vrot.slane %v133_v14, 7  ;;  %v151_v22 = vld [vmem:[#allocation4 + $0x43] sm:$0x1]  ;;  %v155_v23 = vrot.slane %v150_v21, 7  ;;  %v126_v24 = vsel %vm110_vm1, %v125_v13, %v124_v17 }
  0x57   :  { %v140_v19 = vrot.slane %v134_v15, 6  ;;  %v157_v26 = vrot.slane %v151_v22, 6  ;;  %v166_v29 = vld [vmem:[#allocation4 + $0x44] sm:$0x1]  ;;  %v170_v32 = vrot.slane %v165_v28, 7  ;;  %s6251_s19 = smov 102  }
  0x58   :  { %v139_v25 = vsel %vm107_vm0, %v138_v18, %v132_v11  ;;  %v156_v31 = vsel %vm107_vm0, %v155_v23, %v149_v20  ;;  %v179_v33 = vld [vmem:[#allocation4 + $0x5] sm:$0x1]  ;;  %v196_v37 = vld [vmem:[#allocation4 + $0x6] sm:$0x1]  ;;  %s6252_s30 = smov 58   ;;  %v172_v38 = vrot.slane %v166_v29, 6 }
  0x59   :  { %v141_v30 = vsel %vm110_vm1, %v140_v19, %v139_v25  ;;  %v180_v34 = vld [vmem:[#allocation4 + $0x25] sm:$0x1]  ;;  %127 = vrot.lane.b32.xlu0 %v126_v24, %s6252_s30  ;;  %v197_v40 = vld [vmem:[#allocation4 + $0x26] sm:$0x1]  ;;  %v158_v42 = vsel %vm110_vm1, %v157_v26, %v156_v31  ;;  %v212_v46 = vld [vmem:[#allocation4 + $0x27] sm:$0x1]  ;;  %v171_v47 = vsel %vm107_vm0, %v170_v32, %v164_v27 }
  0x5a   :  { %142 = vrot.lane.b32.xlu1 %v141_v30, %s6251_s19  ;;  %v181_v35 = vld [vmem:[#allocation4 + $0x45] sm:$0x1]  ;;  %v185_v36 = vrot.slane %v180_v34, 7  ;;  %v198_v41 = vld [vmem:[#allocation4 + $0x46] sm:$0x1]  ;;  %v202_v44 = vrot.slane %v197_v40, 7  ;;  %v173_v60 = vsel %vm110_vm1, %v172_v38, %v171_v47 }
  0x5b   :  { %v187_v39 = vrot.slane %v181_v35, 6  ;;  %v204_v45 = vrot.slane %v198_v41, 6  ;;  %v211_v49 = vld [vmem:[#allocation4 + $0x7] sm:$0x1]  ;;  %v217_v51 = vrot.slane %v212_v46, 7  ;;  %s6253_s9 = smov 106  }
  0x5c   :  { %v186_v43 = vsel %vm107_vm0, %v185_v36, %v179_v33  ;;  %v213_v50 = vld [vmem:[#allocation4 + $0x47] sm:$0x1]  ;;  %v203_v52 = vsel %vm107_vm0, %v202_v44, %v196_v37  ;;  %v226_v53 = vld [vmem:[#allocation4 + $0x8] sm:$0x1]  ;;  %s6254_s11 = smov 18   ;;  %s6255_s12 = smov 22  }
  0x5d   :  { %v188_v48 = vsel %vm110_vm1, %v187_v39, %v186_v43  ;;  %v227_v54 = vld [vmem:[#allocation4 + $0x28] sm:$0x1]  ;;  %159 = vrot.lane.b32.xlu0 %v158_v42, %s6254_s11  ;;  %v205_v56 = vsel %vm110_vm1, %v204_v45, %v203_v52  ;;  %v219_v57 = vrot.slane %v213_v50, 6  ;;  %v244_v59 = vld [vmem:[#allocation4 + $0x29] sm:$0x1]  ;;  %v218_v61 = vsel %vm107_vm0, %v217_v51, %v211_v49  ;;  %s6256_s13 = smov 62  }
  0x5e   :  { %189 = vrot.lane.b32.xlu1 %v188_v48, %s6253_s9  ;;  %v228_v55 = vld [vmem:[#allocation4 + $0x48] sm:$0x1]  ;;  %v232_v58 = vrot.slane %v227_v54, 7  ;;  %v245_v63 = vld [vmem:[#allocation4 + $0x49] sm:$0x1]  ;;  %v249_v2 = vrot.slane %v244_v59, 7 }
  0x5f   :  { %v234_v62 = vrot.slane %v228_v55, 6  ;;  %v243_v3 = vld [vmem:[#allocation4 + $0x9] sm:$0x1]  ;;  %v259_v4 = vld [vmem:[#allocation4 + $0x2a] sm:$0x1]  ;;  %v220_v5 = vsel %vm110_vm1, %v219_v57, %v218_v61  ;;  %v251_v6 = vrot.slane %v245_v63, 6 }
  0x60   :  { %v233_v0 = vsel %vm107_vm0, %v232_v58, %v226_v53  ;;  %v260_v7 = vld [vmem:[#allocation4 + $0x4a] sm:$0x1]  ;;  %v273_v9 = vld [vmem:[#allocation4 + $0xb] sm:$0x1]  ;;  %v250_v12 = vsel %vm107_vm0, %v249_v2, %v243_v3  ;;  %v264_v13 = vrot.slane %v259_v4, 7  ;;  %s6257_s14 = smov 66  }
  0x61   :  { %174 = vrot.lane.b32.xlu0 %v173_v60, %s6256_s13  ;;  %v235_v8 = vsel %vm110_vm1, %v234_v62, %v233_v0  ;;  %v274_v10 = vld [vmem:[#allocation4 + $0x2b] sm:$0x1]  ;;  %v258_v16 = vld [vmem:[#allocation4 + $0xa] sm:$0x1]  ;;  %v266_v17 = vrot.slane %v260_v7, 6  ;;  %s6258_s15 = smov 110   ;;  %v252_v23 = vsel %vm110_vm1, %v251_v6, %v250_v12 }
  0x62   :  { %206 = vrot.lane.b32.xlu1 %v205_v56, %s6255_s12  ;;  %v275_v11 = vld [vmem:[#allocation4 + $0x4b] sm:$0x1]  ;;  %v279_v14 = vrot.slane %v274_v10, 7  ;;  %v321_v18 = vld [vmem:[#allocation4 + $0x2e] sm:$0x1]  ;;  %v265_v28 = vsel %vm107_vm0, %v264_v13, %v258_v16  ;;  %s6259_s6 = smov 114  }
  0x63   :  { %v281_v15 = vrot.slane %v275_v11, 6  ;;  %v290_v20 = vld [vmem:[#allocation4 + $0xc] sm:$0x1]  ;;  %v320_v24 = vld [vmem:[#allocation4 + $0xe] sm:$0x1]  ;;  %v326_v30 = vrot.slane %v321_v18, 7  ;;  %v267_v39 = vsel %vm110_vm1, %v266_v17, %v265_v28 }
  0x64   :  { %v280_v19 = vsel %vm107_vm0, %v279_v14, %v273_v9  ;;  %v291_v21 = vld [vmem:[#allocation4 + $0x2c] sm:$0x1]  ;;  %v322_v29 = vld [vmem:[#allocation4 + $0x4e] sm:$0x1]  ;;  %v338_v31 = vld [vmem:[#allocation4 + $0x2f] sm:$0x1] }
  0x65   :  { %236 = vrot.lane.b32.xlu0 %v235_v8, %s6258_s15  ;;  %v292_v22 = vld [vmem:[#allocation4 + $0x4c] sm:$0x1]  ;;  %v282_v25 = vsel %vm110_vm1, %v281_v15, %v280_v19  ;;  %v296_v26 = vrot.slane %v291_v21, 7  ;;  %v305_v33 = vld [vmem:[#allocation4 + $0xd] sm:$0x1]  ;;  %s6260_s16 = smov 26   ;;  %v327_v43 = vsel %vm107_vm0, %v326_v30, %v320_v24 }
  0x66   :  { %221 = vrot.lane.b32.xlu1 %v220_v5, %s6257_s14  ;;  %v298_v27 = vrot.slane %v292_v22, 6  ;;  %v306_v34 = vld [vmem:[#allocation4 + $0x2d] sm:$0x1]  ;;  %v328_v40 = vrot.slane %v322_v29, 6  ;;  %v339_v41 = vld [vmem:[#allocation4 + $0x4f] sm:$0x1] }
  0x67   :  { %v297_v32 = vsel %vm107_vm0, %v296_v26, %v290_v20  ;;  %v307_v35 = vld [vmem:[#allocation4 + $0x4d] sm:$0x1]  ;;  %v311_v37 = vrot.slane %v306_v34, 7  ;;  %v343_v42 = vrot.slane %v338_v31, 7  ;;  %v367_v45 = vld [vmem:[#allocation4 + $0x11] sm:$0x1] }
  0x68   :  { %v299_v36 = vsel %vm110_vm1, %v298_v27, %v297_v32  ;;  %v313_v38 = vrot.slane %v307_v35, 6  ;;  %v368_v46 = vld [vmem:[#allocation4 + $0x31] sm:$0x1]  ;;  %v337_v48 = vld [vmem:[#allocation4 + $0xf] sm:$0x1]  ;;  %s6261_s17 = smov 30   ;;  %v329_v53 = vsel %vm110_vm1, %v328_v40, %v327_v43 }
  0x69   :  { %253 = vrot.lane.b32.xlu0 %v252_v23, %s6260_s16  ;;  %v312_v44 = vsel %vm107_vm0, %v311_v37, %v305_v33  ;;  %v369_v47 = vld [vmem:[#allocation4 + $0x51] sm:$0x1]  ;;  %v353_v49 = vld [vmem:[#allocation4 + $0x30] sm:$0x1]  ;;  %v373_v50 = vrot.slane %v368_v46, 7  ;;  %s6262_s20 = smov 70   ;;  %v344_v58 = vsel %vm107_vm0, %v343_v42, %v337_v48 }
  0x6a   :  { %283 = vrot.lane.b32.xlu1 %v282_v25, %s6259_s6  ;;  %v314_v51 = vsel %vm110_vm1, %v313_v38, %v312_v44  ;;  %v375_v52 = vrot.slane %v369_v47, 6  ;;  %v345_v54 = vrot.slane %v339_v41, 6  ;;  %v385_v56 = vld [vmem:[#allocation4 + $0x32] sm:$0x1]  ;;  %v354_v59 = vld [vmem:[#allocation4 + $0x50] sm:$0x1] }
  0x6b   :  { %v374_v55 = vsel %vm107_vm0, %v373_v50, %v367_v45  ;;  %v386_v57 = vld [vmem:[#allocation4 + $0x52] sm:$0x1]  ;;  %v358_v60 = vrot.slane %v353_v49, 7  ;;  %v390_v62 = vrot.slane %v385_v56, 7  ;;  %v352_v63 = vld [vmem:[#allocation4 + $0x10] sm:$0x1] }
  0x6c   :  { %v384_v61 = vld [vmem:[#allocation4 + $0x12] sm:$0x1]  ;;  %s6263_s21 = smov 74   ;;  %v415_v0 = vld [vmem:[#allocation4 + $0x34] sm:$0x1]  ;;  %s6264_s0 = smov 118   ;;  %v376_v2 = vsel %vm110_vm1, %v375_v52, %v374_v55  ;;  %v346_v5 = vsel %vm110_vm1, %v345_v54, %v344_v58 }
  0x6d   :  { %268 = vrot.lane.b32.xlu0 %v267_v39, %s6262_s20  ;;  %v392_v3 = vrot.slane %v386_v57, 6  ;;  %v400_v4 = vld [vmem:[#allocation4 + $0x33] sm:$0x1]  ;;  %v360_v6 = vrot.slane %v354_v59, 6  ;;  %v416_v7 = vld [vmem:[#allocation4 + $0x54] sm:$0x1]  ;;  %v391_v8 = vsel %vm107_vm0, %v390_v62, %v384_v61  ;;  %v359_v11 = vsel %vm107_vm0, %v358_v60, %v352_v63 }
  0x6e   :  { %300 = vrot.lane.b32.xlu1 %v299_v36, %s6261_s17  ;;  %v401_v9 = vld [vmem:[#allocation4 + $0x53] sm:$0x1]  ;;  %v405_v10 = vrot.slane %v400_v4, 7  ;;  %v420_v12 = vrot.slane %v415_v0, 7  ;;  %v432_v13 = vld [vmem:[#allocation4 + $0x35] sm:$0x1] }
  0x6f   :  { %v399_v14 = vld [vmem:[#allocation4 + $0x13] sm:$0x1]  ;;  %v414_v15 = vld [vmem:[#allocation4 + $0x14] sm:$0x1]  ;;  %s6265_s10 = smov 122   ;;  %s6266_s22 = smov 34   ;;  %v393_v18 = vsel %vm110_vm1, %v392_v3, %v391_v8  ;;  %v361_v20 = vsel %vm110_vm1, %v360_v6, %v359_v11 }
  0x70   :  { %v462_v16 = vld [vmem:[#allocation4 + $0x37] sm:$0x1]  ;;  %v422_v17 = vrot.slane %v416_v7, 6  ;;  %v407_v19 = vrot.slane %v401_v9, 6  ;;  %v433_v21 = vld [vmem:[#allocation4 + $0x55] sm:$0x1]  ;;  %v406_v23 = vsel %vm107_vm0, %v405_v10, %v399_v14  ;;  %v421_v26 = vsel %vm107_vm0, %v420_v12, %v414_v15 }
  0x71   :  { %330 = vrot.lane.b32.xlu0 %v329_v53, %s6264_s0  ;;  %v437_v22 = vrot.slane %v432_v13, 7  ;;  %v463_v24 = vld [vmem:[#allocation4 + $0x57] sm:$0x1]  ;;  %v467_v25 = vrot.slane %v462_v16, 7  ;;  %v447_v27 = vld [vmem:[#allocation4 + $0x36] sm:$0x1] }
  0x72   :  { %315 = vrot.lane.b32.xlu1 %v314_v51, %s6263_s21  ;;  %v461_v28 = vld [vmem:[#allocation4 + $0x17] sm:$0x1]  ;;  %v477_v29 = vld [vmem:[#allocation4 + $0x38] sm:$0x1]  ;;  %v431_v30 = vld [vmem:[#allocation4 + $0x15] sm:$0x1]  ;;  %v408_v33 = vsel %vm110_vm1, %v407_v19, %v406_v23  ;;  %v423_v35 = vsel %vm110_vm1, %v422_v17, %v421_v26 }
  0x73   :  { %s6267_s23 = smov 38   ;;  %s6268_s24 = smov 78   ;;  %v439_v31 = vrot.slane %v433_v21, 6  ;;  %v448_v32 = vld [vmem:[#allocation4 + $0x56] sm:$0x1]  ;;  %v469_v34 = vrot.slane %v463_v24, 6  ;;  %v468_v38 = vsel %vm107_vm0, %v467_v25, %v461_v28  ;;  %v438_v41 = vsel %vm107_vm0, %v437_v22, %v431_v30 }
  0x74   :  { %v452_v36 = vrot.slane %v447_v27, 7  ;;  %v507_v37 = vld [vmem:[#allocation4 + $0x3a] sm:$0x1]  ;;  %v478_v39 = vld [vmem:[#allocation4 + $0x58] sm:$0x1]  ;;  %v482_v40 = vrot.slane %v477_v29, 7 }
  0x75   :  { %347 = vrot.lane.b32.xlu0 %v346_v5, %s6266_s22  ;;  %v476_v42 = vld [vmem:[#allocation4 + $0x18] sm:$0x1]  ;;  %v492_v43 = vld [vmem:[#allocation4 + $0x39] sm:$0x1]  ;;  %v6465_v44 = vld [vmem:[#allocation2 + $0x8] sm:$0x7]  ;;  %v470_v47 = vsel %vm110_vm1, %v469_v34, %v468_v38  ;;  %v440_v49 = vsel %vm110_vm1, %v439_v31, %v438_v41 }
  0x76   :  { %377 = vrot.lane.b32.xlu1 %v376_v2, %s6265_s10  ;;  %v446_v45 = vld [vmem:[#allocation4 + $0x16] sm:$0x1]  ;;  %s6269_s25 = smov 82   ;;  %618 = vst [vmem:[#allocation2 + $0x8] sm:$0x7] %v6465_v44  ;;  %s6270_s26 = smov 126   ;;  %v483_v52 = vsel %vm107_vm0, %v482_v40, %v476_v42 }
  0x77   :  { %v454_v46 = vrot.slane %v448_v32, 6  ;;  %v484_v48 = vrot.slane %v478_v39, 6  ;;  %v508_v50 = vld [vmem:[#allocation4 + $0x5a] sm:$0x1]  ;;  %v512_v51 = vrot.slane %v507_v37, 7  ;;  %v497_v54 = vrot.slane %v492_v43, 7 }
  0x78   :  { %v493_v53 = vld [vmem:[#allocation4 + $0x59] sm:$0x1]  ;;  %v453_v55 = vsel %vm107_vm0, %v452_v36, %v446_v45  ;;  %v552_v57 = vld [vmem:[#allocation4 + $0x3d] sm:$0x1]  ;;  %v6474_v58 = vld [vmem:[#allocation2] sm:$0x7] }
  0x79   :  { %362 = vrot.lane.b32.xlu0 %v361_v20, %s6268_s24  ;;  %v491_v56 = vld [vmem:[#allocation4 + $0x19] sm:$0x1]  ;;  %v506_v59 = vld [vmem:[#allocation4 + $0x1a] sm:$0x1]  ;;  %s6271_s27 = smov 2   ;;  %s6272_s28 = smov 42   ;;  %v485_v61 = vsel %vm110_vm1, %v484_v48, %v483_v52  ;;  %v455_v63 = vsel %vm110_vm1, %v454_v46, %v453_v55 }
  0x7a   :  { %394 = vrot.lane.b32.xlu1 %v393_v18, %s6267_s23  ;;  %v522_v60 = vld [vmem:[#allocation4 + $0x3b] sm:$0x1]  ;;  %617 = vst [vmem:[#allocation2] sm:$0x7] %v6474_v58  ;;  %v499_v62 = vrot.slane %v493_v53, 6  ;;  %v514_v0 = vrot.slane %v508_v50, 6  ;;  %v498_v3 = vsel %vm107_vm0, %v497_v54, %v491_v56  ;;  %v513_v6 = vsel %vm107_vm0, %v512_v51, %v506_v59 }
  0x7b   :  { %v523_v2 = vld [vmem:[#allocation4 + $0x5b] sm:$0x1]  ;;  %v553_v4 = vld [vmem:[#allocation4 + $0x5d] sm:$0x1]  ;;  %v557_v5 = vrot.slane %v552_v57, 7  ;;  %v527_v7 = vrot.slane %v522_v60, 7 }
  0x7c   :  { %v551_v8 = vld [vmem:[#allocation4 + $0x1d] sm:$0x1]  ;;  %v567_v9 = vld [vmem:[#allocation4 + $0x3e] sm:$0x1]  ;;  %v521_v10 = vld [vmem:[#allocation4 + $0x1b] sm:$0x1]  ;;  %v500_v12 = vsel %vm110_vm1, %v499_v62, %v498_v3  ;;  %v515_v14 = vsel %vm110_vm1, %v514_v0, %v513_v6 }
  0x7d   :  { %424 = vrot.lane.b32.xlu0 %v423_v35, %s6270_s26  ;;  %s6273_s29 = smov 46   ;;  %v537_v11 = vld [vmem:[#allocation4 + $0x3c] sm:$0x1]  ;;  %s6274_s1 = smov 86   ;;  %v559_v13 = vrot.slane %v553_v4, 6  ;;  %v529_v15 = vrot.slane %v523_v2, 6  ;;  %v558_v17 = vsel %vm107_vm0, %v557_v5, %v551_v8  ;;  %v528_v20 = vsel %vm107_vm0, %v527_v7, %v521_v10 }
  0x7e   :  { %409 = vrot.lane.b32.xlu1 %v408_v33, %s6269_s25  ;;  %v538_v16 = vld [vmem:[#allocation4 + $0x5c] sm:$0x1]  ;;  %v568_v18 = vld [vmem:[#allocation4 + $0x5e] sm:$0x1]  ;;  %v572_v19 = vrot.slane %v567_v9, 7  ;;  %v542_v21 = vrot.slane %v537_v11, 7 }
  0x7f   :  { %v566_v22 = vld [vmem:[#allocation4 + $0x1e] sm:$0x1]  ;;  %v582_v23 = vld [vmem:[#allocation4 + $0x3f] sm:$0x1]  ;;  %v536_v24 = vld [vmem:[#allocation4 + $0x1c] sm:$0x1]  ;;  %v560_v25 = vsel %vm110_vm1, %v559_v13, %v558_v17  ;;  %v530_v27 = vsel %vm110_vm1, %v529_v15, %v528_v20  ;;  %v665_v13 = vlaneseq }
  0x80   :  { %s6275_s2 = smov 90   ;;  %s6276_s18 = smov 6   ;;  %v574_v26 = vrot.slane %v568_v18, 6  ;;  %v544_v28 = vrot.slane %v538_v16, 6  ;;  %v573_v29 = vsel %vm107_vm0, %v572_v19, %v566_v22  ;;  %v583_v30 = vld [vmem:[#allocation4 + $0x5f] sm:$0x1]  ;;  %v543_v32 = vsel %vm107_vm0, %v542_v21, %v536_v24 }
  0x81   :  { %441 = vrot.lane.b32.xlu0 %v440_v49, %s6272_s28  ;;  %v587_v31 = vrot.slane %v582_v23, 7  ;;  %v581_v33 = vld [vmem:[#allocation4 + $0x1f] sm:$0x1]  ;;  %s6277_s7 = smov 10   ;;  %s6278_s19 = smov 50   ;;  %v589_v35 = vrot.slane %v583_v30, 6 }
  0x82   :  { %471 = vrot.lane.b32.xlu1 %v470_v47, %s6271_s27  ;;  %v575_v34 = vsel %vm110_vm1, %v574_v26, %v573_v29  ;;  %v545_v36 = vsel %vm110_vm1, %v544_v28, %v543_v32  ;;  %s6279_s30 = smov 54   ;;  %s6280_s9 = smov 94   ;;  %vm115_vm2 = vcmask 370800   ;;  %vm147_vm3 = vcmask 43008   ;;  %v6603_v20 = vld [vmem:[#allocation2 + $0x70] sm:$0x7] }
  0x83   :  { %v588_v37 = vsel %vm107_vm0, %v587_v31, %v581_v33  ;;  %s6281_s11 = smov 98   ;;  %s6282_s12 = smov 127   ;;  %vm130_vm4 = vcmask 731600   ;;  %vm145_vm5 = vcmask 1043248   ;;  %vm194_vm6 = vcmask 75776  }
  0x84   :  { %v590_v38 = vsel %vm110_vm1, %v589_v35, %v588_v37  ;;  %s6283_s13 = smov 83   ;;  %s6284_s14 = smov 84   ;;  %vm162_vm7 = vcmask 403600   ;;  %vm209_vm8 = vcmask 436400   ;;  %vm177_vm9 = vcmask 764400  }
  0x85   :  { %456 = vrot.lane.b32.xlu0 %v455_v63, %s6274_s1  ;;  %s6285_s15 = smov 40   ;;  %s6286_s6 = smov 39   ;;  %vm192_vm10 = vcmask 1043280   ;;  %vm224_vm11 = vcmask 797200   ;;  %vm239_vm12 = vcmask 1043312   ;;  %vm241_vm13 = vcmask 108544  }
  0x86   :  { %486 = vrot.lane.b32.xlu1 %v485_v61, %s6273_s29  ;;  %vm288_vm14 = vcmask 141312   ;;  %vm256_vm15 = vcmask 469200   ;;  %vm303_vm0 = vcmask 502000   ;;  %vm271_vm1 = vcmask 830000   ;;  %631 = vst [vmem:[#allocation2 + $0x70] sm:$0x7] %v6603_v20 }
  0x87   :  { %v6594_v17 = vand.u32 127, %v665_v13 }
  0x89   :  { %516 = vrot.lane.b32.xlu0 %v515_v14, %s6276_s18 }
  0x8a   :  { %501 = vrot.lane.b32.xlu1 %v500_v12, %s6275_s2 }
  0x8d   :  { %531 = vrot.lane.b32.xlu0 %v530_v27, %s6278_s19 }
  0x8e   :  { %561 = vrot.lane.b32.xlu1 %v560_v25, %s6277_s7 }
  0x91   :  { %546 = vrot.lane.b32.xlu0 %v545_v36, %s6280_s9 }
  0x92   :  { %576 = vrot.lane.b32.xlu1 %v575_v34, %s6279_s30 }
  0x95   :  { %635 = vrot.lane.b32.xlu0 %v6465_v44, %s6282_s12 }
  0x96   :  { %591 = vrot.lane.b32.xlu1 %v590_v38, %s6281_s11 }
  0x99   :  { %750 = vrot.lane.b32.xlu0 %v6465_v44, %s6270_s26 }
  0x9a   :  { %748 = vrot.lane.b32.xlu1 %v6474_v58, %s6270_s26 }
  0x9d   :  { %879 = vrot.lane.b32.xlu0 %v6465_v44, %s6284_s14 }
  0x9e   :  { %990 = vrot.lane.b32.xlu1 %v6474_v58, %s6283_s13 }
  0xa1   :  { %992 = vrot.lane.b32.xlu0 %v6465_v44, %s6283_s13 }
  0xa2   :  { %1234 = vrot.lane.b32.xlu1 %v6465_v44, %s6285_s15 }
  0xa5   :  { %1105 = vrot.lane.b32.xlu0 %v6465_v44, %s6269_s25 }
  0xa6   :  { %1347 = vrot.lane.b32.xlu1 %v6465_v44, %s6286_s6 }
  0xa9   :  { %633 = vrot.lane.b32.xlu0 %v6474_v58, %s6282_s12 }
  0xaa   :  { %1232 = vrot.lane.b32.xlu1 %v6474_v58, %s6285_s15 }
  0xad   :  { %877 = vrot.lane.b32.xlu0 %v6474_v58, %s6284_s14 }
  0xae   :  { %1460 = vrot.lane.b32.xlu1 %v6465_v44, %s6267_s23 }
  0xb1   :  { %1103 = vrot.lane.b32.xlu0 %v6474_v58, %s6269_s25 }
  0xb2   :  { %1458 = vrot.lane.b32.xlu1 %v6474_v58, %s6267_s23 }
  0xb5   :  { %1345 = vrot.lane.b32.xlu0 %v6474_v58, %s6286_s6 }
  0xc5   :  { %v113_v39 = vpop.permute.xlu0 %112 }
  0xc6   :  { %116 = vst.msk [vmem:[#allocation2 + $0x10] sm:$0x7] %vm115_vm2, %v113_v39  ;;  %vm286_vm2 = vcmask 1043344  }
  0xcb   :  { %v128_v41 = vpop.permute.xlu0 %127 }
  0xcc   :  { %v143_v40 = vpop.permute.xlu1 %142  ;;  %131 = vst.msk [vmem:[#allocation2 + $0x10] sm:$0x7] %vm130_vm4, %v128_v41  ;;  %vm335_vm4 = vcmask 174080  }
  0xcd   :  { %148 = vst.msk [vmem:[#allocation2 + $0x18] sm:$0x7] %vm147_vm3, %v143_v40  ;;  %vm318_vm3 = vcmask 862800  }
  0xce   :  { %146 = vst.msk [vmem:[#allocation2 + $0x10] sm:$0x7] %vm145_vm5, %v143_v40  ;;  %vm333_vm5 = vcmask 1043376  }
  0xcf   :  { %v160_v43 = vpop.permute.xlu0 %159 }
  0xd0   :  { %v190_v42 = vpop.permute.xlu1 %189  ;;  %163 = vst.msk [vmem:[#allocation2 + $0x18] sm:$0x7] %vm162_vm7, %v160_v43  ;;  %vm350_vm7 = vcmask 534800  }
  0xd1   :  { %195 = vst.msk [vmem:[#allocation2 + $0x20] sm:$0x7] %vm194_vm6, %v190_v42  ;;  %vm382_vm6 = vcmask 206848  }
  0xd3   :  { %v175_v45 = vpop.permute.xlu0 %174 }
  0xd4   :  { %v207_v44 = vpop.permute.xlu1 %206  ;;  %178 = vst.msk [vmem:[#allocation2 + $0x18] sm:$0x7] %vm177_vm9, %v175_v45  ;;  %vm365_vm9 = vcmask 895600  }
  0xd5   :  { %210 = vst.msk [vmem:[#allocation2 + $0x20] sm:$0x7] %vm209_vm8, %v207_v44  ;;  %v600_v46 = vld [vmem:[#allocation2 + $0x10] sm:$0x7]  ;;  %vm397_vm8 = vcmask 567600  }
  0xd6   :  { %619 = vst [vmem:[#allocation2 + $0x10] sm:$0x7] %v600_v46  ;;  %637 = vrot.lane.b32.xlu1 %v600_v46, %s6282_s12  ;;  %1236 = vrot.lane.b32.xlu0 %v600_v46, %s6285_s15  ;;  %193 = vst.msk [vmem:[#allocation2 + $0x18] sm:$0x7] %vm192_vm10, %v190_v42  ;;  %vm380_vm10 = vcmask 1043408  }
  0xd7   :  { %v237_v48 = vpop.permute.xlu0 %236 }
  0xd8   :  { %v222_v47 = vpop.permute.xlu1 %221  ;;  %242 = vst.msk [vmem:[#allocation2 + $0x28] sm:$0x7] %vm241_vm13, %v237_v48  ;;  %vm427_vm13 = vcmask 1043440  }
  0xd9   :  { %225 = vst.msk [vmem:[#allocation2 + $0x20] sm:$0x7] %vm224_vm11, %v222_v47  ;;  %vm412_vm11 = vcmask 928400  }
  0xda   :  { %240 = vst.msk [vmem:[#allocation2 + $0x20] sm:$0x7] %vm239_vm12, %v237_v48  ;;  %752 = vrot.lane.b32.xlu1 %v600_v46, %s6270_s26  ;;  %1349 = vrot.lane.b32.xlu0 %v600_v46, %s6286_s6  ;;  %vm429_vm12 = vcmask 239616  }
  0xdb   :  { %v254_v50 = vpop.permute.xlu0 %253 }
  0xdc   :  { %v284_v49 = vpop.permute.xlu1 %283  ;;  %257 = vst.msk [vmem:[#allocation2 + $0x28] sm:$0x7] %vm256_vm15, %v254_v50  ;;  %vm444_vm15 = vcmask 600400  }
  0xdd   :  { %289 = vst.msk [vmem:[#allocation2 + $0x30] sm:$0x7] %vm288_vm14, %v284_v49  ;;  %v6529_v51 = vld [vmem:[#allocation2 + $0x18] sm:$0x7]  ;;  %vm474_vm14 = vcmask 272400  }
  0xde   :  { %620 = vst [vmem:[#allocation2 + $0x18] sm:$0x7] %v6529_v51  ;;  %881 = vrot.lane.b32.xlu1 %v600_v46, %s6284_s14  ;;  %1462 = vrot.lane.b32.xlu0 %v600_v46, %s6267_s23 }
  0xdf   :  { %v269_v54 = vpop.permute.xlu0 %268 }
  0xe0   :  { %v301_v52 = vpop.permute.xlu1 %300  ;;  %272 = vst.msk [vmem:[#allocation2 + $0x28] sm:$0x7] %vm271_vm1, %v269_v54  ;;  %vm459_vm1 = vcmask 961200  }
  0xe1   :  { %v6534_v53 = vld [vmem:[#allocation2 + $0x20] sm:$0x7]  ;;  %304 = vst.msk [vmem:[#allocation2 + $0x30] sm:$0x7] %vm303_vm0, %v301_v52  ;;  %vm489_vm0 = vcmask 633200  }
  0xe2   :  { %621 = vst [vmem:[#allocation2 + $0x20] sm:$0x7] %v6534_v53  ;;  %994 = vrot.lane.b32.xlu1 %v600_v46, %s6283_s13  ;;  %639 = vrot.lane.b32.xlu0 %v6529_v51, %s6282_s12  ;;  %287 = vst.msk [vmem:[#allocation2 + $0x28] sm:$0x7] %vm286_vm2, %v284_v49  ;;  %vm504_vm2 = vcmask 994000  }
  0xe3   :  { %v331_v56 = vpop.permute.xlu0 %330 }
  0xe4   :  { %v316_v55 = vpop.permute.xlu1 %315  ;;  %336 = vst.msk [vmem:[#allocation2 + $0x38] sm:$0x7] %vm335_vm4, %v331_v56  ;;  %vm564_vm4 = vcmask 338000  }
  0xe5   :  { %319 = vst.msk [vmem:[#allocation2 + $0x30] sm:$0x7] %vm318_vm3, %v316_v55  ;;  %vm519_vm3 = vcmask 305200   ;;  %v6287_v55 = vmov 0  }
  0xe6   :  { %334 = vst.msk [vmem:[#allocation2 + $0x30] sm:$0x7] %vm333_vm5, %v331_v56  ;;  %1107 = vrot.lane.b32.xlu1 %v600_v46, %s6269_s25  ;;  %754 = vrot.lane.b32.xlu0 %v6529_v51, %s6270_s26  ;;  %vm534_vm5 = vcmask 666000   ;;  %v6689_v46 = vld [vmem:[#allocation2 + $0x78] sm:$0x7] }
  0xe7   :  { %v348_v58 = vpop.permute.xlu0 %347  ;;  %632 = vst [vmem:[#allocation2 + $0x78] sm:$0x7] %v6689_v46  ;;  %6145 = vset.pattern.permute.xlu1 %v6287_v55  ;;  %6144 = vset.pattern.permute.xlu0 %v6287_v55 }
  0xe8   :  { %v378_v57 = vpop.permute.xlu1 %377  ;;  %351 = vst.msk [vmem:[#allocation2 + $0x38] sm:$0x7] %vm350_vm7, %v348_v58  ;;  %vm549_vm7 = vcmask 1026800  }
  0xe9   :  { %383 = vst.msk [vmem:[#allocation2 + $0x40] sm:$0x7] %vm382_vm6, %v378_v57  ;;  %v6543_v59 = vld [vmem:[#allocation2 + $0x28] sm:$0x7]  ;;  %vm579_vm6 = vcmask 698800  }
  0xea   :  { %641 = vrot.lane.b32.xlu1 %v6534_v53, %s6282_s12  ;;  %883 = vrot.lane.b32.xlu0 %v6529_v51, %s6284_s14  ;;  %622 = vst [vmem:[#allocation2 + $0x28] sm:$0x7] %v6543_v59 }
  0xeb   :  { %v363_v61 = vpop.permute.xlu0 %362 }
  0xec   :  { %v395_v60 = vpop.permute.xlu1 %394  ;;  %366 = vst.msk [vmem:[#allocation2 + $0x38] sm:$0x7] %vm365_vm9, %v363_v61  ;;  %vm596_vm9 = vcmask 10240  }
  0xed   :  { %v6550_v62 = vld [vmem:[#allocation2 + $0x30] sm:$0x7]  ;;  %398 = vst.msk [vmem:[#allocation2 + $0x40] sm:$0x7] %vm397_vm8, %v395_v60  ;;  %vm594_vm8 = vcmask 1043216  }
  0xee   :  { %623 = vst [vmem:[#allocation2 + $0x30] sm:$0x7] %v6550_v62  ;;  %756 = vrot.lane.b32.xlu1 %v6534_v53, %s6270_s26  ;;  %996 = vrot.lane.b32.xlu0 %v6529_v51, %s6283_s13  ;;  %381 = vst.msk [vmem:[#allocation2 + $0x38] sm:$0x7] %vm380_vm10, %v378_v57  ;;  %vm780_vm10 = vcmp.lt.s32.totalorder %v6594_v17, 126 }
  0xef   :  { %v425_v0 = vpop.permute.xlu0 %424 }
  0xf0   :  { %v410_v63 = vpop.permute.xlu1 %409  ;;  %430 = vst.msk [vmem:[#allocation2 + $0x48] sm:$0x7] %vm429_vm12, %v425_v0  ;;  %vm1264_vm12 = vcmp.lt.s32.totalorder %v6594_v17, 40 }
  0xf1   :  { %413 = vst.msk [vmem:[#allocation2 + $0x40] sm:$0x7] %vm412_vm11, %v410_v63  ;;  %vm1022_vm11 = vcmp.lt.s32.totalorder %v6594_v17, 83 }
  0xf2   :  { %428 = vst.msk [vmem:[#allocation2 + $0x40] sm:$0x7] %vm427_vm13, %v425_v0  ;;  %885 = vrot.lane.b32.xlu1 %v6534_v53, %s6284_s14  ;;  %1109 = vrot.lane.b32.xlu0 %v6529_v51, %s6269_s25  ;;  %vm667_vm13 = vcmp.lt.s32.totalorder %v6594_v17, 127 }
  0xf3   :  { %v442_v3 = vpop.permute.xlu0 %441 }
  0xf4   :  { %v472_v2 = vpop.permute.xlu1 %471  ;;  %445 = vst.msk [vmem:[#allocation2 + $0x48] sm:$0x7] %vm444_vm15, %v442_v3  ;;  %vm1490_vm15 = vcmp.lt.s32.totalorder %v6594_v17, 38 }
  0xf5   :  { %475 = vst.msk [vmem:[#allocation2 + $0x50] sm:$0x7] %vm474_vm14, %v472_v2  ;;  %v6561_v4 = vld [vmem:[#allocation2 + $0x38] sm:$0x7]  ;;  %vm909_vm14 = vcmp.lt.s32.totalorder %v6594_v17, 84 }
  0xf6   :  { %998 = vrot.lane.b32.xlu1 %v6534_v53, %s6283_s13  ;;  %1238 = vrot.lane.b32.xlu0 %v6529_v51, %s6285_s15  ;;  %624 = vst [vmem:[#allocation2 + $0x38] sm:$0x7] %v6561_v4 }
  0xf7   :  { %v457_v6 = vpop.permute.xlu0 %456 }
  0xf8   :  { %v487_v5 = vpop.permute.xlu1 %486  ;;  %460 = vst.msk [vmem:[#allocation2 + $0x48] sm:$0x7] %vm459_vm1, %v457_v6  ;;  %vm1377_vm1 = vcmp.lt.s32.totalorder %v6594_v17, 39 }
  0xf9   :  { %v6568_v7 = vld [vmem:[#allocation2 + $0x40] sm:$0x7]  ;;  %490 = vst.msk [vmem:[#allocation2 + $0x50] sm:$0x7] %vm489_vm0, %v487_v5  ;;  %vm1135_vm0 = vcmp.lt.s32.totalorder %v6594_v17, 82 }
  0xfa   :  { %625 = vst [vmem:[#allocation2 + $0x40] sm:$0x7] %v6568_v7  ;;  %1111 = vrot.lane.b32.xlu1 %v6534_v53, %s6269_s25  ;;  %1351 = vrot.lane.b32.xlu0 %v6529_v51, %s6286_s6 }
  0xfb   :  { %v517_v9 = vpop.permute.xlu0 %516 }
  0xfc   :  { %v502_v8 = vpop.permute.xlu1 %501  ;;  %520 = vst.msk [vmem:[#allocation2 + $0x58] sm:$0x7] %vm519_vm3, %v517_v9  ;;  %vm6288_vm3 = vmmov 1  }
  0xfd   :  { %505 = vst.msk [vmem:[#allocation2 + $0x50] sm:$0x7] %vm504_vm2, %v502_v8  ;;  %vm1608_vm2 = vcmask 1042432  }
  0xfe   :  { %1240 = vrot.lane.b32.xlu1 %v6534_v53, %s6285_s15  ;;  %1464 = vrot.lane.b32.xlu0 %v6529_v51, %s6267_s23 }
  0xff   :  { %v6579_v11 = vld [vmem:[#allocation2 + $0x48] sm:$0x7]  ;;  %v532_v12 = vpop.permute.xlu0 %531 }
 0x100   :  { %v562_v10 = vpop.permute.xlu1 %561  ;;  %626 = vst [vmem:[#allocation2 + $0x48] sm:$0x7] %v6579_v11  ;;  %535 = vst.msk [vmem:[#allocation2 + $0x58] sm:$0x7] %vm534_vm5, %v532_v12  ;;  %vm1601_vm5 = vcmask 220160  }
 0x101   :  { %565 = vst.msk [vmem:[#allocation2 + $0x60] sm:$0x7] %vm564_vm4, %v562_v10  ;;  %vm6833_vm4 = vmpackc.low %vm1608_vm2, %vm6288_vm3 }
 0x102   :  { %1353 = vrot.lane.b32.xlu1 %v6534_v53, %s6286_s6  ;;  %643 = vrot.lane.b32.xlu0 %v6543_v59, %s6282_s12 }
 0x103   :  { %v547_v16 = vpop.permute.xlu0 %546 }
 0x104   :  { %v6586_v14 = vld [vmem:[#allocation2 + $0x50] sm:$0x7]  ;;  %v577_v15 = vpop.permute.xlu1 %576  ;;  %550 = vst.msk [vmem:[#allocation2 + $0x58] sm:$0x7] %vm549_vm7, %v547_v16  ;;  %vm5083_vm7 = vcmask 1043456  }
 0x105   :  { %627 = vst [vmem:[#allocation2 + $0x50] sm:$0x7] %v6586_v14  ;;  %580 = vst.msk [vmem:[#allocation2 + $0x60] sm:$0x7] %vm579_vm6, %v577_v15  ;;  %vm2428_vm6 = vcmask 130048  }
 0x106   :  { %1466 = vrot.lane.b32.xlu1 %v6534_v53, %s6267_s23  ;;  %758 = vrot.lane.b32.xlu0 %v6543_v59, %s6270_s26 }
 0x107   :  { %v6596_v19 = vpop.permute.xlu0 %635 }
 0x108   :  { %v592_v18 = vpop.permute.xlu1 %591 }
 0x109   :  { %595 = vst.msk [vmem:[#allocation2 + $0x60] sm:$0x7] %vm594_vm8, %v592_v18  ;;  %vm5079_vm8 = vcmask 293888  }
 0x10a   :  { %597 = vst.msk [vmem:[#allocation2 + $0x68] sm:$0x7] %vm596_vm9, %v592_v18  ;;  %645 = vrot.lane.b32.xlu1 %v6550_v62, %s6282_s12  ;;  %887 = vrot.lane.b32.xlu0 %v6543_v59, %s6284_s14 }
 0x10b   :  { %v6608_v22 = vld [vmem:[#allocation2 + $0x58] sm:$0x7]  ;;  %v6610_v23 = vpop.permute.xlu0 %750 }
 0x10c   :  { %v6605_v21 = vpop.permute.xlu1 %748  ;;  %628 = vst [vmem:[#allocation2 + $0x58] sm:$0x7] %v6608_v22 }
 0x10d   :  { %v795_v24 = vsel %vm780_vm10, %v6605_v21, %v6610_v23 }
 0x10e   :  { %760 = vrot.lane.b32.xlu1 %v6550_v62, %s6270_s26  ;;  %1000 = vrot.lane.b32.xlu0 %v6543_v59, %s6283_s13  ;;  %v813_v25 = vrot.slane %v795_v24, 2 }
 0x10f   :  { %v6627_v29 = vpop.permute.xlu0 %879 }
 0x110   :  { %v6621_v26 = vld [vmem:[#allocation2 + $0x60] sm:$0x7]  ;;  %v6625_v28 = vpop.permute.xlu1 %990  ;;  %845 = vst [vmem:[#allocation2 + $0x80] ss:$-124 sps:$4 sm:$0xc1] %v813_v25  }
 0x111   :  { %v6623_v27 = vld [vmem:[#allocation2 + $0x68] sm:$0x7]  ;;  %629 = vst [vmem:[#allocation2 + $0x60] sm:$0x7] %v6621_v26 }
 0x112   :  { %630 = vst [vmem:[#allocation2 + $0x68] sm:$0x7] %v6623_v27  ;;  %889 = vrot.lane.b32.xlu1 %v6550_v62, %s6284_s14  ;;  %1113 = vrot.lane.b32.xlu0 %v6543_v59, %s6269_s25 }
 0x113   :  { %v6638_v31 = vpop.permute.xlu0 %992 }
 0x114   :  { %v6636_v30 = vpop.permute.xlu1 %1234  ;;  %v1037_v32 = vsel %vm1022_vm11, %v6625_v28, %v6638_v31 }
 0x115   :  { %v1055_v33 = vrot.slane %v1037_v32, 4 }
 0x116   :  { %1002 = vrot.lane.b32.xlu1 %v6550_v62, %s6283_s13  ;;  %1242 = vrot.lane.b32.xlu0 %v6543_v59, %s6285_s15 }
 0x117   :  { %v6650_v35 = vpop.permute.xlu0 %1105  ;;  %1087 = vst [vmem:[#allocation2 + $0x80] sm:$0x70] %v1055_v33 }
 0x118   :  { %v6648_v34 = vpop.permute.xlu1 %1347 }
 0x11a   :  { %1115 = vrot.lane.b32.xlu1 %v6550_v62, %s6269_s25  ;;  %1355 = vrot.lane.b32.xlu0 %v6543_v59, %s6286_s6 }
 0x11b   :  { %v6660_v37 = vpop.permute.xlu0 %633 }
 0x11c   :  { %v6658_v36 = vpop.permute.xlu1 %1232  ;;  %v682_v39 = vsel %vm667_vm13, %v6660_v37, %v6596_v19 }
 0x11d   :  { %v1279_v38 = vsel %vm1264_vm12, %v6658_v36, %v6636_v30  ;;  %v700_v41 = vrot.slane %v682_v39, 5 }
 0x11e   :  { %v1297_v40 = vrot.slane %v1279_v38, 6  ;;  %1244 = vrot.lane.b32.xlu1 %v6550_v62, %s6285_s15  ;;  %1468 = vrot.lane.b32.xlu0 %v6543_v59, %s6267_s23 }
 0x11f   :  { %732 = vst [vmem:[#allocation2] sm:$0x38] %v700_v41  ;;  %v6677_v43 = vpop.permute.xlu0 %877 }
 0x120   :  { %1329 = vst [vmem:[#allocation2 + $0x100] sm:$0x1c] %v1297_v40  ;;  %v6675_v42 = vpop.permute.xlu1 %1460  ;;  %v924_v44 = vsel %vm909_vm14, %v6677_v43, %v6627_v29 }
 0x121   :  { %v942_v45 = vrot.slane %v924_v44, 7 }
 0x122   :  { %1357 = vrot.lane.b32.xlu1 %v6550_v62, %s6286_s6  ;;  %647 = vrot.lane.b32.xlu0 %v6561_v4, %s6282_s12 }
 0x123   :  { %974 = vst [vmem:[#allocation2 + $0x80] sm:$0xe] %v942_v45  ;;  %v6694_v48 = vpop.permute.xlu0 %1103 }
 0x124   :  { %v6691_v47 = vpop.permute.xlu1 %1458  ;;  %v1150_v50 = vsel %vm1135_vm0, %v6694_v48, %v6650_v35 }
 0x125   :  { %v1505_v49 = vsel %vm1490_vm15, %v6691_v47, %v6675_v42  ;;  %v1168_v51 = vrot.slane %v1150_v50, 1 }
 0x126   :  { %1507 = vst [vmem:[#allocation2 + $0x180] sm:$0x7] %v1505_v49  ;;  %1470 = vrot.lane.b32.xlu1 %v6550_v62, %s6267_s23  ;;  %762 = vrot.lane.b32.xlu0 %v6561_v4, %s6270_s26 }
 0x127   :  { %1200 = vst [vmem:[#allocation2 + $0x100] ss:$-124 sps:$4 sm:$0x83] %v1168_v51   ;;  %v6709_v52 = vpop.permute.xlu0 %1345 }
 0x128   :  { %v1392_v53 = vsel %vm1377_vm1, %v6709_v52, %v6648_v34 }
 0x129   :  { %v1410_v54 = vrot.slane %v1392_v53, 3 }
 0x12a   :  { %649 = vrot.lane.b32.xlu1 %v6568_v7, %s6282_s12  ;;  %891 = vrot.lane.b32.xlu0 %v6561_v4, %s6284_s14 }
 0x12b   :  { %1442 = vst [vmem:[#allocation2 + $0x100] sm:$0xe0] %v1410_v54 }
 0x12e   :  { %764 = vrot.lane.b32.xlu1 %v6568_v7, %s6270_s26  ;;  %1004 = vrot.lane.b32.xlu0 %v6561_v4, %s6283_s13  ;;  %v1541_v50 = vld [vmem:[#allocation2 + $0x80] sm:$0xff] }
 0x132   :  { %893 = vrot.lane.b32.xlu1 %v6568_v7, %s6284_s14  ;;  %1117 = vrot.lane.b32.xlu0 %v6561_v4, %s6269_s25 }
 0x136   :  { %1006 = vrot.lane.b32.xlu1 %v6568_v7, %s6283_s13  ;;  %1246 = vrot.lane.b32.xlu0 %v6561_v4, %s6285_s15 }
 0x13a   :  { %1119 = vrot.lane.b32.xlu1 %v6568_v7, %s6269_s25  ;;  %1359 = vrot.lane.b32.xlu0 %v6561_v4, %s6286_s6 }
 0x13e   :  { %1248 = vrot.lane.b32.xlu1 %v6568_v7, %s6285_s15  ;;  %1472 = vrot.lane.b32.xlu0 %v6561_v4, %s6267_s23 }
 0x142   :  { %1361 = vrot.lane.b32.xlu1 %v6568_v7, %s6286_s6  ;;  %651 = vrot.lane.b32.xlu0 %v6579_v11, %s6282_s12 }
 0x146   :  { %1474 = vrot.lane.b32.xlu1 %v6568_v7, %s6267_s23  ;;  %766 = vrot.lane.b32.xlu0 %v6579_v11, %s6270_s26 }
 0x148   :  { %v638_v56 = vpop.permute.xlu1 %637  ;;  %v6747_v57 = vpop.permute.xlu0 %1236 }
 0x149   :  { %v681_v58 = vsel %vm667_vm13, %v6596_v19, %v638_v56  ;;  %v1278_v59 = vsel %vm1264_vm12, %v6636_v30, %v6747_v57 }
 0x14a   :  { %v701_v60 = vrot.slane %v681_v58, 5  ;;  %v1298_v61 = vrot.slane %v1278_v59, 6  ;;  %653 = vrot.lane.b32.xlu1 %v6586_v14, %s6282_s12  ;;  %895 = vrot.lane.b32.xlu0 %v6579_v11, %s6284_s14 }
 0x14c   :  { %733 = vst [vmem:[#allocation2 + $0x8] sm:$0x38] %v701_v60  ;;  %1330 = vst [vmem:[#allocation2 + $0x108] sm:$0x1c] %v1298_v61  ;;  %v753_v62 = vpop.permute.xlu1 %752  ;;  %v6760_v63 = vpop.permute.xlu0 %1349 }
 0x14d   :  { %v794_v0 = vsel %vm780_vm10, %v6610_v23, %v753_v62  ;;  %v1391_v2 = vsel %vm1377_vm1, %v6648_v34, %v6760_v63 }
 0x14e   :  { %v814_v3 = vrot.slane %v794_v0, 2  ;;  %v1411_v4 = vrot.slane %v1391_v2, 3  ;;  %768 = vrot.lane.b32.xlu1 %v6586_v14, %s6270_s26  ;;  %1008 = vrot.lane.b32.xlu0 %v6579_v11, %s6283_s13 }
 0x150   :  { %846 = vst [vmem:[#allocation2 + $0x88] ss:$-124 sps:$4 sm:$0xc1] %v814_v3   ;;  %1443 = vst [vmem:[#allocation2 + $0x108] sm:$0xe0] %v1411_v4  ;;  %v882_v5 = vpop.permute.xlu1 %881  ;;  %v6773_v6 = vpop.permute.xlu0 %1462 }
 0x151   :  { %v923_v7 = vsel %vm909_vm14, %v6627_v29, %v882_v5  ;;  %v1504_v8 = vsel %vm1490_vm15, %v6675_v42, %v6773_v6 }
 0x152   :  { %v943_v9 = vrot.slane %v923_v7, 7  ;;  %1508 = vst [vmem:[#allocation2 + $0x188] sm:$0x7] %v1504_v8  ;;  %897 = vrot.lane.b32.xlu1 %v6586_v14, %s6284_s14  ;;  %1121 = vrot.lane.b32.xlu0 %v6579_v11, %s6269_s25  ;;  %v1573_v7 = vld [vmem:[#allocation2 + $0x180] sm:$0x7] }
 0x154   :  { %975 = vst [vmem:[#allocation2 + $0x88] sm:$0xe] %v943_v9  ;;  %v995_v10 = vpop.permute.xlu1 %994  ;;  %v640_v12 = vpop.permute.xlu0 %639 }
 0x155   :  { %v1036_v15 = vsel %vm1022_vm11, %v6638_v31, %v995_v10  ;;  %v680_v16 = vsel %vm667_vm13, %v638_v56, %v640_v12 }
 0x156   :  { %v1056_v18 = vrot.slane %v1036_v15, 4  ;;  %v702_v19 = vrot.slane %v680_v16, 5  ;;  %1010 = vrot.lane.b32.xlu1 %v6586_v14, %s6283_s13  ;;  %1250 = vrot.lane.b32.xlu0 %v6579_v11, %s6285_s15 }
 0x157   :  { %v1526_v51 = vld [vmem:[#allocation2 + $0x8] sm:$0xff] }
 0x158   :  { %1088 = vst [vmem:[#allocation2 + $0x88] sm:$0x70] %v1056_v18  ;;  %734 = vst [vmem:[#allocation2 + $0x10] sm:$0x38] %v702_v19  ;;  %v1108_v23 = vpop.permute.xlu1 %1107  ;;  %v755_v24 = vpop.permute.xlu0 %754  ;;  %v6857_v18 = vld [vmem:[#allocation6] sm:$0xff] }
 0x159   :  { %v1149_v25 = vsel %vm1135_vm0, %v6650_v35, %v1108_v23  ;;  %v793_v29 = vsel %vm780_vm10, %v753_v62, %v755_v24  ;;  %v1574_v62 = vld [vmem:[#allocation2 + $0x188] sm:$0x7] }
 0x15a   :  { %v1169_v30 = vrot.slane %v1149_v25, 1  ;;  %v815_v31 = vrot.slane %v793_v29, 2  ;;  %1123 = vrot.lane.b32.xlu1 %v6586_v14, %s6269_s25  ;;  %1363 = vrot.lane.b32.xlu0 %v6579_v11, %s6286_s6 }
 0x15c   :  { %1201 = vst [vmem:[#allocation2 + $0x108] ss:$-124 sps:$4 sm:$0x83] %v1169_v30   ;;  %847 = vst [vmem:[#allocation2 + $0x90] ss:$-124 sps:$4 sm:$0xc1] %v815_v31   ;;  %v6804_v32 = vpop.permute.xlu1 %641  ;;  %v884_v33 = vpop.permute.xlu0 %883 }
 0x15d   :  { %v679_v34 = vsel %vm667_vm13, %v640_v12, %v6804_v32  ;;  %v922_v35 = vsel %vm909_vm14, %v882_v5, %v884_v33  ;;  %v1557_v5 = vld [vmem:[#allocation2 + $0x100] sm:$0xff]  ;;  %v6874_v30 = vld [vmem:[#allocation6 + $0x8] sm:$0xff] }
 0x15e   :  { %v703_v38 = vrot.slane %v679_v34, 5  ;;  %v944_v39 = vrot.slane %v922_v35, 7  ;;  %1252 = vrot.lane.b32.xlu1 %v6586_v14, %s6285_s15  ;;  %1476 = vrot.lane.b32.xlu0 %v6579_v11, %s6267_s23  ;;  %v1525_v11 = vld [vmem:[#allocation2] sm:$0xff]  ;;  %v5928_v12 = vpack.c.bf16 %v1573_v7, %v1557_v5 }
 0x15f   :  { %v5923_v61 = vpack.c.bf16 %v1541_v50, %v1525_v11 }
 0x160   :  { %735 = vst [vmem:[#allocation2 + $0x18] sm:$0x38] %v703_v38  ;;  %976 = vst [vmem:[#allocation2 + $0x90] sm:$0xe] %v944_v39  ;;  %v6815_v40 = vpop.permute.xlu1 %756  ;;  %v997_v41 = vpop.permute.xlu0 %996 }
 0x161   :  { %v792_v42 = vsel %vm780_vm10, %v755_v24, %v6815_v40  ;;  %v1035_v44 = vsel %vm1022_vm11, %v995_v10, %v997_v41 }
 0x162   :  { %v816_v45 = vrot.slane %v792_v42, 2  ;;  %v1057_v49 = vrot.slane %v1035_v44, 4  ;;  %1365 = vrot.lane.b32.xlu1 %v6586_v14, %s6286_s6  ;;  %655 = vrot.lane.b32.xlu0 %v6608_v22, %s6282_s12 }
 0x163   :  { %v1542_v53 = vld [vmem:[#allocation2 + $0x88] sm:$0xff] }
 0x164   :  { %v1558_v54 = vld [vmem:[#allocation2 + $0x108] sm:$0xff]  ;;  %848 = vst [vmem:[#allocation2 + $0x98] ss:$-124 sps:$4 sm:$0xc1] %v816_v45   ;;  %1089 = vst [vmem:[#allocation2 + $0x90] sm:$0x70] %v1057_v49  ;;  %v6826_v55 = vpop.permute.xlu1 %885  ;;  %v1110_v56 = vpop.permute.xlu0 %1109  ;;  %v5921_v58 = vpack.c.bf16 %v1542_v53, %v1526_v51 }
 0x165   :  { %v921_v59 = vsel %vm909_vm14, %v884_v33, %v6826_v55  ;;  %v1148_v60 = vsel %vm1135_vm0, %v1108_v23, %v1110_v56  ;;  %v5925_v4 = vpack.c.bf16 %v1574_v62, %v1558_v54  ;;  %v1527_v54 = vld [vmem:[#allocation2 + $0x10] sm:$0xff] }
 0x166   :  { %v945_v2 = vrot.slane %v921_v59, 7  ;;  %v1170_v3 = vrot.slane %v1148_v60, 1  ;;  %1478 = vrot.lane.b32.xlu1 %v6586_v14, %s6267_s23  ;;  %5922 = vmatprep.subr.bf16.mxu0 %v5921_v58 }
 0x167   :  { %770 = vrot.lane.b32.xlu0 %v6608_v22, %s6270_s26  ;;  %5924 = vmatpush1.bf16.msra.mxu0 %v5923_v61 }
 0x168   :  { %977 = vst [vmem:[#allocation2 + $0x98] sm:$0xe] %v945_v2  ;;  %1202 = vst [vmem:[#allocation2 + $0x110] ss:$-124 sps:$4 sm:$0x83] %v1170_v3   ;;  %v6841_v8 = vpop.permute.xlu1 %998  ;;  %v1239_v9 = vpop.permute.xlu0 %1238  ;;  %5927 = vmatprep.subr.msk.bf16.mxu0 %vm6833_vm4, %v5925_v4 }
 0x169   :  { %v1034_v14 = vsel %vm1022_vm11, %v997_v41, %v6841_v8  ;;  %v1277_v10 = vsel %vm1264_vm12, %v6747_v57, %v1239_v9 }
 0x16a   :  { %v1058_v15 = vrot.slane %v1034_v14, 4  ;;  %v1299_v16 = vrot.slane %v1277_v10, 6  ;;  %657 = vrot.lane.b32.xlu1 %v6621_v26, %s6282_s12 }
 0x16b   :  { %899 = vrot.lane.b32.xlu0 %v6608_v22, %s6284_s14  ;;  %5930 = vmatpush1.bf16.msk.msra.mxu0 %vm6833_vm4, %v5928_v12  ;;  %v1528_v49 = vld [vmem:[#allocation2 + $0x18] sm:$0xff] }
 0x16c   :  { %1090 = vst [vmem:[#allocation2 + $0x98] sm:$0x70] %v1058_v15  ;;  %1331 = vst [vmem:[#allocation2 + $0x110] sm:$0x1c] %v1299_v16  ;;  %v6859_v19 = vpop.permute.xlu1 %1111  ;;  %v1352_v57 = vpop.permute.xlu0 %1351 }
 0x16d   :  { %v1147_v23 = vsel %vm1135_vm0, %v1110_v56, %v6859_v19  ;;  %v1390_v24 = vsel %vm1377_vm1, %v6760_v63, %v1352_v57 }
 0x16e   :  { %v1171_v25 = vrot.slane %v1147_v23, 1  ;;  %v1412_v29 = vrot.slane %v1390_v24, 3  ;;  %772 = vrot.lane.b32.xlu1 %v6621_v26, %s6270_s26  ;;  %5827 = vmatmul.mubr.msk.f32.vlgmr.msra.gmra.mrb[0].mxu0 %vm1601_vm5, %v6857_v18 }
 0x16f   :  { %1012 = vrot.lane.b32.xlu0 %v6608_v22, %s6283_s13  ;;  %1727 = vmatprep.mubr.f32.mxu0 %v9116_v1  ;;  %v1543_v45 = vld [vmem:[#allocation2 + $0x90] sm:$0xff] }
 0x170   :  { %1203 = vst [vmem:[#allocation2 + $0x118] ss:$-124 sps:$4 sm:$0x83] %v1171_v25   ;;  %1444 = vst [vmem:[#allocation2 + $0x110] sm:$0xe0] %v1412_v29  ;;  %v6876_v31 = vpop.permute.xlu1 %1240  ;;  %v1465_v63 = vpop.permute.xlu0 %1464  ;;  %v5933_v58 = vpack.c.bf16 %v1543_v45, %v1527_v54 }
 0x171   :  { %v1276_v33 = vsel %vm1264_vm12, %v1239_v9, %v6876_v31  ;;  %v1503_v34 = vsel %vm1490_vm15, %v6773_v6, %v1465_v63 }
 0x172   :  { %v1300_v35 = vrot.slane %v1276_v33, 6  ;;  %1509 = vst [vmem:[#allocation2 + $0x190] sm:$0x7] %v1503_v34  ;;  %901 = vrot.lane.b32.xlu1 %v6621_v26, %s6284_s14  ;;  %5828 = vmatmul.mubr.msk.f32.gmra.mrb[2].mxu0 %vm1601_vm5, %v6874_v30 }
 0x173   :  { %1125 = vrot.lane.b32.xlu0 %v6608_v22, %s6269_s25  ;;  %1875 = vmatprep.mubr.f32.mxu0 %v9116_v1 }
 0x174   :  { %1332 = vst [vmem:[#allocation2 + $0x118] sm:$0x1c] %v1300_v35  ;;  %v6891_v38 = vpop.permute.xlu1 %1353  ;;  %v644_v39 = vpop.permute.xlu0 %643 }
 0x175   :  { %v1389_v6 = vsel %vm1377_vm1, %v1352_v57, %v6891_v38  ;;  %v678_v41 = vsel %vm667_vm13, %v6804_v32, %v644_v39 }
 0x176   :  { %v1413_v42 = vrot.slane %v1389_v6, 3  ;;  %v704_v44 = vrot.slane %v678_v41, 5  ;;  %1014 = vrot.lane.b32.xlu1 %v6621_v26, %s6283_s13 }
 0x177   :  { %1254 = vrot.lane.b32.xlu0 %v6608_v22, %s6285_s15  ;;  %v1544_v11 = vld [vmem:[#allocation2 + $0x98] sm:$0xff]  ;;  %v1559_v16 = vld [vmem:[#allocation2 + $0x110] sm:$0xff] }
 0x178   :  { %1445 = vst [vmem:[#allocation2 + $0x118] sm:$0xe0] %v1413_v42  ;;  %736 = vst [vmem:[#allocation2 + $0x20] sm:$0x38] %v704_v44  ;;  %v6903_v50 = vpop.permute.xlu1 %1466  ;;  %v759_v51 = vpop.permute.xlu0 %758  ;;  %v5931_v53 = vpack.c.bf16 %v1544_v11, %v1528_v49 }
 0x179   :  { %v1502_v32 = vsel %vm1490_vm15, %v1465_v63, %v6903_v50  ;;  %v791_v56 = vsel %vm780_vm10, %v6815_v40, %v759_v51  ;;  %v1575_v7 = vld [vmem:[#allocation2 + $0x190] sm:$0x7] }
 0x17a   :  { %1510 = vst [vmem:[#allocation2 + $0x198] sm:$0x7] %v1502_v32  ;;  %v817_v59 = vrot.slane %v791_v56, 2  ;;  %1127 = vrot.lane.b32.xlu1 %v6621_v26, %s6269_s25  ;;  %5932 = vmatprep.subr.bf16.mxu1 %v5931_v53  ;;  %v5938_v57 = vpack.c.bf16 %v1575_v7, %v1559_v16 }
 0x17b   :  { %1367 = vrot.lane.b32.xlu0 %v6608_v22, %s6286_s6  ;;  %5934 = vmatpush1.bf16.msra.mxu1 %v5933_v58 }
 0x17c   :  { %849 = vst [vmem:[#allocation2 + $0xa0] ss:$-124 sps:$4 sm:$0xc1] %v817_v59   ;;  %v6915_v60 = vpop.permute.xlu1 %645  ;;  %v888_v61 = vpop.permute.xlu0 %887 }
 0x17d   :  { %v677_v62 = vsel %vm667_vm13, %v644_v39, %v6915_v60  ;;  %v920_v40 = vsel %vm909_vm14, %v6826_v55, %v888_v61 }
 0x17e   :  { %v705_v2 = vrot.slane %v677_v62, 5  ;;  %v946_v3 = vrot.slane %v920_v40, 7  ;;  %1256 = vrot.lane.b32.xlu1 %v6621_v26, %s6285_s15 }
 0x17f   :  { %1480 = vrot.lane.b32.xlu0 %v6608_v22, %s6267_s23  ;;  %v1560_v14 = vld [vmem:[#allocation2 + $0x118] sm:$0xff] }
 0x180   :  { %737 = vst [vmem:[#allocation2 + $0x28] sm:$0x38] %v705_v2  ;;  %978 = vst [vmem:[#allocation2 + $0xa0] sm:$0xe] %v946_v3  ;;  %v6927_v4 = vpop.permute.xlu1 %760  ;;  %v1001_v5 = vpop.permute.xlu0 %1000 }
 0x181   :  { %v790_v9 = vsel %vm780_vm10, %v759_v51, %v6927_v4  ;;  %v1033_v55 = vsel %vm1022_vm11, %v6841_v8, %v1001_v5  ;;  %v1576_v10 = vld [vmem:[#allocation2 + $0x198] sm:$0x7] }
 0x182   :  { %v818_v12 = vrot.slane %v790_v9, 2  ;;  %v1059_v15 = vrot.slane %v1033_v55, 4  ;;  %1369 = vrot.lane.b32.xlu1 %v6621_v26, %s6286_s6  ;;  %v5935_v22 = vpack.c.bf16 %v1576_v10, %v1560_v14 }
 0x183   :  { %659 = vrot.lane.b32.xlu0 %v6623_v27, %s6282_s12  ;;  %v1529_v7 = vld [vmem:[#allocation2 + $0x20] sm:$0xff] }
 0x184   :  { %850 = vst [vmem:[#allocation2 + $0xa8] ss:$-124 sps:$4 sm:$0xc1] %v818_v12   ;;  %1091 = vst [vmem:[#allocation2 + $0xa0] sm:$0x70] %v1059_v15  ;;  %v6939_v23 = vpop.permute.xlu1 %889  ;;  %5937 = vmatprep.subr.msk.bf16.mxu1 %vm6833_vm4, %v5935_v22  ;;  %v1114_v8 = vpop.permute.xlu0 %1113 }
 0x185   :  { %v919_v24 = vsel %vm909_vm14, %v888_v61, %v6939_v23  ;;  %v1146_v25 = vsel %vm1135_vm0, %v6859_v19, %v1114_v8  ;;  %5940 = vmatpush1.bf16.msk.msra.mxu1 %vm6833_vm4, %v5938_v57 }
 0x186   :  { %v947_v29 = vrot.slane %v919_v24, 7  ;;  %v1172_v63 = vrot.slane %v1146_v25, 1  ;;  %1482 = vrot.lane.b32.xlu1 %v6621_v26, %s6267_s23 }
 0x187   :  { %774 = vrot.lane.b32.xlu0 %v6623_v27, %s6270_s26 }
 0x188   :  { %979 = vst [vmem:[#allocation2 + $0xa8] sm:$0xe] %v947_v29  ;;  %1204 = vst [vmem:[#allocation2 + $0x120] ss:$-124 sps:$4 sm:$0x83] %v1172_v63   ;;  %v6955_v33 = vpop.permute.xlu1 %1002  ;;  %5831 = vmatmul.mubr.msk.f32.vlgmr.msra.gmra.mrb[0].mxu1 %vm1601_vm5, %v6857_v18  ;;  %v1243_v34 = vpop.permute.xlu0 %1242 }
 0x189   :  { %v1032_v19 = vsel %vm1022_vm11, %v1001_v5, %v6955_v33  ;;  %v1275_v35 = vsel %vm1264_vm12, %v6876_v31, %v1243_v34  ;;  %1804 = vmatprep.mubr.f32.mxu1 %v9116_v1 }
 0x18a   :  { %v1060_v26 = vrot.slane %v1032_v19, 4  ;;  %v1301_v39 = vrot.slane %v1275_v35, 6  ;;  %661 = vrot.lane.b32.xlu1 %v6603_v20, %s6282_s12 }
 0x18b   :  { %903 = vrot.lane.b32.xlu0 %v6623_v27, %s6284_s14  ;;  %v1530_v62 = vld [vmem:[#allocation2 + $0x28] sm:$0xff] }
 0x18c   :  { %1092 = vst [vmem:[#allocation2 + $0xa8] sm:$0x70] %v1060_v26  ;;  %1333 = vst [vmem:[#allocation2 + $0x120] sm:$0x1c] %v1301_v39  ;;  %v6970_v6 = vpop.permute.xlu1 %1115  ;;  %5832 = vmatmul.mubr.msk.f32.gmra.mrb[2].mxu1 %vm1601_vm5, %v6874_v30  ;;  %v1356_v41 = vpop.permute.xlu0 %1355 }
 0x18d   :  { %v1145_v31 = vsel %vm1135_vm0, %v1114_v8, %v6970_v6  ;;  %v1388_v42 = vsel %vm1377_vm1, %v6891_v38, %v1356_v41  ;;  %1952 = vmatprep.mubr.f32.mxu1 %v9116_v1 }
 0x18e   :  { %v1173_v44 = vrot.slane %v1145_v31, 1  ;;  %v1414_v45 = vrot.slane %v1388_v42, 3  ;;  %776 = vrot.lane.b32.xlu1 %v6603_v20, %s6270_s26 }
 0x18f   :  { %1016 = vrot.lane.b32.xlu0 %v6623_v27, %s6283_s13  ;;  %v1545_v61 = vld [vmem:[#allocation2 + $0xa0] sm:$0xff] }
 0x190   :  { %1205 = vst [vmem:[#allocation2 + $0x128] ss:$-124 sps:$4 sm:$0x83] %v1173_v44   ;;  %1446 = vst [vmem:[#allocation2 + $0x120] sm:$0xe0] %v1414_v45  ;;  %v6985_v49 = vpop.permute.xlu1 %1244  ;;  %v1469_v11 = vpop.permute.xlu0 %1468  ;;  %v5943_v55 = vpack.c.bf16 %v1545_v61, %v1529_v7 }
 0x191   :  { %v1274_v51 = vsel %vm1264_vm12, %v1243_v34, %v6985_v49  ;;  %v1501_v38 = vsel %vm1490_vm15, %v6903_v50, %v1469_v11 }
 0x192   :  { %v1302_v53 = vrot.slane %v1274_v51, 6  ;;  %1511 = vst [vmem:[#allocation2 + $0x1a0] sm:$0x7] %v1501_v38  ;;  %905 = vrot.lane.b32.xlu1 %v6603_v20, %s6284_s14 }
 0x193   :  { %1129 = vrot.lane.b32.xlu0 %v6623_v27, %s6269_s25 }
 0x194   :  { %1334 = vst [vmem:[#allocation2 + $0x128] sm:$0x1c] %v1302_v53  ;;  %v6997_v54 = vpop.permute.xlu1 %1357  ;;  %v648_v32 = vpop.permute.xlu0 %647 }
 0x195   :  { %v1387_v56 = vsel %vm1377_vm1, %v1356_v41, %v6997_v54  ;;  %v676_v50 = vsel %vm667_vm13, %v6915_v60, %v648_v32 }
 0x196   :  { %v1415_v58 = vrot.slane %v1387_v56, 3  ;;  %v706_v59 = vrot.slane %v676_v50, 5  ;;  %1018 = vrot.lane.b32.xlu1 %v6603_v20, %s6283_s13 }
 0x197   :  { %1258 = vrot.lane.b32.xlu0 %v6623_v27, %s6285_s15  ;;  %v1546_v40 = vld [vmem:[#allocation2 + $0xa8] sm:$0xff]  ;;  %v1561_v35 = vld [vmem:[#allocation2 + $0x120] sm:$0xff] }
 0x198   :  { %1447 = vst [vmem:[#allocation2 + $0x128] sm:$0xe0] %v1415_v58  ;;  %738 = vst [vmem:[#allocation2 + $0x30] sm:$0x38] %v706_v59  ;;  %v7009_v2 = vpop.permute.xlu1 %1470  ;;  %v763_v3 = vpop.permute.xlu0 %762  ;;  %v5941_v5 = vpack.c.bf16 %v1546_v40, %v1530_v62  ;;  %v1589_v62 = vld [vmem:[%s9111_s4] sm:$0xff] }
 0x199   :  { %v1500_v60 = vsel %vm1490_vm15, %v1469_v11, %v7009_v2  ;;  %v789_v9 = vsel %vm780_vm10, %v6927_v4, %v763_v3  ;;  %v1577_v24 = vld [vmem:[#allocation2 + $0x1a0] sm:$0x7] }
 0x19a   :  { %1512 = vst [vmem:[#allocation2 + $0x1a8] sm:$0x7] %v1500_v60  ;;  %v819_v14 = vrot.slane %v789_v9, 2  ;;  %1131 = vrot.lane.b32.xlu1 %v6603_v20, %s6269_s25  ;;  %5942 = vmatprep.subr.bf16.mxu0 %v5941_v5  ;;  %v5948_v26 = vpack.c.bf16 %v1577_v24, %v1561_v35  ;;  %v4132_v60 = vld [vmem:[%s9112_s5] sm:$0xf] }
 0x19b   :  { %1371 = vrot.lane.b32.xlu0 %v6623_v27, %s6286_s6  ;;  %5944 = vmatpush1.bf16.msra.mxu0 %v5943_v55 }
 0x19c   :  { %851 = vst [vmem:[#allocation2 + $0xb0] ss:$-124 sps:$4 sm:$0xc1] %v819_v14   ;;  %v7021_v10 = vpop.permute.xlu1 %649  ;;  %v892_v12 = vpop.permute.xlu0 %891 }
 0x19d   :  { %v675_v15 = vsel %vm667_vm13, %v648_v32, %v7021_v10  ;;  %v918_v4 = vsel %vm909_vm14, %v6939_v23, %v892_v12 }
 0x19e   :  { %v707_v22 = vrot.slane %v675_v15, 5  ;;  %v948_v16 = vrot.slane %v918_v4, 7  ;;  %1260 = vrot.lane.b32.xlu1 %v6603_v20, %s6285_s15 }
 0x19f   :  { %1484 = vrot.lane.b32.xlu0 %v6623_v27, %s6267_s23  ;;  %v1562_v29 = vld [vmem:[#allocation2 + $0x128] sm:$0xff] }
 0x1a0   :  { %739 = vst [vmem:[#allocation2 + $0x38] sm:$0x38] %v707_v22  ;;  %980 = vst [vmem:[#allocation2 + $0xb0] sm:$0xe] %v948_v16  ;;  %v7033_v57 = vpop.permute.xlu1 %764  ;;  %v1005_v8 = vpop.permute.xlu0 %1004  ;;  %v1590_v22 = vld [vmem:[%s9111_s4 + $0x8] sm:$0xff] }
 0x1a1   :  { %v788_v25 = vsel %vm780_vm10, %v763_v3, %v7033_v57  ;;  %v1031_v23 = vsel %vm1022_vm11, %v6955_v33, %v1005_v8  ;;  %v1578_v63 = vld [vmem:[#allocation2 + $0x1a8] sm:$0x7] }
 0x1a2   :  { %v820_v34 = vrot.slane %v788_v25, 2  ;;  %v1061_v19 = vrot.slane %v1031_v23, 4  ;;  %1373 = vrot.lane.b32.xlu1 %v6603_v20, %s6286_s6  ;;  %v5945_v27 = vpack.c.bf16 %v1578_v63, %v1562_v29 }
 0x1a3   :  { %663 = vrot.lane.b32.xlu0 %v6689_v46, %s6282_s12 }
 0x1a4   :  { %852 = vst [vmem:[#allocation2 + $0xb8] ss:$-124 sps:$4 sm:$0xc1] %v820_v34   ;;  %1093 = vst [vmem:[#allocation2 + $0xb0] sm:$0x70] %v1061_v19  ;;  %v7045_v39 = vpop.permute.xlu1 %893  ;;  %v1118_v41 = vpop.permute.xlu0 %1117  ;;  %5947 = vmatprep.subr.msk.bf16.mxu0 %vm6833_vm4, %v5945_v27 }
 0x1a5   :  { %v917_v33 = vsel %vm909_vm14, %v892_v12, %v7045_v39  ;;  %v1144_v31 = vsel %vm1135_vm0, %v6970_v6, %v1118_v41  ;;  %5950 = vmatpush1.bf16.msk.msra.mxu0 %vm6833_vm4, %v5948_v26 }
 0x1a6   :  { %v949_v42 = vrot.slane %v917_v33, 7  ;;  %v1174_v44 = vrot.slane %v1144_v31, 1  ;;  %1486 = vrot.lane.b32.xlu1 %v6603_v20, %s6267_s23 }
 0x1a7   :  { %907 = vrot.lane.b32.xlu0 %v6689_v46, %s6284_s14 }
 0x1a8   :  { %981 = vst [vmem:[#allocation2 + $0xb8] sm:$0xe] %v949_v42  ;;  %1206 = vst [vmem:[#allocation2 + $0x130] ss:$-124 sps:$4 sm:$0x83] %v1174_v44   ;;  %v7061_v45 = vpop.permute.xlu1 %1006  ;;  %v1247_v11 = vpop.permute.xlu0 %1246  ;;  %5835 = vmatmul.mubr.msk.f32.vlgmr.msra.gmra.mrb[4].mxu0 %vm1601_vm5, %v6857_v18 }
 0x1a9   :  { %v1030_v6 = vsel %vm1022_vm11, %v1005_v8, %v7061_v45  ;;  %v1273_v51 = vsel %vm1264_vm12, %v6985_v49, %v1247_v11  ;;  %1881 = vmatprep.mubr.f32.mxu0 %v9116_v1 }
 0x1aa   :  { %v1062_v20 = vrot.slane %v1030_v6, 4  ;;  %v1303_v38 = vrot.slane %v1273_v51, 6  ;;  %778 = vrot.lane.b32.xlu1 %v6689_v46, %s6270_s26 }
 0x1ab   :  { %1133 = vrot.lane.b32.xlu0 %v6689_v46, %s6269_s25  ;;  %v1532_v15 = vld [vmem:[#allocation2 + $0x38] sm:$0xff] }
 0x1ac   :  { %1094 = vst [vmem:[#allocation2 + $0xb8] sm:$0x70] %v1062_v20  ;;  %1335 = vst [vmem:[#allocation2 + $0x130] sm:$0x1c] %v1303_v38  ;;  %v7076_v53 = vpop.permute.xlu1 %1119  ;;  %v1360_v32 = vpop.permute.xlu0 %1359  ;;  %5836 = vmatmul.mubr.msk.f32.gmra.mrb[6].mxu0 %vm1601_vm5, %v6874_v30 }
 0x1ad   :  { %v1143_v49 = vsel %vm1135_vm0, %v1118_v41, %v7076_v53  ;;  %v1386_v56 = vsel %vm1377_vm1, %v6997_v54, %v1360_v32  ;;  %2029 = vmatprep.mubr.f32.mxu0 %v9116_v1 }
 0x1ae   :  { %v1175_v50 = vrot.slane %v1143_v49, 1  ;;  %v1416_v58 = vrot.slane %v1386_v56, 3  ;;  %1020 = vrot.lane.b32.xlu1 %v6689_v46, %s6283_s13 }
 0x1af   :  { %1375 = vrot.lane.b32.xlu0 %v6689_v46, %s6286_s6  ;;  %v1547_v12 = vld [vmem:[#allocation2 + $0xb0] sm:$0xff] }
 0x1b0   :  { %1207 = vst [vmem:[#allocation2 + $0x138] ss:$-124 sps:$4 sm:$0x83] %v1175_v50   ;;  %1448 = vst [vmem:[#allocation2 + $0x130] sm:$0xe0] %v1416_v58  ;;  %v7091_v59 = vpop.permute.xlu1 %1248  ;;  %v1473_v61 = vpop.permute.xlu0 %1472 }
 0x1b1   :  { %v1272_v54 = vsel %vm1264_vm12, %v1247_v11, %v7091_v59  ;;  %v1499_v40 = vsel %vm1490_vm15, %v7009_v2, %v1473_v61 }
 0x1b2   :  { %v1304_v3 = vrot.slane %v1272_v54, 6  ;;  %1513 = vst [vmem:[#allocation2 + $0x1b0] sm:$0x7] %v1499_v40  ;;  %1262 = vrot.lane.b32.xlu1 %v6689_v46, %s6285_s15 }
 0x1b3   :  { %1593 = vperm.xlu0 %6144, %v1589_v62  }
 0x1b4   :  { %1336 = vst [vmem:[#allocation2 + $0x138] sm:$0x1c] %v1304_v3  ;;  %v7104_v5 = vpop.permute.xlu1 %1361  ;;  %v652_v7 = vpop.permute.xlu0 %651 }
 0x1b5   :  { %v1385_v9 = vsel %vm1377_vm1, %v1360_v32, %v7104_v5  ;;  %v674_v2 = vsel %vm667_vm13, %v7021_v10, %v652_v7  ;;  %v1531_v10 = vld [vmem:[#allocation2 + $0x30] sm:$0xff] }
 0x1b6   :  { %v1417_v55 = vrot.slane %v1385_v9, 3  ;;  %v708_v14 = vrot.slane %v674_v2, 5  ;;  %1488 = vrot.lane.b32.xlu1 %v6689_v46, %s6267_s23  ;;  %v5953_v23 = vpack.c.bf16 %v1547_v12, %v1531_v10 }
 0x1b7   :  { %v1548_v4 = vld [vmem:[#allocation2 + $0xb8] sm:$0xff]  ;;  %4135 = vperm.xlu0 %6144, %v4132_v60   ;;  %v1563_v20 = vld [vmem:[#allocation2 + $0x130] sm:$0xff] }
 0x1b8   :  { %1449 = vst [vmem:[#allocation2 + $0x138] sm:$0xe0] %v1417_v55  ;;  %740 = vst [vmem:[#allocation2 + $0x40] sm:$0x38] %v708_v14  ;;  %v7120_v16 = vpop.permute.xlu1 %1474  ;;  %v767_v8 = vpop.permute.xlu0 %766  ;;  %v5951_v24 = vpack.c.bf16 %v1548_v4, %v1532_v15 }
 0x1b9   :  { %v1498_v25 = vsel %vm1490_vm15, %v1473_v61, %v7120_v16  ;;  %v787_v46 = vsel %vm780_vm10, %v7033_v57, %v767_v8  ;;  %v1579_v33 = vld [vmem:[#allocation2 + $0x1b0] sm:$0x7] }
 0x1ba   :  { %1514 = vst [vmem:[#allocation2 + $0x1b8] sm:$0x7] %v1498_v25  ;;  %v821_v29 = vrot.slane %v787_v46, 2  ;;  %5952 = vmatprep.subr.bf16.mxu1 %v5951_v24  ;;  %1598 = vperm.xlu1 %6145, %v1590_v22   ;;  %v5958_v38 = vpack.c.bf16 %v1579_v33, %v1563_v20 }
 0x1bb   :  { %5954 = vmatpush1.bf16.msra.mxu1 %v5953_v23 }
 0x1bc   :  { %853 = vst [vmem:[#allocation2 + $0xc0] ss:$-124 sps:$4 sm:$0xc1] %v821_v29   ;;  %v7128_v63 = vpop.permute.xlu1 %653  ;;  %v896_v34 = vpop.permute.xlu0 %895 }
 0x1bd   :  { %v673_v19 = vsel %vm667_vm13, %v652_v7, %v7128_v63  ;;  %v916_v27 = vsel %vm909_vm14, %v7045_v39, %v896_v34 }
 0x1be   :  { %v709_v35 = vrot.slane %v673_v19, 5  ;;  %v950_v57 = vrot.slane %v916_v27, 7 }
 0x1bf   :  { %v1564_v44 = vld [vmem:[#allocation2 + $0x138] sm:$0xff] }
 0x1c0   :  { %741 = vst [vmem:[#allocation2 + $0x48] sm:$0x38] %v709_v35  ;;  %982 = vst [vmem:[#allocation2 + $0xc0] sm:$0xe] %v950_v57  ;;  %v7136_v26 = vpop.permute.xlu1 %768  ;;  %v1009_v41 = vpop.permute.xlu0 %1008 }
 0x1c1   :  { %v786_v31 = vsel %vm780_vm10, %v767_v8, %v7136_v26  ;;  %v1029_v42 = vsel %vm1022_vm11, %v7061_v45, %v1009_v41  ;;  %v1580_v11 = vld [vmem:[#allocation2 + $0x1b8] sm:$0x7] }
 0x1c2   :  { %v822_v6 = vrot.slane %v786_v31, 2  ;;  %v1063_v39 = vrot.slane %v1029_v42, 4  ;;  %v5955_v51 = vpack.c.bf16 %v1580_v11, %v1564_v44 }
 0x1c3   :  { %v1533_v27 = vld [vmem:[#allocation2 + $0x40] sm:$0xff] }
 0x1c4   :  { %854 = vst [vmem:[#allocation2 + $0xc8] ss:$-124 sps:$4 sm:$0xc1] %v822_v6   ;;  %1095 = vst [vmem:[#allocation2 + $0xc0] sm:$0x70] %v1063_v39  ;;  %v7144_v32 = vpop.permute.xlu1 %897  ;;  %5957 = vmatprep.subr.msk.bf16.mxu1 %vm6833_vm4, %v5955_v51  ;;  %v1122_v49 = vpop.permute.xlu0 %1121 }
 0x1c5   :  { %v915_v56 = vsel %vm909_vm14, %v896_v34, %v7144_v32  ;;  %v1142_v45 = vsel %vm1135_vm0, %v7076_v53, %v1122_v49  ;;  %5960 = vmatpush1.bf16.msk.msra.mxu1 %vm6833_vm4, %v5958_v38 }
 0x1c6   :  { %v951_v50 = vrot.slane %v915_v56, 7  ;;  %v1176_v58 = vrot.slane %v1142_v45, 1 }
 0x1c8   :  { %983 = vst [vmem:[#allocation2 + $0xc8] sm:$0xe] %v951_v50  ;;  %1208 = vst [vmem:[#allocation2 + $0x140] ss:$-124 sps:$4 sm:$0x83] %v1176_v58   ;;  %v7156_v61 = vpop.permute.xlu1 %1010  ;;  %5839 = vmatmul.mubr.msk.f32.vlgmr.msra.gmra.mrb[4].mxu1 %vm1601_vm5, %v6857_v18  ;;  %v1251_v62 = vpop.permute.xlu0 %1250 }
 0x1c9   :  { %v1028_v54 = vsel %vm1022_vm11, %v1009_v41, %v7156_v61  ;;  %v1271_v53 = vsel %vm1264_vm12, %v7091_v59, %v1251_v62  ;;  %1958 = vmatprep.mubr.f32.mxu1 %v9116_v1 }
 0x1ca   :  { %v1064_v40 = vrot.slane %v1028_v54, 4  ;;  %v1305_v3 = vrot.slane %v1271_v53, 6 }
 0x1cb   :  { %v1534_v29 = vld [vmem:[#allocation2 + $0x48] sm:$0xff] }
 0x1cc   :  { %1096 = vst [vmem:[#allocation2 + $0xc8] sm:$0x70] %v1064_v40  ;;  %1337 = vst [vmem:[#allocation2 + $0x140] sm:$0x1c] %v1305_v3  ;;  %v7167_v7 = vpop.permute.xlu1 %1123  ;;  %5840 = vmatmul.mubr.msk.f32.gmra.mrb[6].mxu1 %vm1601_vm5, %v6874_v30  ;;  %v1364_v60 = vpop.permute.xlu0 %1363 }
 0x1cd   :  { %v1141_v9 = vsel %vm1135_vm0, %v1122_v49, %v7167_v7  ;;  %v1384_v59 = vsel %vm1377_vm1, %v7104_v5, %v1364_v60  ;;  %2106 = vmatprep.mubr.f32.mxu1 %v9116_v1 }
 0x1ce   :  { %v1177_v2 = vrot.slane %v1141_v9, 1  ;;  %v1418_v55 = vrot.slane %v1384_v59, 3 }
 0x1cf   :  { %v1549_v23 = vld [vmem:[#allocation2 + $0xc0] sm:$0xff] }
 0x1d0   :  { %1209 = vst [vmem:[#allocation2 + $0x148] ss:$-124 sps:$4 sm:$0x83] %v1177_v2   ;;  %1450 = vst [vmem:[#allocation2 + $0x140] sm:$0xe0] %v1418_v55  ;;  %v7178_v14 = vpop.permute.xlu1 %1252  ;;  %v1477_v12 = vpop.permute.xlu0 %1476  ;;  %v5963_v41 = vpack.c.bf16 %v1549_v23, %v1533_v27 }
 0x1d1   :  { %v1270_v15 = vsel %vm1264_vm12, %v1251_v62, %v7178_v14  ;;  %v1497_v4 = vsel %vm1490_vm15, %v7120_v16, %v1477_v12 }
 0x1d2   :  { %v1306_v22 = vrot.slane %v1270_v15, 6  ;;  %1515 = vst [vmem:[#allocation2 + $0x1c0] sm:$0x7] %v1497_v4 }
 0x1d4   :  { %1338 = vst [vmem:[#allocation2 + $0x148] sm:$0x1c] %v1306_v22  ;;  %v7186_v5 = vpop.permute.xlu1 %1365  ;;  %v656_v8 = vpop.permute.xlu0 %655 }
 0x1d5   :  { %v1383_v24 = vsel %vm1377_vm1, %v1364_v60, %v7186_v5  ;;  %v672_v10 = vsel %vm667_vm13, %v7128_v63, %v656_v8 }
 0x1d6   :  { %v1419_v25 = vrot.slane %v1383_v24, 3  ;;  %v710_v46 = vrot.slane %v672_v10, 5 }
 0x1d7   :  { %v1550_v34 = vld [vmem:[#allocation2 + $0xc8] sm:$0xff] }
 0x1d8   :  { %1451 = vst [vmem:[#allocation2 + $0x148] sm:$0xe0] %v1419_v25  ;;  %742 = vst [vmem:[#allocation2 + $0x50] sm:$0x38] %v710_v46  ;;  %v7194_v16 = vpop.permute.xlu1 %1478  ;;  %v5961_v19 = vpack.c.bf16 %v1550_v34, %v1534_v29 }
 0x1d9   :  { %v1496_v35 = vsel %vm1490_vm15, %v1477_v12, %v7194_v16  ;;  %v771_v57 = vpop.permute.xlu0 %770 }
 0x1da   :  { %1516 = vst [vmem:[#allocation2 + $0x1c8] sm:$0x7] %v1496_v35  ;;  %v785_v63 = vsel %vm780_vm10, %v7136_v26, %v771_v57  ;;  %5962 = vmatprep.subr.bf16.mxu0 %v5961_v19  ;;  %v1581_v26 = vld [vmem:[#allocation2 + $0x1c0] sm:$0x7] }
 0x1db   :  { %v823_v33 = vrot.slane %v785_v63, 2  ;;  %5964 = vmatpush1.bf16.msra.mxu0 %v5963_v41 }
 0x1dc   :  { %v7202_v31 = vpop.permute.xlu1 %657 }
 0x1dd   :  { %855 = vst [vmem:[#allocation2 + $0xd0] ss:$-124 sps:$4 sm:$0xc1] %v823_v33   ;;  %v671_v42 = vsel %vm667_vm13, %v656_v8, %v7202_v31  ;;  %v900_v44 = vpop.permute.xlu0 %899 }
 0x1de   :  { %v711_v11 = vrot.slane %v671_v42, 5  ;;  %v914_v6 = vsel %vm909_vm14, %v7144_v32, %v900_v44  ;;  %v1565_v32 = vld [vmem:[#allocation2 + $0x140] sm:$0xff] }
 0x1df   :  { %v952_v39 = vrot.slane %v914_v6, 7  ;;  %v1566_v49 = vld [vmem:[#allocation2 + $0x148] sm:$0xff]  ;;  %v5968_v54 = vpack.c.bf16 %v1581_v26, %v1565_v32 }
 0x1e0   :  { %743 = vst [vmem:[#allocation2 + $0x58] sm:$0x38] %v711_v11  ;;  %v7210_v51 = vpop.permute.xlu1 %772 }
 0x1e1   :  { %984 = vst [vmem:[#allocation2 + $0xd0] sm:$0xe] %v952_v39  ;;  %v784_v20 = vsel %vm780_vm10, %v771_v57, %v7210_v51  ;;  %v1013_v38 = vpop.permute.xlu0 %1012  ;;  %v1582_v56 = vld [vmem:[#allocation2 + $0x1c8] sm:$0x7] }
 0x1e2   :  { %v824_v45 = vrot.slane %v784_v20, 2  ;;  %v1027_v50 = vsel %vm1022_vm11, %v7156_v61, %v1013_v38  ;;  %v5965_v58 = vpack.c.bf16 %v1582_v56, %v1566_v49 }
 0x1e3   :  { %v1065_v62 = vrot.slane %v1027_v50, 4 }
 0x1e4   :  { %856 = vst [vmem:[#allocation2 + $0xd8] ss:$-124 sps:$4 sm:$0xc1] %v824_v45   ;;  %v7218_v53 = vpop.permute.xlu1 %901  ;;  %5967 = vmatprep.subr.msk.bf16.mxu0 %vm6833_vm4, %v5965_v58  ;;  %v1535_v11 = vld [vmem:[#allocation2 + $0x50] sm:$0xff] }
 0x1e5   :  { %1097 = vst [vmem:[#allocation2 + $0xd0] sm:$0x70] %v1065_v62  ;;  %v913_v40 = vsel %vm909_vm14, %v900_v44, %v7218_v53  ;;  %v1126_v3 = vpop.permute.xlu0 %1125  ;;  %5970 = vmatpush1.bf16.msk.msra.mxu0 %vm6833_vm4, %v5968_v54 }
 0x1e6   :  { %v953_v61 = vrot.slane %v913_v40, 7  ;;  %v1140_v60 = vsel %vm1135_vm0, %v7167_v7, %v1126_v3 }
 0x1e7   :  { %v1178_v9 = vrot.slane %v1140_v60, 1 }
 0x1e8   :  { %985 = vst [vmem:[#allocation2 + $0xd8] sm:$0xe] %v953_v61  ;;  %v7230_v59 = vpop.permute.xlu1 %1014  ;;  %5843 = vmatmul.mubr.msk.f32.vlgmr.msra.gmra.mrb[8].mxu0 %vm1601_vm5, %v6857_v18 }
 0x1e9   :  { %1210 = vst [vmem:[#allocation2 + $0x150] ss:$-124 sps:$4 sm:$0x83] %v1178_v9   ;;  %v1026_v2 = vsel %vm1022_vm11, %v1013_v38, %v7230_v59  ;;  %v1255_v55 = vpop.permute.xlu0 %1254  ;;  %2035 = vmatprep.mubr.f32.mxu0 %v9116_v1 }
 0x1ea   :  { %v1066_v12 = vrot.slane %v1026_v2, 4  ;;  %v1269_v7 = vsel %vm1264_vm12, %v7178_v14, %v1255_v55 }
 0x1eb   :  { %v1307_v15 = vrot.slane %v1269_v7, 6  ;;  %v1536_v33 = vld [vmem:[#allocation2 + $0x58] sm:$0xff] }
 0x1ec   :  { %1098 = vst [vmem:[#allocation2 + $0xd8] sm:$0x70] %v1066_v12  ;;  %v7241_v4 = vpop.permute.xlu1 %1127  ;;  %5844 = vmatmul.mubr.msk.f32.gmra.mrb[10].mxu0 %vm1601_vm5, %v6874_v30 }
 0x1ed   :  { %1339 = vst [vmem:[#allocation2 + $0x150] sm:$0x1c] %v1307_v15  ;;  %v1139_v22 = vsel %vm1135_vm0, %v1126_v3, %v7241_v4  ;;  %v1368_v8 = vpop.permute.xlu0 %1367  ;;  %2183 = vmatprep.mubr.f32.mxu0 %v9116_v1 }
 0x1ee   :  { %v1179_v24 = vrot.slane %v1139_v22, 1  ;;  %v1382_v14 = vsel %vm1377_vm1, %v7186_v5, %v1368_v8 }
 0x1ef   :  { %v1420_v10 = vrot.slane %v1382_v14, 3 }
 0x1f0   :  { %1211 = vst [vmem:[#allocation2 + $0x158] ss:$-124 sps:$4 sm:$0x83] %v1179_v24   ;;  %v7252_v25 = vpop.permute.xlu1 %1256  ;;  %v1551_v41 = vld [vmem:[#allocation2 + $0xd0] sm:$0xff] }
 0x1f1   :  { %1452 = vst [vmem:[#allocation2 + $0x150] sm:$0xe0] %v1420_v10  ;;  %v1268_v46 = vsel %vm1264_vm12, %v1255_v55, %v7252_v25  ;;  %v1481_v23 = vpop.permute.xlu0 %1480  ;;  %v5973_v26 = vpack.c.bf16 %v1551_v41, %v1535_v11 }
 0x1f2   :  { %v1308_v29 = vrot.slane %v1268_v46, 6  ;;  %v1495_v34 = vsel %vm1490_vm15, %v7194_v16, %v1481_v23 }
 0x1f3   :  { %1517 = vst [vmem:[#allocation2 + $0x1d0] sm:$0x7] %v1495_v34 }
 0x1f4   :  { %1340 = vst [vmem:[#allocation2 + $0x158] sm:$0x1c] %v1308_v29  ;;  %v7260_v19 = vpop.permute.xlu1 %1369 }
 0x1f5   :  { %v1381_v5 = vsel %vm1377_vm1, %v1368_v8, %v7260_v19  ;;  %v660_v27 = vpop.permute.xlu0 %659 }
 0x1f6   :  { %v1421_v35 = vrot.slane %v1381_v5, 3  ;;  %v670_v57 = vsel %vm667_vm13, %v7202_v31, %v660_v27 }
 0x1f7   :  { %v712_v63 = vrot.slane %v670_v57, 5  ;;  %v1552_v42 = vld [vmem:[#allocation2 + $0xd8] sm:$0xff] }
 0x1f8   :  { %1453 = vst [vmem:[#allocation2 + $0x158] sm:$0xe0] %v1421_v35  ;;  %v7268_v16 = vpop.permute.xlu1 %1482  ;;  %v5971_v44 = vpack.c.bf16 %v1552_v42, %v1536_v33 }
 0x1f9   :  { %744 = vst [vmem:[#allocation2 + $0x60] sm:$0x38] %v712_v63  ;;  %v1494_v6 = vsel %vm1490_vm15, %v1481_v23, %v7268_v16  ;;  %v775_v39 = vpop.permute.xlu0 %774 }
 0x1fa   :  { %1518 = vst [vmem:[#allocation2 + $0x1d8] sm:$0x7] %v1494_v6  ;;  %v783_v31 = vsel %vm780_vm10, %v7210_v51, %v775_v39  ;;  %5972 = vmatprep.subr.bf16.mxu1 %v5971_v44  ;;  %v1583_v51 = vld [vmem:[#allocation2 + $0x1d0] sm:$0x7] }
 0x1fb   :  { %v825_v20 = vrot.slane %v783_v31, 2  ;;  %5974 = vmatpush1.bf16.msra.mxu1 %v5973_v26 }
 0x1fc   :  { %v7276_v38 = vpop.permute.xlu1 %661 }
 0x1fd   :  { %857 = vst [vmem:[#allocation2 + $0xe0] ss:$-124 sps:$4 sm:$0xc1] %v825_v20   ;;  %v669_v49 = vsel %vm667_vm13, %v660_v27, %v7276_v38  ;;  %v904_v56 = vpop.permute.xlu0 %903 }
 0x1fe   :  { %v713_v45 = vrot.slane %v669_v49, 5  ;;  %v912_v50 = vsel %vm909_vm14, %v7218_v53, %v904_v56  ;;  %v1567_v53 = vld [vmem:[#allocation2 + $0x150] sm:$0xff] }
 0x1ff   :  { %v954_v58 = vrot.slane %v912_v50, 7  ;;  %v1568_v40 = vld [vmem:[#allocation2 + $0x158] sm:$0xff]  ;;  %v5978_v55 = vpack.c.bf16 %v1583_v51, %v1567_v53 }
 0x200   :  { %745 = vst [vmem:[#allocation2 + $0x68] sm:$0x38] %v713_v45  ;;  %v7284_v32 = vpop.permute.xlu1 %776 }
 0x201   :  { %986 = vst [vmem:[#allocation2 + $0xe0] sm:$0xe] %v954_v58  ;;  %v782_v62 = vsel %vm780_vm10, %v775_v39, %v7284_v32  ;;  %v1017_v54 = vpop.permute.xlu0 %1016  ;;  %v1584_v3 = vld [vmem:[#allocation2 + $0x1d8] sm:$0x7] }
 0x202   :  { %v826_v61 = vrot.slane %v782_v62, 2  ;;  %v1025_v60 = vsel %vm1022_vm11, %v7230_v59, %v1017_v54  ;;  %v5975_v9 = vpack.c.bf16 %v1584_v3, %v1568_v40 }
 0x203   :  { %v1067_v2 = vrot.slane %v1025_v60, 4 }
 0x204   :  { %858 = vst [vmem:[#allocation2 + $0xe8] ss:$-124 sps:$4 sm:$0xc1] %v826_v61   ;;  %v906_v12 = vpop.permute.xlu1 %905  ;;  %5977 = vmatprep.subr.msk.bf16.mxu1 %vm6833_vm4, %v5975_v9  ;;  %v1537_v45 = vld [vmem:[#allocation2 + $0x60] sm:$0xff] }
 0x205   :  { %1099 = vst [vmem:[#allocation2 + $0xe0] sm:$0x70] %v1067_v2  ;;  %v911_v7 = vsel %vm909_vm14, %v904_v56, %v906_v12  ;;  %v1130_v15 = vpop.permute.xlu0 %1129  ;;  %5980 = vmatpush1.bf16.msk.msra.mxu1 %vm6833_vm4, %v5978_v55 }
 0x206   :  { %v955_v22 = vrot.slane %v911_v7, 7  ;;  %v1138_v59 = vsel %vm1135_vm0, %v7241_v4, %v1130_v15 }
 0x207   :  { %v1180_v8 = vrot.slane %v1138_v59, 1 }
 0x208   :  { %987 = vst [vmem:[#allocation2 + $0xe8] sm:$0xe] %v955_v22  ;;  %v7301_v24 = vpop.permute.xlu1 %1018  ;;  %5847 = vmatmul.mubr.msk.f32.vlgmr.msra.gmra.mrb[8].mxu1 %vm1601_vm5, %v6857_v18 }
 0x209   :  { %1212 = vst [vmem:[#allocation2 + $0x160] ss:$-124 sps:$4 sm:$0x83] %v1180_v8   ;;  %v1024_v14 = vsel %vm1022_vm11, %v1017_v54, %v7301_v24  ;;  %v1259_v10 = vpop.permute.xlu0 %1258  ;;  %2112 = vmatprep.mubr.f32.mxu1 %v9116_v1 }
 0x20a   :  { %v1068_v46 = vrot.slane %v1024_v14, 4  ;;  %v1267_v4 = vsel %vm1264_vm12, %v7252_v25, %v1259_v10 }
 0x20b   :  { %v1309_v23 = vrot.slane %v1267_v4, 6 }
 0x20c   :  { %1100 = vst [vmem:[#allocation2 + $0xe8] sm:$0x70] %v1068_v46  ;;  %v1132_v29 = vpop.permute.xlu1 %1131  ;;  %5848 = vmatmul.mubr.msk.f32.gmra.mrb[10].mxu1 %vm1601_vm5, %v6874_v30 }
 0x20d   :  { %1341 = vst [vmem:[#allocation2 + $0x160] sm:$0x1c] %v1309_v23  ;;  %v1137_v18 = vsel %vm1135_vm0, %v1130_v15, %v1132_v29  ;;  %v1372_v34 = vpop.permute.xlu0 %1371  ;;  %2260 = vmatprep.mubr.f32.mxu1 %v9116_v1 }
 0x20e   :  { %v1181_v5 = vrot.slane %v1137_v18, 1  ;;  %v1380_v27 = vsel %vm1377_vm1, %v7260_v19, %v1372_v34 }
 0x20f   :  { %v1422_v35 = vrot.slane %v1380_v27, 3 }
 0x210   :  { %1213 = vst [vmem:[#allocation2 + $0x168] ss:$-124 sps:$4 sm:$0x83] %v1181_v5   ;;  %v7320_v25 = vpop.permute.xlu1 %1260  ;;  %v1553_v39 = vld [vmem:[#allocation2 + $0xe0] sm:$0xff] }
 0x211   :  { %1454 = vst [vmem:[#allocation2 + $0x160] sm:$0xe0] %v1422_v35  ;;  %v1266_v30 = vsel %vm1264_vm12, %v1259_v10, %v7320_v25  ;;  %v1485_v57 = vpop.permute.xlu0 %1484 }
 0x212   :  { %v1310_v41 = vrot.slane %v1266_v30, 6  ;;  %v1493_v63 = vsel %vm1490_vm15, %v7268_v16, %v1485_v57  ;;  %v1538_v16 = vld [vmem:[#allocation2 + $0x68] sm:$0xff] }
 0x213   :  { %1519 = vst [vmem:[#allocation2 + $0x1e0] sm:$0x7] %v1493_v63 }
 0x214   :  { %1342 = vst [vmem:[#allocation2 + $0x168] sm:$0x1c] %v1310_v41  ;;  %v1374_v33 = vpop.permute.xlu1 %1373 }
 0x215   :  { %v1379_v19 = vsel %vm1377_vm1, %v1372_v34, %v1374_v33  ;;  %v664_v42 = vpop.permute.xlu0 %663 }
 0x216   :  { %v1423_v44 = vrot.slane %v1379_v19, 3  ;;  %v668_v11 = vsel %vm667_vm13, %v7276_v38, %v664_v42  ;;  %v683_v6 = vsel %vm667_vm13, %v664_v42, %v6660_v37  ;;  %v5983_v38 = vpack.c.bf16 %v1553_v39, %v1537_v45  ;;  %v7400_v45 = vld [vmem:[#allocation9] ss:$2 sm:$0xff] }
 0x217   :  { %v714_v26 = vrot.slane %v668_v11, 5  ;;  %v715_v31 = vrot.slane %v683_v6, 5  ;;  %v1554_v20 = vld [vmem:[#allocation2 + $0xe8] sm:$0xff] }
 0x218   :  { %1455 = vst [vmem:[#allocation2 + $0x168] sm:$0xe0] %v1423_v44  ;;  %v1487_v49 = vpop.permute.xlu1 %1486  ;;  %v5981_v56 = vpack.c.bf16 %v1554_v20, %v1538_v16  ;;  %v6147_v44 = vld [vmem:[#allocation6 + $0x8] sm:$0xff]  ;;  %v7392_v16 = vshrl.u32 %v665_v13, 7 }
 0x219   :  { %746 = vst [vmem:[#allocation2 + $0x70] sm:$0x38] %v714_v26  ;;  %747 = vst [vmem:[#allocation2 + $0x78] sm:$0x38] %v715_v31  ;;  %v1492_v50 = vsel %vm1490_vm15, %v1485_v57, %v1487_v49  ;;  %v908_v58 = vpop.permute.xlu0 %907  ;;  %v6146_v57 = vld [vmem:[#allocation6] sm:$0xff] }
 0x21a   :  { %1520 = vst [vmem:[#allocation2 + $0x1e8] sm:$0x7] %v1492_v50  ;;  %v910_v37 = vsel %vm909_vm14, %v906_v12, %v908_v58  ;;  %v925_v51 = vsel %vm909_vm14, %v908_v58, %v6677_v43  ;;  %5982 = vmatprep.subr.bf16.mxu0 %v5981_v56  ;;  %v1585_v59 = vld [vmem:[#allocation2 + $0x1e0] sm:$0x7]  ;;  %9123 = vst [vmem:[#allocation14_spill] sm:$0xff] %v7392_v16  ;;  %v7403_v0 = vsub.s32 1, %v7392_v16 }
 0x21b   :  { %v956_v62 = vrot.slane %v910_v37, 7  ;;  %v957_v54 = vrot.slane %v925_v51, 7  ;;  %5984 = vmatpush1.bf16.msra.mxu0 %v5983_v38 }
 0x21c   :  { %v779_v40 = vpop.permute.xlu1 %778 }
 0x21d   :  { %988 = vst [vmem:[#allocation2 + $0xf0] sm:$0xe] %v956_v62  ;;  %989 = vst [vmem:[#allocation2 + $0xf8] sm:$0xe] %v957_v54  ;;  %v781_v3 = vsel %vm780_vm10, %v7284_v32, %v779_v40  ;;  %v796_v61 = vsel %vm780_vm10, %v779_v40, %v6605_v21  ;;  %v1134_v60 = vpop.permute.xlu0 %1133  ;;  %v2314_v54 = vrot.slane %v7400_v45, %v7403_v0 }
 0x21e   :  { %v827_v9 = vrot.slane %v781_v3, 2  ;;  %v828_v53 = vrot.slane %v796_v61, 2  ;;  %v1136_v43 = vsel %vm1135_vm0, %v1132_v29, %v1134_v60  ;;  %v1151_v2 = vsel %vm1135_vm0, %v1134_v60, %v6694_v48  ;;  %v1569_v29 = vld [vmem:[#allocation2 + $0x160] sm:$0xff] }
 0x21f   :  { %v1182_v55 = vrot.slane %v1136_v43, 1  ;;  %v1183_v12 = vrot.slane %v1151_v2, 1  ;;  %v1570_v46 = vld [vmem:[#allocation2 + $0x168] sm:$0xff]  ;;  %v5988_v18 = vpack.c.bf16 %v1585_v59, %v1569_v29 }
 0x220   :  { %859 = vst [vmem:[#allocation2 + $0xf0] ss:$-124 sps:$4 sm:$0xc1] %v827_v9   ;;  %860 = vst [vmem:[#allocation2 + $0xf8] ss:$-124 sps:$4 sm:$0xc1] %v828_v53   ;;  %v1021_v7 = vpop.permute.xlu1 %1020 }
 0x221   :  { %1214 = vst [vmem:[#allocation2 + $0x170] ss:$-124 sps:$4 sm:$0x83] %v1182_v55   ;;  %1215 = vst [vmem:[#allocation2 + $0x178] ss:$-124 sps:$4 sm:$0x83] %v1183_v12   ;;  %v1023_v21 = vsel %vm1022_vm11, %v7301_v24, %v1021_v7  ;;  %v1038_v32 = vsel %vm1022_vm11, %v1021_v7, %v6625_v28  ;;  %v1376_v15 = vpop.permute.xlu0 %1375 }
 0x222   :  { %v1586_v22 = vld [vmem:[#allocation2 + $0x1e8] sm:$0x7]  ;;  %v1069_v8 = vrot.slane %v1023_v21, 4  ;;  %v1070_v48 = vrot.slane %v1038_v32, 4  ;;  %v1378_v14 = vsel %vm1377_vm1, %v1374_v33, %v1376_v15  ;;  %v1393_v10 = vsel %vm1377_vm1, %v1376_v15, %v6709_v52  ;;  %v7415_v32 = vld [vmem:[#allocation8] sm:$0xff]  ;;  %v7420_v15 = vld [vmem:[#allocation8 + $0x8] sm:$0xff] }
 0x223   :  { %v1424_v4 = vrot.slane %v1378_v14, 3  ;;  %v1425_v23 = vrot.slane %v1393_v10, 3  ;;  %v5985_v24 = vpack.c.bf16 %v1586_v22, %v1570_v46  ;;  %v7425_v22 = vld [vmem:[#allocation8 + $0x10] sm:$0xff]  ;;  %v7434_v10 = vld [vmem:[#allocation8 + $0x18] sm:$0xff] }
 0x224   :  { %1101 = vst [vmem:[#allocation2 + $0xf0] sm:$0x70] %v1069_v8  ;;  %1102 = vst [vmem:[#allocation2 + $0xf8] sm:$0x70] %v1070_v48  ;;  %v1263_v28 = vpop.permute.xlu1 %1262  ;;  %v7431_v48 = vsub.s32 2, %v7392_v16 }
 0x225   :  { %1456 = vst [vmem:[#allocation2 + $0x170] sm:$0xe0] %v1424_v4  ;;  %1457 = vst [vmem:[#allocation2 + $0x178] sm:$0xe0] %v1425_v23  ;;  %v1265_v34 = vsel %vm1264_vm12, %v7320_v25, %v1263_v28  ;;  %v1280_v5 = vsel %vm1264_vm12, %v1263_v28, %v6658_v36  ;;  %5987 = vmatprep.subr.msk.bf16.mxu0 %vm6833_vm4, %v5985_v24  ;;  %v7438_v4 = vsub.s32 3, %v7392_v16 }
 0x226   :  { %v1311_v52 = vrot.slane %v1265_v34, 6  ;;  %v1312_v27 = vrot.slane %v1280_v5, 6  ;;  %5990 = vmatpush1.bf16.msk.msra.mxu0 %vm6833_vm4, %v5988_v18  ;;  %v2318_v29 = vrot.slane %v7400_v45, %v7431_v48  ;;  %v7446_v34 = vld [vmem:[#allocation8 + $0x20] sm:$0xf] }
 0x227   :  { %v1540_v36 = vld [vmem:[#allocation2 + $0x78] sm:$0xff]  ;;  %v1539_v63 = vld [vmem:[#allocation2 + $0x70] sm:$0xff] }
 0x228   :  { %1343 = vst [vmem:[#allocation2 + $0x170] sm:$0x1c] %v1311_v52  ;;  %1344 = vst [vmem:[#allocation2 + $0x178] sm:$0x1c] %v1312_v27  ;;  %v1489_v35 = vpop.permute.xlu1 %1488  ;;  %v2322_v52 = vrot.slane %v7400_v45, %v7438_v4 }
 0x229   :  { %v1491_v30 = vsel %vm1490_vm15, %v1487_v49, %v1489_v35  ;;  %v1506_v25 = vsel %vm1490_vm15, %v1489_v35, %v6691_v47  ;;  %5851 = vmatmul.mubr.msk.f32.vlgmr.msra.gmra.mrb[12].mxu0 %vm1601_vm5, %v6146_v57  ;;  %v7398_v49 = vsub.s32 0, %v7392_v16 }
 0x22a   :  { %1521 = vst [vmem:[#allocation2 + $0x1f0] sm:$0x7] %v1491_v30  ;;  %1522 = vst [vmem:[#allocation2 + $0x1f8] sm:$0x7] %v1506_v25  ;;  %2189 = vmatprep.mubr.f32.mxu0 %v9116_v1 }
 0x22b   :  { %v1556_v41 = vld [vmem:[#allocation2 + $0xf8] sm:$0xff]  ;;  %v1555_v33 = vld [vmem:[#allocation2 + $0xf0] sm:$0xff]  ;;  %v2310_v51 = vrot.slane %v7400_v45, %v7398_v49 }
 0x22c   :  { %v5991_v19 = vpack.c.bf16 %v1556_v41, %v1540_v36  ;;  %v5993_v42 = vpack.c.bf16 %v1555_v33, %v1539_v63 }
 0x22d   :  { %5852 = vmatmul.mubr.msk.f32.gmra.mrb[14].mxu0 %vm1601_vm5, %v6147_v44 }
 0x22e   :  { %5992 = vmatprep.subr.bf16.mxu1 %v5991_v19  ;;  %2508 = vmatprep.mubr.f32.mxu0 %v9116_v1 }
 0x22f   :  { %5994 = vmatpush1.bf16.msra.mxu1 %v5993_v42  ;;  %v1572_v47 = vld [vmem:[#allocation2 + $0x178] sm:$0xff]  ;;  %v1571_v6 = vld [vmem:[#allocation2 + $0x170] sm:$0xff] }
 0x231   :  { %v1588_v11 = vld [vmem:[#allocation2 + $0x1f8] sm:$0x7]  ;;  %v1587_v39 = vld [vmem:[#allocation2 + $0x1f0] sm:$0x7] }
 0x232   :  { %v5995_v26 = vpack.c.bf16 %v1588_v11, %v1572_v47  ;;  %v5998_v31 = vpack.c.bf16 %v1587_v39, %v1571_v6  ;;  %v7395_v20 = vpop.permute.xlu0 %1593  ;;  %v7472_v6 = vsub.s32 5, %v7392_v16 }
 0x234   :  { %5997 = vmatprep.subr.msk.bf16.mxu1 %vm6833_vm4, %v5995_v26 }
 0x235   :  { %6000 = vmatpush1.bf16.msk.msra.mxu1 %vm6833_vm4, %v5998_v31 }
 0x238   :  { %5855 = vmatmul.mubr.msk.f32.vlgmr.msra.gmra.mrb[12].mxu1 %vm1601_vm5, %v6146_v57 }
 0x239   :  { %2266 = vmatprep.mubr.f32.mxu1 %v9116_v1  ;;  %v7406_v38 = vpop.permute.xlu1 %1598 }
 0x23c   :  { %5856 = vmatmul.mubr.msk.f32.gmra.mrb[14].mxu1 %vm1601_vm5, %v6147_v44  ;;  %v7468_v44 = vsub.s32 4, %v7392_v16 }
 0x23d   :  { %2603 = vmatprep.mubr.f32.mxu1 %v9116_v1 }
 0x23e   :  { %v2326_v31 = vrot.slane %v7400_v45, %v7468_v44 }
 0x241   :  { %v1723_v56 = vpop.f32.mrb[0].mxu0 }
 0x242   :  { %v1725_v50 = vpop.f32.mrb[1].mxu0  ;;  %v1724_v58 = vadd.f32 %v1723_v56, %v7395_v20 }
 0x243   :  { %v1726_v13 = vadd.f32 %v1725_v50, %v7395_v20 }
 0x244   :  { %v2273_v37 = vmax.f32 %v1724_v58, 0.0 }
 0x245   :  { %v1729_v62 = vpop.f32.mrb[2].mxu0  ;;  %v2274_v40 = vmax.f32 %v1726_v13, 0.0  ;;  %v2330_v13 = vrot.slane %v7400_v45, %v7472_v6 }
 0x246   :  { %v1731_v3 = vpop.f32.mrb[3].mxu0  ;;  %v1730_v61 = vadd.f32 %v1729_v62, %v7406_v38  ;;  %v2387_v53 = vmul.f32 %v2310_v51, %v2273_v37 }
 0x247   :  { %v1732_v60 = vadd.f32 %v1731_v3, %v7406_v38  ;;  %v2388_v2 = vmul.f32 %v2314_v54, %v2274_v40 }
 0x248   :  { %v2289_v9 = vmax.f32 %v1730_v61, 0.0 }
 0x249   :  { %v2290_v43 = vmax.f32 %v1732_v60, 0.0 }
 0x24a   :  { %v2403_v55 = vmul.f32 %v2310_v51, %v2289_v9 }
 0x24b   :  { %v2404_v12 = vmul.f32 %v2314_v54, %v2290_v43 }
 0x24c   :  { %v6003_v7 = vpack.c.bf16 %v2403_v55, %v2387_v53 }
 0x24d   :  { %v6001_v21 = vpack.c.bf16 %v2404_v12, %v2388_v2  ;;  %v7497_v2 = vsub.s32 6, %v7392_v16 }
 0x24f   :  { %6002 = vmatprep.subr.bf16.mxu0 %v6001_v21  ;;  %9124 = vst [vmem:[#allocation15_spill] sm:$0xff] %v7497_v2 }
 0x250   :  { %6004 = vmatpush1.bf16.msra.mxu0 %v6003_v7  ;;  %v7501_v7 = vsub.s32 7, %v7392_v16 }
 0x253   :  { %5857 = vmatmul.mubr.msk.f32.vlgmr.msra.gmra.mrb[16].mxu0 %vm2428_vm6, %v7415_v32 }
 0x254   :  { %2514 = vmatprep.mubr.f32.mxu0 %v9116_v1 }
 0x257   :  { %5858 = vmatmul.mubr.msk.f32.gmra.mrb[18].mxu0 %vm2428_vm6, %v7420_v15 }
 0x258   :  { %2520 = vmatprep.mubr.f32.mxu0 %v9116_v1 }
 0x25b   :  { %v1800_v59 = vpop.f32.mrb[0].mxu1  ;;  %5859 = vmatmul.mubr.msk.f32.gmra.mrb[20].mxu0 %vm2428_vm6, %v7425_v22 }
 0x25c   :  { %v1801_v8 = vadd.f32 %v1800_v59, %v7395_v20  ;;  %v1802_v14 = vpop.f32.mrb[1].mxu1  ;;  %2526 = vmatprep.mubr.f32.mxu0 %v9116_v1 }
 0x25d   :  { %v1803_v46 = vadd.f32 %v1802_v14, %v7395_v20 }
 0x25e   :  { %v2275_v24 = vmax.f32 %v1801_v8, 0.0  ;;  %v2334_v8 = vrot.slane %v7400_v45, %v7497_v2 }
 0x25f   :  { %v1806_v23 = vpop.f32.mrb[2].mxu1  ;;  %5860 = vmatmul.mubr.msk.f32.gmra.mrb[22].mxu0 %vm2428_vm6, %v7434_v10  ;;  %v2276_v5 = vmax.f32 %v1803_v46, 0.0 }
 0x260   :  { %v1807_v28 = vadd.f32 %v1806_v23, %v7406_v38  ;;  %v1808_v18 = vpop.f32.mrb[3].mxu1  ;;  %2532 = vmatprep.mubr.f32.mxu0 %v9116_v1  ;;  %v2389_v25 = vmul.f32 %v2318_v29, %v2275_v24  ;;  %v2338_v24 = vrot.slane %v7400_v45, %v7501_v7 }
 0x261   :  { %v1809_v27 = vadd.f32 %v1808_v18, %v7406_v38  ;;  %v2390_v36 = vmul.f32 %v2322_v52, %v2276_v5 }
 0x262   :  { %v2291_v35 = vmax.f32 %v1807_v28, 0.0 }
 0x263   :  { %v2292_v30 = vmax.f32 %v1809_v27, 0.0  ;;  %5861 = vmatmul.mubr.msk.f32.gmra.mrb[24].mxu0 %vm2428_vm6, %v7446_v34 }
 0x264   :  { %v2405_v57 = vmul.f32 %v2318_v29, %v2291_v35  ;;  %2698 = vmatprep.mubr.f32.mxu0 %v9116_v1 }
 0x265   :  { %v2406_v41 = vmul.f32 %v2322_v52, %v2292_v30 }
 0x266   :  { %v6007_v63 = vpack.c.bf16 %v2405_v57, %v2389_v25 }
 0x267   :  { %v6005_v33 = vpack.c.bf16 %v2406_v41, %v2390_v36  ;;  %v7525_v41 = vld [vmem:[#allocation9 + $0x10] ss:$2 sm:$0xff] }
 0x269   :  { %6006 = vmatprep.subr.bf16.mxu1 %v6005_v33 }
 0x26a   :  { %6008 = vmatpush1.bf16.msra.mxu1 %v6007_v63 }
 0x26d   :  { %5862 = vmatmul.mubr.msk.f32.vlgmr.msra.gmra.mrb[16].mxu1 %vm2428_vm6, %v7415_v32 }
 0x26e   :  { %2609 = vmatprep.mubr.f32.mxu1 %v9116_v1 }
 0x271   :  { %5863 = vmatmul.mubr.msk.f32.gmra.mrb[18].mxu1 %vm2428_vm6, %v7420_v15 }
 0x272   :  { %2615 = vmatprep.mubr.f32.mxu1 %v9116_v1 }
 0x275   :  { %5864 = vmatmul.mubr.msk.f32.gmra.mrb[20].mxu1 %vm2428_vm6, %v7425_v22 }
 0x276   :  { %2621 = vmatprep.mubr.f32.mxu1 %v9116_v1 }
 0x279   :  { %5865 = vmatmul.mubr.msk.f32.gmra.mrb[22].mxu1 %vm2428_vm6, %v7434_v10 }
 0x27a   :  { %2627 = vmatprep.mubr.f32.mxu1 %v9116_v1 }
 0x27b   :  { %v1877_v19 = vpop.f32.mrb[4].mxu0 }
 0x27c   :  { %v1878_v42 = vadd.f32 %v1877_v19, %v7395_v20  ;;  %v1879_v47 = vpop.f32.mrb[5].mxu0 }
 0x27d   :  { %v1880_v11 = vadd.f32 %v1879_v47, %v7395_v20  ;;  %5866 = vmatmul.mubr.msk.f32.gmra.mrb[24].mxu1 %vm2428_vm6, %v7446_v34 }
 0x27e   :  { %2793 = vmatprep.mubr.f32.mxu1 %v9116_v1  ;;  %v2277_v26 = vmax.f32 %v1878_v42, 0.0  ;;  %v2342_v42 = vrot.slane %v7525_v41, %v7398_v49 }
 0x27f   :  { %v1883_v39 = vpop.f32.mrb[6].mxu0  ;;  %v2278_v58 = vmax.f32 %v1880_v11, 0.0 }
 0x280   :  { %v1884_v56 = vadd.f32 %v1883_v39, %v7406_v38  ;;  %v1885_v50 = vpop.f32.mrb[7].mxu0  ;;  %v2391_v54 = vmul.f32 %v2326_v31, %v2277_v26  ;;  %v2346_v26 = vrot.slane %v7525_v41, %v7403_v0 }
 0x281   :  { %v1886_v37 = vadd.f32 %v1885_v50, %v7406_v38  ;;  %v2392_v3 = vmul.f32 %v2330_v13, %v2278_v58 }
 0x282   :  { %v2293_v51 = vmax.f32 %v1884_v56, 0.0 }
 0x283   :  { %v2294_v62 = vmax.f32 %v1886_v37, 0.0 }
 0x284   :  { %v2407_v40 = vmul.f32 %v2326_v31, %v2293_v51 }
 0x285   :  { %v2408_v61 = vmul.f32 %v2330_v13, %v2294_v62 }
 0x286   :  { %v6011_v60 = vpack.c.bf16 %v2407_v40, %v2391_v54 }
 0x287   :  { %v6009_v9 = vpack.c.bf16 %v2408_v61, %v2392_v3 }
 0x289   :  { %6010 = vmatprep.subr.bf16.mxu0 %v6009_v9 }
 0x28a   :  { %6012 = vmatpush1.bf16.msra.mxu0 %v6011_v60 }
 0x28d   :  { %5867 = vmatmul.mubr.msk.f32.vlgmr.msra.gmra.mrb[26].mxu0 %vm2428_vm6, %v7415_v32 }
 0x28e   :  { %2704 = vmatprep.mubr.f32.mxu0 %v9116_v1 }
 0x291   :  { %5868 = vmatmul.mubr.msk.f32.gmra.mrb[28].mxu0 %vm2428_vm6, %v7420_v15 }
 0x292   :  { %2710 = vmatprep.mubr.f32.mxu0 %v9116_v1 }
 0x295   :  { %5869 = vmatmul.mubr.msk.f32.gmra.mrb[30].mxu0 %vm2428_vm6, %v7425_v22 }
 0x296   :  { %2716 = vmatprep.mubr.f32.mxu0 %v9116_v1 }
 0x299   :  { %5870 = vmatmul.mubr.msk.f32.gmra.mrb[32].mxu0 %vm2428_vm6, %v7434_v10 }
 0x29a   :  { %2722 = vmatprep.mubr.f32.mxu0 %v9116_v1 }
 0x29b   :  { %v1954_v53 = vpop.f32.mrb[4].mxu1 }
 0x29c   :  { %v1955_v43 = vadd.f32 %v1954_v53, %v7395_v20  ;;  %v1956_v55 = vpop.f32.mrb[5].mxu1 }
 0x29d   :  { %v1957_v12 = vadd.f32 %v1956_v55, %v7395_v20  ;;  %5871 = vmatmul.mubr.msk.f32.gmra.mrb[34].mxu0 %vm2428_vm6, %v7446_v34 }
 0x29e   :  { %2888 = vmatprep.mubr.f32.mxu0 %v9116_v1  ;;  %v2279_v59 = vmax.f32 %v1955_v43, 0.0  ;;  %v2350_v43 = vrot.slane %v7525_v41, %v7431_v48 }
 0x29f   :  { %v1960_v21 = vpop.f32.mrb[6].mxu1  ;;  %v2280_v23 = vmax.f32 %v1957_v12, 0.0 }
 0x2a0   :  { %v1961_v14 = vadd.f32 %v1960_v21, %v7406_v38  ;;  %v1962_v46 = vpop.f32.mrb[7].mxu1  ;;  %v2393_v5 = vmul.f32 %v2334_v8, %v2279_v59  ;;  %v2354_v59 = vrot.slane %v7525_v41, %v7438_v4 }
 0x2a1   :  { %v1963_v29 = vadd.f32 %v1962_v46, %v7406_v38  ;;  %v2394_v27 = vmul.f32 %v2338_v24, %v2280_v23 }
 0x2a2   :  { %v2295_v28 = vmax.f32 %v1961_v14, 0.0 }
 0x2a3   :  { %v2296_v18 = vmax.f32 %v1963_v29, 0.0 }
 0x2a4   :  { %v2409_v52 = vmul.f32 %v2334_v8, %v2295_v28 }
 0x2a5   :  { %v2410_v35 = vmul.f32 %v2338_v24, %v2296_v18 }
 0x2a6   :  { %v6015_v30 = vpack.c.bf16 %v2409_v52, %v2393_v5 }
 0x2a7   :  { %v6013_v25 = vpack.c.bf16 %v2410_v35, %v2394_v27 }
 0x2a9   :  { %6014 = vmatprep.subr.bf16.mxu1 %v6013_v25 }
 0x2aa   :  { %6016 = vmatpush1.bf16.msra.mxu1 %v6015_v30 }
 0x2ad   :  { %5872 = vmatmul.mubr.msk.f32.vlgmr.msra.gmra.mrb[26].mxu1 %vm2428_vm6, %v7415_v32 }
 0x2ae   :  { %2799 = vmatprep.mubr.f32.mxu1 %v9116_v1 }
 0x2b1   :  { %5873 = vmatmul.mubr.msk.f32.gmra.mrb[28].mxu1 %vm2428_vm6, %v7420_v15 }
 0x2b2   :  { %2805 = vmatprep.mubr.f32.mxu1 %v9116_v1 }
 0x2b5   :  { %5874 = vmatmul.mubr.msk.f32.gmra.mrb[30].mxu1 %vm2428_vm6, %v7425_v22 }
 0x2b6   :  { %2811 = vmatprep.mubr.f32.mxu1 %v9116_v1 }
 0x2b9   :  { %5875 = vmatmul.mubr.msk.f32.gmra.mrb[32].mxu1 %vm2428_vm6, %v7434_v10 }
 0x2ba   :  { %2817 = vmatprep.mubr.f32.mxu1 %v9116_v1 }
 0x2bb   :  { %v2031_v45 = vpop.f32.mrb[8].mxu0 }
 0x2bc   :  { %v2032_v57 = vadd.f32 %v2031_v45, %v7395_v20  ;;  %v2033_v36 = vpop.f32.mrb[9].mxu0 }
 0x2bd   :  { %v2034_v63 = vadd.f32 %v2033_v36, %v7395_v20  ;;  %5876 = vmatmul.mubr.msk.f32.gmra.mrb[34].mxu1 %vm2428_vm6, %v7446_v34 }
 0x2be   :  { %2983 = vmatprep.mubr.f32.mxu1 %v9116_v1  ;;  %v2281_v19 = vmax.f32 %v2032_v57, 0.0  ;;  %v2358_v57 = vrot.slane %v7525_v41, %v7468_v44 }
 0x2bf   :  { %v2037_v33 = vpop.f32.mrb[10].mxu0  ;;  %v2282_v39 = vmax.f32 %v2034_v63, 0.0 }
 0x2c0   :  { %v2038_v47 = vadd.f32 %v2037_v33, %v7406_v38  ;;  %v2039_v11 = vpop.f32.mrb[11].mxu0  ;;  %v2395_v58 = vmul.f32 %v2342_v42, %v2281_v19  ;;  %v2362_v19 = vrot.slane %v7525_v41, %v7472_v6 }
 0x2c1   :  { %v2040_v31 = vadd.f32 %v2039_v11, %v7406_v38  ;;  %v2396_v37 = vmul.f32 %v2346_v26, %v2282_v39 }
 0x2c2   :  { %v2297_v56 = vmax.f32 %v2038_v47, 0.0 }
 0x2c3   :  { %v2298_v50 = vmax.f32 %v2040_v31, 0.0 }
 0x2c4   :  { %v2411_v13 = vmul.f32 %v2342_v42, %v2297_v56 }
 0x2c5   :  { %v2412_v51 = vmul.f32 %v2346_v26, %v2298_v50 }
 0x2c6   :  { %v6019_v62 = vpack.c.bf16 %v2411_v13, %v2395_v58 }
 0x2c7   :  { %v6017_v54 = vpack.c.bf16 %v2412_v51, %v2396_v37 }
 0x2c9   :  { %6018 = vmatprep.subr.bf16.mxu0 %v6017_v54 }
 0x2ca   :  { %6020 = vmatpush1.bf16.msra.mxu0 %v6019_v62 }
 0x2cd   :  { %5877 = vmatmul.mubr.msk.f32.vlgmr.msra.gmra.mrb[36].mxu0 %vm2428_vm6, %v7415_v32 }
 0x2ce   :  { %2894 = vmatprep.mubr.f32.mxu0 %v9116_v1 }
 0x2d1   :  { %5878 = vmatmul.mubr.msk.f32.gmra.mrb[38].mxu0 %vm2428_vm6, %v7420_v15 }
 0x2d2   :  { %2900 = vmatprep.mubr.f32.mxu0 %v9116_v1 }
 0x2d5   :  { %5879 = vmatmul.mubr.msk.f32.gmra.mrb[40].mxu0 %vm2428_vm6, %v7425_v22 }
 0x2d6   :  { %2906 = vmatprep.mubr.f32.mxu0 %v9116_v1 }
 0x2d9   :  { %5880 = vmatmul.mubr.msk.f32.gmra.mrb[42].mxu0 %vm2428_vm6, %v7434_v10 }
 0x2da   :  { %2912 = vmatprep.mubr.f32.mxu0 %v9116_v1 }
 0x2db   :  { %v2108_v40 = vpop.f32.mrb[8].mxu1 }
 0x2dc   :  { %v2109_v3 = vadd.f32 %v2108_v40, %v7395_v20  ;;  %v2110_v61 = vpop.f32.mrb[9].mxu1 }
 0x2dd   :  { %v2111_v60 = vadd.f32 %v2110_v61, %v7395_v20  ;;  %5881 = vmatmul.mubr.msk.f32.gmra.mrb[44].mxu0 %vm2428_vm6, %v7446_v34 }
 0x2de   :  { %3078 = vmatprep.mubr.f32.mxu0 %v9116_v1  ;;  %v2283_v53 = vmax.f32 %v2109_v3, 0.0  ;;  %v2366_v3 = vrot.slane %v7525_v41, %v7497_v2 }
 0x2df   :  { %v2114_v9 = vpop.f32.mrb[10].mxu1  ;;  %v2284_v21 = vmax.f32 %v2111_v60, 0.0 }
 0x2e0   :  { %v2115_v55 = vadd.f32 %v2114_v9, %v7406_v38  ;;  %v2116_v12 = vpop.f32.mrb[11].mxu1  ;;  %v2397_v23 = vmul.f32 %v2350_v43, %v2283_v53  ;;  %v2370_v53 = vrot.slane %v7525_v41, %v7501_v7 }
 0x2e1   :  { %v2117_v8 = vadd.f32 %v2116_v12, %v7406_v38  ;;  %v2398_v29 = vmul.f32 %v2354_v59, %v2284_v21 }
 0x2e2   :  { %v2299_v14 = vmax.f32 %v2115_v55, 0.0 }
 0x2e3   :  { %v2300_v46 = vmax.f32 %v2117_v8, 0.0 }
 0x2e4   :  { %v2413_v24 = vmul.f32 %v2350_v43, %v2299_v14 }
 0x2e5   :  { %v2414_v28 = vmul.f32 %v2354_v59, %v2300_v46 }
 0x2e6   :  { %v6023_v18 = vpack.c.bf16 %v2413_v24, %v2397_v23 }
 0x2e7   :  { %v6021_v5 = vpack.c.bf16 %v2414_v28, %v2398_v29 }
 0x2e9   :  { %6022 = vmatprep.subr.bf16.mxu1 %v6021_v5 }
 0x2ea   :  { %6024 = vmatpush1.bf16.msra.mxu1 %v6023_v18 }
 0x2ed   :  { %5882 = vmatmul.mubr.msk.f32.vlgmr.msra.gmra.mrb[36].mxu1 %vm2428_vm6, %v7415_v32 }
 0x2ee   :  { %2989 = vmatprep.mubr.f32.mxu1 %v9116_v1 }
 0x2f1   :  { %5883 = vmatmul.mubr.msk.f32.gmra.mrb[38].mxu1 %vm2428_vm6, %v7420_v15 }
 0x2f2   :  { %2995 = vmatprep.mubr.f32.mxu1 %v9116_v1 }
 0x2f5   :  { %5884 = vmatmul.mubr.msk.f32.gmra.mrb[40].mxu1 %vm2428_vm6, %v7425_v22 }
 0x2f6   :  { %3001 = vmatprep.mubr.f32.mxu1 %v9116_v1 }
 0x2f9   :  { %5885 = vmatmul.mubr.msk.f32.gmra.mrb[42].mxu1 %vm2428_vm6, %v7434_v10 }
 0x2fa   :  { %3007 = vmatprep.mubr.f32.mxu1 %v9116_v1 }
 0x2fc   :  { %v2185_v52 = vpop.f32.mrb[12].mxu0 }
 0x2fd   :  { %v2186_v27 = vadd.f32 %v2185_v52, %v7395_v20  ;;  %v2187_v35 = vpop.f32.mrb[13].mxu0  ;;  %5886 = vmatmul.mubr.msk.f32.gmra.mrb[44].mxu1 %vm2428_vm6, %v7446_v34 }
 0x2fe   :  { %v2188_v30 = vadd.f32 %v2187_v35, %v7395_v20  ;;  %3173 = vmatprep.mubr.f32.mxu1 %v9116_v1 }
 0x2ff   :  { %v2285_v45 = vmax.f32 %v2186_v27, 0.0 }
 0x300   :  { %v2191_v25 = vpop.f32.mrb[14].mxu0  ;;  %v2286_v33 = vmax.f32 %v2188_v30, 0.0 }
 0x301   :  { %v2192_v36 = vadd.f32 %v2191_v25, %v7406_v38  ;;  %v2193_v63 = vpop.f32.mrb[15].mxu0  ;;  %v2399_v39 = vmul.f32 %v2358_v57, %v2285_v45 }
 0x302   :  { %v2194_v42 = vadd.f32 %v2193_v63, %v7406_v38  ;;  %v2400_v31 = vmul.f32 %v2362_v19, %v2286_v33 }
 0x303   :  { %v2301_v47 = vmax.f32 %v2192_v36, 0.0 }
 0x304   :  { %v2302_v11 = vmax.f32 %v2194_v42, 0.0 }
 0x305   :  { %v2415_v26 = vmul.f32 %v2358_v57, %v2301_v47 }
 0x306   :  { %v2416_v56 = vmul.f32 %v2362_v19, %v2302_v11 }
 0x307   :  { %v6027_v50 = vpack.c.bf16 %v2415_v26, %v2399_v39 }
 0x308   :  { %v6025_v58 = vpack.c.bf16 %v2416_v56, %v2400_v31 }
 0x30a   :  { %6026 = vmatprep.subr.bf16.mxu0 %v6025_v58 }
 0x30b   :  { %6028 = vmatpush1.bf16.msra.mxu0 %v6027_v50  ;;  %v2262_v13 = vpop.f32.mrb[12].mxu1 }
 0x30c   :  { %v2263_v37 = vadd.f32 %v2262_v13, %v7395_v20  ;;  %v2264_v51 = vpop.f32.mrb[13].mxu1 }
 0x30d   :  { %v2265_v62 = vadd.f32 %v2264_v51, %v7395_v20 }
 0x30e   :  { %5887 = vmatmul.mubr.msk.f32.vlgmr.msra.gmra.mrb[46].mxu0 %vm2428_vm6, %v7415_v32  ;;  %v2287_v40 = vmax.f32 %v2263_v37, 0.0 }
 0x30f   :  { %v2268_v54 = vpop.f32.mrb[14].mxu1  ;;  %3084 = vmatprep.mubr.f32.mxu0 %v9116_v1  ;;  %v2288_v9 = vmax.f32 %v2265_v62, 0.0 }
 0x310   :  { %v2269_v61 = vadd.f32 %v2268_v54, %v7406_v38  ;;  %v2270_v60 = vpop.f32.mrb[15].mxu1  ;;  %v2401_v12 = vmul.f32 %v2366_v3, %v2287_v40 }
 0x311   :  { %v2271_v43 = vadd.f32 %v2270_v60, %v7406_v38  ;;  %v2402_v59 = vmul.f32 %v2370_v53, %v2288_v9 }
 0x312   :  { %v2303_v20 = vmax.f32 %v2269_v61, 0.0  ;;  %5888 = vmatmul.mubr.msk.f32.gmra.mrb[48].mxu0 %vm2428_vm6, %v7420_v15 }
 0x313   :  { %v2304_v55 = vmax.f32 %v2271_v43, 0.0  ;;  %3090 = vmatprep.mubr.f32.mxu0 %v9116_v1 }
 0x314   :  { %v2417_v21 = vmul.f32 %v2366_v3, %v2303_v20 }
 0x315   :  { %v2418_v8 = vmul.f32 %v2370_v53, %v2304_v55 }
 0x316   :  { %v6031_v14 = vpack.c.bf16 %v2417_v21, %v2401_v12  ;;  %5889 = vmatmul.mubr.msk.f32.gmra.mrb[50].mxu0 %vm2428_vm6, %v7425_v22 }
 0x317   :  { %v6029_v46 = vpack.c.bf16 %v2418_v8, %v2402_v59  ;;  %3096 = vmatprep.mubr.f32.mxu0 %v9116_v1 }
 0x319   :  { %6030 = vmatprep.subr.bf16.mxu1 %v6029_v46 }
 0x31a   :  { %6032 = vmatpush1.bf16.msra.mxu1 %v6031_v14  ;;  %5890 = vmatmul.mubr.msk.f32.gmra.mrb[52].mxu0 %vm2428_vm6, %v7434_v10 }
 0x31b   :  { %3102 = vmatprep.mubr.f32.mxu0 %v9116_v1 }
 0x31d   :  { %5892 = vmatmul.mubr.msk.f32.vlgmr.msra.gmra.mrb[46].mxu1 %vm2428_vm6, %v7415_v32 }
 0x31e   :  { %3179 = vmatprep.mubr.f32.mxu1 %v9116_v1  ;;  %5891 = vmatmul.mubr.msk.f32.gmra.mrb[54].mxu0 %vm2428_vm6, %v7446_v34 }
 0x31f   :  { %5196 = vmatprep.mubr.f32.mxu0 %v9116_v1 }
 0x321   :  { %5893 = vmatmul.mubr.msk.f32.gmra.mrb[48].mxu1 %vm2428_vm6, %v7420_v15 }
 0x322   :  { %3185 = vmatprep.mubr.f32.mxu1 %v9116_v1 }
 0x325   :  { %5894 = vmatmul.mubr.msk.f32.gmra.mrb[50].mxu1 %vm2428_vm6, %v7425_v22 }
 0x326   :  { %v2510_v38 = vpop.f32.mrb[16].mxu0  ;;  %3191 = vmatprep.mubr.f32.mxu1 %v9116_v1 }
 0x327   :  { %3204 = vst [vmem:[#allocation2] sm:$0xff] %v2510_v38  ;;  %v2512_v32 = vpop.f32.mrb[17].mxu0 }
 0x328   :  { %3205 = vst [vmem:[#allocation2 + $0x8] sm:$0xff] %v2512_v32 }
 0x329   :  { %5895 = vmatmul.mubr.msk.f32.gmra.mrb[52].mxu1 %vm2428_vm6, %v7434_v10 }
 0x32a   :  { %v2516_v41 = vpop.f32.mrb[18].mxu0  ;;  %3197 = vmatprep.mubr.f32.mxu1 %v9116_v1 }
 0x32b   :  { %3220 = vst [vmem:[#allocation2 + $0x80] sm:$0xff] %v2516_v41  ;;  %v2518_v23 = vpop.f32.mrb[19].mxu0 }
 0x32c   :  { %3221 = vst [vmem:[#allocation2 + $0x88] sm:$0xff] %v2518_v23 }
 0x32d   :  { %5896 = vmatmul.mubr.msk.f32.gmra.mrb[54].mxu1 %vm2428_vm6, %v7446_v34 }
 0x32e   :  { %v3300_v15 = vld [vmem:[#allocation2] sm:$0xf0]  ;;  %v2522_v22 = vpop.f32.mrb[20].mxu0  ;;  %5267 = vmatprep.mubr.f32.mxu1 %v9116_v1 }
 0x32f   :  { %v3332_v24 = vrot.slane %v3300_v15, 4  ;;  %v3301_v29 = vld [vmem:[#allocation2 + $0x8] sm:$0xf0]  ;;  %3236 = vst [vmem:[#allocation2 + $0x100] sm:$0xff] %v2522_v22  ;;  %v2524_v28 = vpop.f32.mrb[21].mxu0 }
 0x330   :  { %v3333_v18 = vrot.slane %v3301_v29, 4  ;;  %3237 = vst [vmem:[#allocation2 + $0x108] sm:$0xff] %v2524_v28 }
 0x331   :  { %3364 = vrot.lane.b32.xlu1 %v3332_v24, %s6282_s12 }
 0x332   :  { %3366 = vrot.lane.b32.xlu0 %v3333_v18, %s6282_s12  ;;  %v2528_v10 = vpop.f32.mrb[22].mxu0  ;;  %v3428_v42 = vld [vmem:[#allocation2 + $0x80] sm:$0xf]  ;;  %v3508_v58 = vld [vmem:[#allocation2 + $0x80] sm:$0xf0] }
 0x333   :  { %3252 = vst [vmem:[#allocation2 + $0x180] sm:$0xff] %v2528_v10  ;;  %v2530_v5 = vpop.f32.mrb[23].mxu0  ;;  %v3429_v11 = vld [vmem:[#allocation2 + $0x88] sm:$0xf]  ;;  %v3509_v13 = vld [vmem:[#allocation2 + $0x88] sm:$0xf0] }
 0x334   :  { %3253 = vst [vmem:[#allocation2 + $0x188] sm:$0xff] %v2530_v5  ;;  %v3540_v37 = vrot.slane %v3508_v58, 4  ;;  %v3541_v51 = vrot.slane %v3509_v13, 4 }
 0x336   :  { %v2534_v52 = vpop.f32.mrb[24].mxu0  ;;  %v3636_v61 = vld [vmem:[#allocation2 + $0x100] sm:$0xf]  ;;  %v3716_v12 = vld [vmem:[#allocation2 + $0x100] sm:$0xf0] }
 0x337   :  { %3268 = vst [vmem:[#allocation2 + $0x200] sm:$0xf] %v2534_v52  ;;  %v2536_v34 = vpop.f32.mrb[25].mxu0  ;;  %v3637_v60 = vld [vmem:[#allocation2 + $0x108] sm:$0xf]  ;;  %v3748_v14 = vrot.slane %v3716_v12, 4 }
 0x338   :  { %3269 = vst [vmem:[#allocation2 + $0x208] sm:$0xf] %v2536_v34  ;;  %v3717_v55 = vld [vmem:[#allocation2 + $0x108] sm:$0xf0] }
 0x339   :  { %v3749_v59 = vrot.slane %v3717_v55, 4 }
 0x33a   :  { %v3844_v22 = vld [vmem:[#allocation2 + $0x180] sm:$0xf] }
 0x33b   :  { %v3925_v18 = vld [vmem:[#allocation2 + $0x188] sm:$0xf0]  ;;  %v3845_v34 = vld [vmem:[#allocation2 + $0x188] sm:$0xf] }
 0x340   :  { %v2605_v27 = vpop.f32.mrb[16].mxu1 }
 0x341   :  { %3206 = vst [vmem:[#allocation2 + $0x10] sm:$0xff] %v2605_v27  ;;  %v2607_v35 = vpop.f32.mrb[17].mxu1  ;;  %v3957_v27 = vrot.slane %v3925_v18, 4 }
 0x342   :  { %3207 = vst [vmem:[#allocation2 + $0x18] sm:$0xff] %v2607_v35 }
 0x344   :  { %v2611_v30 = vpop.f32.mrb[18].mxu1 }
 0x345   :  { %3222 = vst [vmem:[#allocation2 + $0x90] sm:$0xff] %v2611_v30  ;;  %v2613_v25 = vpop.f32.mrb[19].mxu1 }
 0x346   :  { %3223 = vst [vmem:[#allocation2 + $0x98] sm:$0xff] %v2613_v25  ;;  %v3924_v25 = vld [vmem:[#allocation2 + $0x180] sm:$0xf0] }
 0x348   :  { %v3302_v45 = vld [vmem:[#allocation2 + $0x10] sm:$0xf0]  ;;  %v2617_v57 = vpop.f32.mrb[20].mxu1 }
 0x349   :  { %v3334_v36 = vrot.slane %v3302_v45, 4  ;;  %v3303_v63 = vld [vmem:[#allocation2 + $0x18] sm:$0xf0]  ;;  %3238 = vst [vmem:[#allocation2 + $0x110] sm:$0xff] %v2617_v57  ;;  %v2619_v33 = vpop.f32.mrb[21].mxu1  ;;  %v3956_v45 = vrot.slane %v3924_v25, 4 }
 0x34a   :  { %v3335_v19 = vrot.slane %v3303_v63, 4  ;;  %3239 = vst [vmem:[#allocation2 + $0x118] sm:$0xff] %v2619_v33  ;;  %v4053_v57 = vld [vmem:[#allocation2 + $0x208] sm:$0xf] }
 0x34b   :  { %3368 = vrot.lane.b32.xlu1 %v3334_v36, %s6282_s12 }
 0x34c   :  { %3370 = vrot.lane.b32.xlu0 %v3335_v19, %s6282_s12  ;;  %v2623_v47 = vpop.f32.mrb[22].mxu1  ;;  %v3430_v26 = vld [vmem:[#allocation2 + $0x90] sm:$0xf]  ;;  %v3510_v62 = vld [vmem:[#allocation2 + $0x90] sm:$0xf0] }
 0x34d   :  { %3254 = vst [vmem:[#allocation2 + $0x190] sm:$0xff] %v2623_v47  ;;  %v2625_v39 = vpop.f32.mrb[23].mxu1  ;;  %v3431_v56 = vld [vmem:[#allocation2 + $0x98] sm:$0xf]  ;;  %v3511_v54 = vld [vmem:[#allocation2 + $0x98] sm:$0xf0] }
 0x34e   :  { %3255 = vst [vmem:[#allocation2 + $0x198] sm:$0xff] %v2625_v39  ;;  %v3542_v40 = vrot.slane %v3510_v62, 4  ;;  %v3543_v3 = vrot.slane %v3511_v54, 4  ;;  %v4052_v39 = vld [vmem:[#allocation2 + $0x200] sm:$0xf] }
 0x34f   :  { %3444 = vrot.lane.b32.xlu1 %v3428_v42, %s6270_s26 }
 0x350   :  { %3446 = vrot.lane.b32.xlu0 %v3429_v11, %s6270_s26  ;;  %v2629_v31 = vpop.f32.mrb[24].mxu1  ;;  %v3638_v9 = vld [vmem:[#allocation2 + $0x110] sm:$0xf]  ;;  %v3718_v38 = vld [vmem:[#allocation2 + $0x110] sm:$0xf0] }
 0x351   :  { %3270 = vst [vmem:[#allocation2 + $0x210] sm:$0xf] %v2629_v31  ;;  %v2631_v50 = vpop.f32.mrb[25].mxu1  ;;  %v3639_v43 = vld [vmem:[#allocation2 + $0x118] sm:$0xf]  ;;  %v3750_v15 = vrot.slane %v3718_v38, 4 }
 0x352   :  { %3271 = vst [vmem:[#allocation2 + $0x218] sm:$0xf] %v2631_v50  ;;  %v3719_v46 = vld [vmem:[#allocation2 + $0x118] sm:$0xf0] }
 0x353   :  { %3448 = vrot.lane.b32.xlu1 %v3430_v26, %s6270_s26  ;;  %v3751_v41 = vrot.slane %v3719_v46, 4 }
 0x354   :  { %3450 = vrot.lane.b32.xlu0 %v3431_v56, %s6270_s26  ;;  %v3846_v29 = vld [vmem:[#allocation2 + $0x190] sm:$0xf]  ;;  %v3926_v36 = vld [vmem:[#allocation2 + $0x190] sm:$0xf0] }
 0x355   :  { %v3927_v5 = vld [vmem:[#allocation2 + $0x198] sm:$0xf0]  ;;  %v3847_v30 = vld [vmem:[#allocation2 + $0x198] sm:$0xf]  ;;  %v3958_v63 = vrot.slane %v3926_v36, 4 }
 0x356   :  { %v3959_v35 = vrot.slane %v3927_v5, 4 }
 0x357   :  { %3572 = vrot.lane.b32.xlu1 %v3540_v37, %s6284_s14 }
 0x358   :  { %3574 = vrot.lane.b32.xlu0 %v3541_v51, %s6284_s14  ;;  %v4054_v56 = vld [vmem:[#allocation2 + $0x210] sm:$0xf] }
 0x359   :  { %v4055_v33 = vld [vmem:[#allocation2 + $0x218] sm:$0xf] }
 0x35b   :  { %3576 = vrot.lane.b32.xlu1 %v3542_v40, %s6284_s14 }
 0x35c   :  { %3578 = vrot.lane.b32.xlu0 %v3543_v3, %s6284_s14 }
 0x35f   :  { %3652 = vrot.lane.b32.xlu1 %v3636_v61, %s6283_s13 }
 0x360   :  { %3654 = vrot.lane.b32.xlu0 %v3637_v60, %s6283_s13  ;;  %v2700_v53 = vpop.f32.mrb[26].mxu0 }
 0x361   :  { %3208 = vst [vmem:[#allocation2 + $0x20] sm:$0xff] %v2700_v53  ;;  %v2702_v20 = vpop.f32.mrb[27].mxu0 }
 0x362   :  { %3209 = vst [vmem:[#allocation2 + $0x28] sm:$0xff] %v2702_v20 }
 0x363   :  { %3656 = vrot.lane.b32.xlu1 %v3638_v9, %s6283_s13 }
 0x364   :  { %3658 = vrot.lane.b32.xlu0 %v3639_v43, %s6283_s13  ;;  %v2706_v21 = vpop.f32.mrb[28].mxu0 }
 0x365   :  { %3224 = vst [vmem:[#allocation2 + $0xa0] sm:$0xff] %v2706_v21  ;;  %v2708_v8 = vpop.f32.mrb[29].mxu0 }
 0x366   :  { %3225 = vst [vmem:[#allocation2 + $0xa8] sm:$0xff] %v2708_v8 }
 0x367   :  { %3782 = vrot.lane.b32.xlu1 %v3749_v59, %s6269_s25 }
 0x368   :  { %3780 = vrot.lane.b32.xlu0 %v3748_v14, %s6269_s25  ;;  %v2712_v32 = vpop.f32.mrb[30].mxu0  ;;  %v3304_v50 = vld [vmem:[#allocation2 + $0x20] sm:$0xf0] }
 0x369   :  { %3240 = vst [vmem:[#allocation2 + $0x120] sm:$0xff] %v2712_v32  ;;  %v2714_v23 = vpop.f32.mrb[31].mxu0  ;;  %v3305_v19 = vld [vmem:[#allocation2 + $0x28] sm:$0xf0]  ;;  %v3336_v13 = vrot.slane %v3304_v50, 4 }
 0x36a   :  { %3241 = vst [vmem:[#allocation2 + $0x128] sm:$0xff] %v2714_v23  ;;  %v3337_v47 = vrot.slane %v3305_v19, 4 }
 0x36b   :  { %3786 = vrot.lane.b32.xlu1 %v3751_v41, %s6269_s25 }
 0x36c   :  { %3784 = vrot.lane.b32.xlu0 %v3750_v15, %s6269_s25  ;;  %v2718_v24 = vpop.f32.mrb[32].mxu0  ;;  %v3432_v20 = vld [vmem:[#allocation2 + $0xa0] sm:$0xf]  ;;  %v3512_v59 = vld [vmem:[#allocation2 + $0xa0] sm:$0xf0] }
 0x36d   :  { %3256 = vst [vmem:[#allocation2 + $0x1a0] sm:$0xff] %v2718_v24  ;;  %v2720_v28 = vpop.f32.mrb[33].mxu0  ;;  %v3433_v61 = vld [vmem:[#allocation2 + $0xa8] sm:$0xf]  ;;  %v3513_v55 = vld [vmem:[#allocation2 + $0xa8] sm:$0xf0] }
 0x36e   :  { %3257 = vst [vmem:[#allocation2 + $0x1a8] sm:$0xff] %v2720_v28  ;;  %v3545_v21 = vrot.slane %v3513_v55, 4  ;;  %v3544_v14 = vrot.slane %v3512_v59, 4 }
 0x36f   :  { %3860 = vrot.lane.b32.xlu1 %v3844_v22, %s6285_s15 }
 0x370   :  { %3864 = vrot.lane.b32.xlu0 %v3846_v29, %s6285_s15  ;;  %v2724_v10 = vpop.f32.mrb[34].mxu0  ;;  %v3640_v24 = vld [vmem:[#allocation2 + $0x120] sm:$0xf]  ;;  %v3720_v29 = vld [vmem:[#allocation2 + $0x120] sm:$0xf0] }
 0x371   :  { %3272 = vst [vmem:[#allocation2 + $0x220] sm:$0xf] %v2724_v10  ;;  %v2726_v52 = vpop.f32.mrb[35].mxu0  ;;  %v3641_v41 = vld [vmem:[#allocation2 + $0x128] sm:$0xf]  ;;  %v3752_v5 = vrot.slane %v3720_v29, 4 }
 0x372   :  { %3273 = vst [vmem:[#allocation2 + $0x228] sm:$0xf] %v2726_v52  ;;  %v3721_v52 = vld [vmem:[#allocation2 + $0x128] sm:$0xf0] }
 0x373   :  { %3862 = vrot.lane.b32.xlu1 %v3845_v34, %s6285_s15 }
 0x374   :  { %3990 = vrot.lane.b32.xlu0 %v3957_v27, %s6286_s6 }
 0x377   :  { %3866 = vrot.lane.b32.xlu1 %v3847_v30, %s6285_s15 }
 0x378   :  { %3994 = vrot.lane.b32.xlu0 %v3959_v35, %s6286_s6  ;;  %v3753_v35 = vrot.slane %v3721_v52, 4 }
 0x37b   :  { %3988 = vrot.lane.b32.xlu1 %v3956_v45, %s6286_s6 }
 0x37c   :  { %4070 = vrot.lane.b32.xlu0 %v4053_v57, %s6267_s23 }
 0x37f   :  { %3992 = vrot.lane.b32.xlu1 %v3958_v63, %s6286_s6  ;;  %v3848_v63 = vld [vmem:[#allocation2 + $0x1a0] sm:$0xf] }
 0x380   :  { %v2795_v42 = vpop.f32.mrb[26].mxu1  ;;  %4074 = vrot.lane.b32.xlu0 %v4055_v33, %s6267_s23 }
 0x381   :  { %3210 = vst [vmem:[#allocation2 + $0x30] sm:$0xff] %v2795_v42  ;;  %v2797_v11 = vpop.f32.mrb[27].mxu1 }
 0x382   :  { %3211 = vst [vmem:[#allocation2 + $0x38] sm:$0xff] %v2797_v11  ;;  %v3849_v11 = vld [vmem:[#allocation2 + $0x1a8] sm:$0xf] }
 0x383   :  { %4068 = vrot.lane.b32.xlu1 %v4052_v39, %s6267_s23  ;;  %v3928_v39 = vld [vmem:[#allocation2 + $0x1a0] sm:$0xf0] }
 0x384   :  { %3374 = vrot.lane.b32.xlu0 %v3337_v47, %s6282_s12  ;;  %v2801_v26 = vpop.f32.mrb[28].mxu1 }
 0x385   :  { %3226 = vst [vmem:[#allocation2 + $0xb0] sm:$0xff] %v2801_v26  ;;  %v2803_v31 = vpop.f32.mrb[29].mxu1  ;;  %v3929_v26 = vld [vmem:[#allocation2 + $0x1a8] sm:$0xf0] }
 0x386   :  { %3227 = vst [vmem:[#allocation2 + $0xb8] sm:$0xff] %v2803_v31  ;;  %v3960_v31 = vrot.slane %v3928_v39, 4  ;;  %v3961_v50 = vrot.slane %v3929_v26, 4 }
 0x387   :  { %4072 = vrot.lane.b32.xlu1 %v4054_v56, %s6267_s23  ;;  %v7676_v56 = vpop.permute.xlu0 %4135 }
 0x388   :  { %v2807_v58 = vpop.f32.mrb[30].mxu1  ;;  %v3306_v54 = vld [vmem:[#allocation2 + $0x30] sm:$0xf0] }
 0x389   :  { %v3307_v37 = vld [vmem:[#allocation2 + $0x38] sm:$0xf0]  ;;  %3242 = vst [vmem:[#allocation2 + $0x130] sm:$0xff] %v2807_v58  ;;  %v2809_v51 = vpop.f32.mrb[31].mxu1  ;;  %v3338_v3 = vrot.slane %v3306_v54, 4 }
 0x38a   :  { %v3339_v62 = vrot.slane %v3307_v37, 4  ;;  %3243 = vst [vmem:[#allocation2 + $0x138] sm:$0xff] %v2809_v51  ;;  %v4056_v54 = vld [vmem:[#allocation2 + $0x220] sm:$0xf] }
 0x38b   :  { %3372 = vrot.lane.b32.xlu1 %v3336_v13, %s6282_s12 }
 0x38c   :  { %3378 = vrot.lane.b32.xlu0 %v3339_v62, %s6282_s12  ;;  %v2813_v40 = vpop.f32.mrb[32].mxu1  ;;  %v3434_v12 = vld [vmem:[#allocation2 + $0xb0] sm:$0xf]  ;;  %v3514_v38 = vld [vmem:[#allocation2 + $0xb0] sm:$0xf0] }
 0x38d   :  { %3258 = vst [vmem:[#allocation2 + $0x1b0] sm:$0xff] %v2813_v40  ;;  %v2815_v60 = vpop.f32.mrb[33].mxu1  ;;  %v3435_v53 = vld [vmem:[#allocation2 + $0xb8] sm:$0xf]  ;;  %v3515_v8 = vld [vmem:[#allocation2 + $0xb8] sm:$0xf0] }
 0x38e   :  { %3259 = vst [vmem:[#allocation2 + $0x1b8] sm:$0xff] %v2815_v60  ;;  %v3547_v46 = vrot.slane %v3515_v8, 4  ;;  %v3546_v32 = vrot.slane %v3514_v38, 4 }
 0x38f   :  { %3376 = vrot.lane.b32.xlu1 %v3338_v3, %s6282_s12  ;;  %v4057_v3 = vld [vmem:[#allocation2 + $0x228] sm:$0xf] }
 0x390   :  { %3454 = vrot.lane.b32.xlu0 %v3433_v61, %s6270_s26  ;;  %v2819_v9 = vpop.f32.mrb[34].mxu1  ;;  %v3642_v10 = vld [vmem:[#allocation2 + $0x130] sm:$0xf]  ;;  %v3722_v34 = vld [vmem:[#allocation2 + $0x130] sm:$0xf0] }
 0x391   :  { %3274 = vst [vmem:[#allocation2 + $0x230] sm:$0xf] %v2819_v9  ;;  %v2821_v43 = vpop.f32.mrb[35].mxu1  ;;  %v3643_v15 = vld [vmem:[#allocation2 + $0x138] sm:$0xf]  ;;  %v3754_v25 = vrot.slane %v3722_v34, 4 }
 0x392   :  { %3275 = vst [vmem:[#allocation2 + $0x238] sm:$0xf] %v2821_v43  ;;  %v3723_v45 = vld [vmem:[#allocation2 + $0x138] sm:$0xf0] }
 0x393   :  { %3452 = vrot.lane.b32.xlu1 %v3432_v20, %s6270_s26  ;;  %v3755_v36 = vrot.slane %v3723_v45, 4 }
 0x394   :  { %3458 = vrot.lane.b32.xlu0 %v3435_v53, %s6270_s26  ;;  %v3850_v42 = vld [vmem:[#allocation2 + $0x1b0] sm:$0xf]  ;;  %v3930_v58 = vld [vmem:[#allocation2 + $0x1b0] sm:$0xf0] }
 0x395   :  { %v3851_v51 = vld [vmem:[#allocation2 + $0x1b8] sm:$0xf]  ;;  %v3962_v62 = vrot.slane %v3930_v58, 4  ;;  %v3931_v60 = vld [vmem:[#allocation2 + $0x1b8] sm:$0xf0] }
 0x396   :  { %v3963_v20 = vrot.slane %v3931_v60, 4 }
 0x397   :  { %3456 = vrot.lane.b32.xlu1 %v3434_v12, %s6270_s26 }
 0x398   :  { %3582 = vrot.lane.b32.xlu0 %v3545_v21, %s6284_s14  ;;  %v4058_v55 = vld [vmem:[#allocation2 + $0x230] sm:$0xf] }
 0x39b   :  { %3580 = vrot.lane.b32.xlu1 %v3544_v14, %s6284_s14 }
 0x39c   :  { %3586 = vrot.lane.b32.xlu0 %v3547_v46, %s6284_s14 }
 0x39f   :  { %3584 = vrot.lane.b32.xlu1 %v3546_v32, %s6284_s14  ;;  %v4059_v32 = vld [vmem:[#allocation2 + $0x238] sm:$0xf] }
 0x3a0   :  { %3662 = vrot.lane.b32.xlu0 %v3641_v41, %s6283_s13  ;;  %v2890_v23 = vpop.f32.mrb[36].mxu0 }
 0x3a1   :  { %3212 = vst [vmem:[#allocation2 + $0x40] sm:$0xff] %v2890_v23  ;;  %v2892_v22 = vpop.f32.mrb[37].mxu0 }
 0x3a2   :  { %3213 = vst [vmem:[#allocation2 + $0x48] sm:$0xff] %v2892_v22 }
 0x3a3   :  { %3660 = vrot.lane.b32.xlu1 %v3640_v24, %s6283_s13  ;;  %v7680_v13 = vpop.permute.xlu1 %3364 }
 0x3a4   :  { %3666 = vrot.lane.b32.xlu0 %v3643_v15, %s6283_s13  ;;  %v2896_v28 = vpop.f32.mrb[38].mxu0  ;;  %v7682_v37 = vpop.permute.xlu0 %3366 }
 0x3a5   :  { %3228 = vst [vmem:[#allocation2 + $0xc0] sm:$0xff] %v2896_v28  ;;  %v2898_v18 = vpop.f32.mrb[39].mxu0 }
 0x3a6   :  { %3229 = vst [vmem:[#allocation2 + $0xc8] sm:$0xff] %v2898_v18 }
 0x3a7   :  { %3664 = vrot.lane.b32.xlu1 %v3642_v10, %s6283_s13 }
 0x3a8   :  { %3788 = vrot.lane.b32.xlu0 %v3752_v5, %s6269_s25  ;;  %v2902_v27 = vpop.f32.mrb[40].mxu0  ;;  %v3308_v41 = vld [vmem:[#allocation2 + $0x40] sm:$0xf0] }
 0x3a9   :  { %3244 = vst [vmem:[#allocation2 + $0x140] sm:$0xff] %v2902_v27  ;;  %v2904_v30 = vpop.f32.mrb[41].mxu0  ;;  %v3309_v12 = vld [vmem:[#allocation2 + $0x48] sm:$0xf0]  ;;  %v3340_v22 = vrot.slane %v3308_v41, 4 }
 0x3aa   :  { %3245 = vst [vmem:[#allocation2 + $0x148] sm:$0xff] %v2904_v30  ;;  %v3341_v59 = vrot.slane %v3309_v12, 4 }
 0x3ab   :  { %3790 = vrot.lane.b32.xlu1 %v3753_v35, %s6269_s25 }
 0x3ac   :  { %3792 = vrot.lane.b32.xlu0 %v3754_v25, %s6269_s25  ;;  %v2908_v57 = vpop.f32.mrb[42].mxu0  ;;  %v3516_v26 = vld [vmem:[#allocation2 + $0xc0] sm:$0xf0] }
 0x3ad   :  { %3260 = vst [vmem:[#allocation2 + $0x1c0] sm:$0xff] %v2908_v57  ;;  %v2910_v33 = vpop.f32.mrb[43].mxu0  ;;  %v3437_v27 = vld [vmem:[#allocation2 + $0xc8] sm:$0xf]  ;;  %v3548_v58 = vrot.slane %v3516_v26, 4 }
 0x3ae   :  { %3261 = vst [vmem:[#allocation2 + $0x1c8] sm:$0xff] %v2910_v33  ;;  %v3436_v33 = vld [vmem:[#allocation2 + $0xc0] sm:$0xf] }
 0x3af   :  { %3794 = vrot.lane.b32.xlu1 %v3755_v36, %s6269_s25 }
 0x3b0   :  { %3868 = vrot.lane.b32.xlu0 %v3848_v63, %s6285_s15  ;;  %v2914_v19 = vpop.f32.mrb[44].mxu0 }
 0x3b1   :  { %3276 = vst [vmem:[#allocation2 + $0x240] sm:$0xf] %v2914_v19  ;;  %v2916_v47 = vpop.f32.mrb[45].mxu0  ;;  %v3517_v19 = vld [vmem:[#allocation2 + $0xc8] sm:$0xf0] }
 0x3b2   :  { %3277 = vst [vmem:[#allocation2 + $0x248] sm:$0xf] %v2916_v47  ;;  %v3549_v39 = vrot.slane %v3517_v19, 4 }
 0x3b3   :  { %3870 = vrot.lane.b32.xlu1 %v3849_v11, %s6285_s15 }
 0x3b4   :  { %3872 = vrot.lane.b32.xlu0 %v3850_v42, %s6285_s15 }
 0x3b7   :  { %3996 = vrot.lane.b32.xlu1 %v3960_v31, %s6286_s6 }
 0x3b8   :  { %3998 = vrot.lane.b32.xlu0 %v3961_v50, %s6286_s6 }
 0x3bb   :  { %3874 = vrot.lane.b32.xlu1 %v3851_v51, %s6285_s15 }
 0x3bc   :  { %4000 = vrot.lane.b32.xlu0 %v3962_v62, %s6286_s6 }
 0x3bd   :  { %v7686_v40 = vpop.permute.xlu1 %3368 }
 0x3be   :  { %v7688_v61 = vpop.permute.xlu0 %3370  ;;  %v3409_v19 = vsel %vm667_vm13, %v7682_v37, %v7686_v40 }
 0x3bf   :  { %4076 = vrot.lane.b32.xlu1 %v4056_v54, %s6267_s23 }
 0x3c0   :  { %v2985_v9 = vpop.f32.mrb[36].mxu1  ;;  %4078 = vrot.lane.b32.xlu0 %v4057_v3, %s6267_s23 }
 0x3c1   :  { %3214 = vst [vmem:[#allocation2 + $0x50] sm:$0xff] %v2985_v9  ;;  %v2987_v53 = vpop.f32.mrb[37].mxu1  ;;  %v7692_v43 = vpop.permute.xlu1 %3444  ;;  %v3644_v9 = vld [vmem:[#allocation2 + $0x140] sm:$0xf] }
 0x3c2   :  { %3215 = vst [vmem:[#allocation2 + $0x58] sm:$0xff] %v2987_v53  ;;  %v7694_v21 = vpop.permute.xlu0 %3446 }
 0x3c3   :  { %4002 = vrot.lane.b32.xlu1 %v3963_v20, %s6286_s6 }
 0x3c4   :  { %4080 = vrot.lane.b32.xlu0 %v4058_v55, %s6267_s23  ;;  %v2991_v8 = vpop.f32.mrb[38].mxu1 }
 0x3c5   :  { %v7698_v14 = vpop.permute.xlu1 %3448  ;;  %3230 = vst [vmem:[#allocation2 + $0xd0] sm:$0xff] %v2991_v8  ;;  %v2993_v46 = vpop.f32.mrb[39].mxu1 }
 0x3c6   :  { %v7700_v38 = vpop.permute.xlu0 %3450  ;;  %3231 = vst [vmem:[#allocation2 + $0xd8] sm:$0xff] %v2993_v46 }
 0x3c7   :  { %4082 = vrot.lane.b32.xlu1 %v4059_v32, %s6267_s23  ;;  %v3724_v32 = vld [vmem:[#allocation2 + $0x140] sm:$0xf0] }
 0x3c8   :  { %3382 = vrot.lane.b32.xlu0 %v3341_v59, %s6282_s12  ;;  %v2997_v23 = vpop.f32.mrb[40].mxu1  ;;  %v3310_v10 = vld [vmem:[#allocation2 + $0x50] sm:$0xf0]  ;;  %v3645_v59 = vld [vmem:[#allocation2 + $0x148] sm:$0xf] }
 0x3c9   :  { %v7704_v15 = vpop.permute.xlu1 %3572  ;;  %v3311_v24 = vld [vmem:[#allocation2 + $0x58] sm:$0xf0]  ;;  %3246 = vst [vmem:[#allocation2 + $0x150] sm:$0xff] %v2997_v23  ;;  %v2999_v29 = vpop.f32.mrb[41].mxu1  ;;  %v3342_v34 = vrot.slane %v3310_v10, 4 }
 0x3ca   :  { %v7706_v28 = vpop.permute.xlu0 %3574  ;;  %v3343_v18 = vrot.slane %v3311_v24, 4  ;;  %3247 = vst [vmem:[#allocation2 + $0x158] sm:$0xff] %v2999_v29  ;;  %v3756_v29 = vrot.slane %v3724_v32, 4  ;;  %v3725_v10 = vld [vmem:[#allocation2 + $0x148] sm:$0xf0] }
 0x3cb   :  { %3380 = vrot.lane.b32.xlu1 %v3340_v22, %s6282_s12  ;;  %v3410_v22 = vsel %vm667_vm13, %v7680_v13, %v7682_v37  ;;  %v3285_v37 = vld [vmem:[#allocation2 + $0x8] sm:$0xf] }
 0x3cc   :  { %3386 = vrot.lane.b32.xlu0 %v3343_v18, %s6282_s12  ;;  %v3003_v5 = vpop.f32.mrb[42].mxu1  ;;  %v3438_v11 = vld [vmem:[#allocation2 + $0xd0] sm:$0xf]  ;;  %v3518_v54 = vld [vmem:[#allocation2 + $0xd0] sm:$0xf0] }
 0x3cd   :  { %v7710_v52 = vpop.permute.xlu1 %3576  ;;  %3262 = vst [vmem:[#allocation2 + $0x1d0] sm:$0xff] %v3003_v5  ;;  %v3005_v35 = vpop.f32.mrb[43].mxu1  ;;  %v3439_v57 = vld [vmem:[#allocation2 + $0xd8] sm:$0xf]  ;;  %v3519_v31 = vld [vmem:[#allocation2 + $0xd8] sm:$0xf0] }
 0x3ce   :  { %v7712_v30 = vpop.permute.xlu0 %3578  ;;  %3263 = vst [vmem:[#allocation2 + $0x1d8] sm:$0xff] %v3005_v35  ;;  %v3551_v62 = vrot.slane %v3519_v31, 4  ;;  %v3550_v60 = vrot.slane %v3518_v54, 4  ;;  %v3490_v35 = vsel %vm780_vm10, %v7692_v43, %v7694_v21 }
 0x3cf   :  { %3384 = vrot.lane.b32.xlu1 %v3342_v34, %s6282_s12 }
 0x3d0   :  { %3462 = vrot.lane.b32.xlu0 %v3437_v27, %s6270_s26  ;;  %v3009_v25 = vpop.f32.mrb[44].mxu1  ;;  %v3646_v55 = vld [vmem:[#allocation2 + $0x150] sm:$0xf]  ;;  %v3726_v34 = vld [vmem:[#allocation2 + $0x150] sm:$0xf0] }
 0x3d1   :  { %v7716_v45 = vpop.permute.xlu1 %3652  ;;  %3278 = vst [vmem:[#allocation2 + $0x250] sm:$0xf] %v3009_v25  ;;  %v3011_v36 = vpop.f32.mrb[45].mxu1  ;;  %v3647_v24 = vld [vmem:[#allocation2 + $0x158] sm:$0xf]  ;;  %v3758_v26 = vrot.slane %v3726_v34, 4 }
 0x3d2   :  { %v7718_v63 = vpop.permute.xlu0 %3654  ;;  %3279 = vst [vmem:[#allocation2 + $0x258] sm:$0xf] %v3011_v36  ;;  %v3284_v27 = vld [vmem:[#allocation2] sm:$0xf]  ;;  %v3757_v36 = vrot.slane %v3725_v10, 4 }
 0x3d3   :  { %3460 = vrot.lane.b32.xlu1 %v3436_v33, %s6270_s26  ;;  %v3412_v25 = vadd.f32 %v3410_v22, %v3284_v27  ;;  %v3852_v22 = vld [vmem:[#allocation2 + $0x1c0] sm:$0xf] }
 0x3d4   :  { %3466 = vrot.lane.b32.xlu0 %v3439_v57, %s6270_s26 }
 0x3d5   :  { %v7722_v42 = vpop.permute.xlu1 %3656  ;;  %v3492_v54 = vadd.f32 %v3490_v35, %v3412_v25 }
 0x3d6   :  { %v7724_v47 = vpop.permute.xlu0 %3658 }
 0x3d7   :  { %3464 = vrot.lane.b32.xlu1 %v3438_v11, %s6270_s26  ;;  %v3408_v11 = vsel %vm667_vm13, %v7686_v40, %v7688_v61  ;;  %v3489_v40 = vsel %vm780_vm10, %v7694_v21, %v7698_v14 }
 0x3d8   :  { %3590 = vrot.lane.b32.xlu0 %v3549_v39, %s6284_s14  ;;  %v3618_v39 = vsel %vm909_vm14, %v7704_v15, %v7706_v28 }
 0x3d9   :  { %v7728_v50 = vpop.permute.xlu1 %3782 }
 0x3da   :  { %v7730_v51 = vpop.permute.xlu0 %3780 }
 0x3db   :  { %3588 = vrot.lane.b32.xlu1 %v3548_v58, %s6284_s14  ;;  %v3727_v58 = vld [vmem:[#allocation2 + $0x158] sm:$0xf0] }
 0x3dc   :  { %3594 = vrot.lane.b32.xlu0 %v3551_v62, %s6284_s14 }
 0x3dd   :  { %v7734_v3 = vpop.permute.xlu1 %3786 }
 0x3de   :  { %v7736_v53 = vpop.permute.xlu0 %3784 }
 0x3df   :  { %3592 = vrot.lane.b32.xlu1 %v3550_v60, %s6284_s14  ;;  %v3286_v60 = vld [vmem:[#allocation2 + $0x10] sm:$0xf] }
 0x3e0   :  { %3668 = vrot.lane.b32.xlu0 %v3644_v9, %s6283_s13  ;;  %v3488_v9 = vsel %vm780_vm10, %v7698_v14, %v7700_v38  ;;  %v3617_v14 = vsel %vm909_vm14, %v7706_v28, %v7710_v52  ;;  %v3697_v28 = vsel %vm1022_vm11, %v7718_v63, %v7722_v42 }
 0x3e1   :  { %v7740_v20 = vpop.permute.xlu1 %3860  ;;  %v3080_v12 = vpop.f32.mrb[46].mxu0 }
 0x3e2   :  { %v7742_v8 = vpop.permute.xlu0 %3864  ;;  %3216 = vst [vmem:[#allocation2 + $0x60] sm:$0xff] %v3080_v12  ;;  %v3082_v46 = vpop.f32.mrb[47].mxu0  ;;  %v3413_v12 = vadd.f32 %v3409_v19, %v3285_v37 }
 0x3e3   :  { %3670 = vrot.lane.b32.xlu1 %v3645_v59, %s6283_s13  ;;  %3217 = vst [vmem:[#allocation2 + $0x68] sm:$0xff] %v3082_v46  ;;  %v3414_v59 = vadd.f32 %v3408_v11, %v3286_v60  ;;  %v3620_v46 = vadd.f32 %v3618_v39, %v3492_v54  ;;  %v3853_v54 = vld [vmem:[#allocation2 + $0x1c8] sm:$0xf] }
 0x3e4   :  { %3672 = vrot.lane.b32.xlu0 %v3646_v55, %s6283_s13  ;;  %v3698_v55 = vsel %vm1022_vm11, %v7716_v45, %v7718_v63  ;;  %v3493_v34 = vadd.f32 %v3489_v40, %v3413_v12  ;;  %v3932_v12 = vld [vmem:[#allocation2 + $0x1c0] sm:$0xf0] }
 0x3e5   :  { %v7746_v41 = vpop.permute.xlu1 %3862  ;;  %v3086_v23 = vpop.f32.mrb[48].mxu0  ;;  %v3494_v27 = vadd.f32 %v3488_v9, %v3414_v59  ;;  %v3700_v35 = vadd.f32 %v3698_v55, %v3620_v46 }
 0x3e6   :  { %v7752_v18 = vpop.permute.xlu0 %3990  ;;  %3232 = vst [vmem:[#allocation2 + $0xe0] sm:$0xff] %v3086_v23  ;;  %v3088_v5 = vpop.f32.mrb[49].mxu0  ;;  %v3759_v23 = vrot.slane %v3727_v58, 4  ;;  %v3906_v25 = vsel %vm1264_vm12, %v7740_v20, %v7746_v41  ;;  %v3825_v58 = vsel %vm1135_vm0, %v7728_v50, %v7736_v53 }
 0x3e7   :  { %3674 = vrot.lane.b32.xlu1 %v3647_v24, %s6283_s13  ;;  %3233 = vst [vmem:[#allocation2 + $0xe8] sm:$0xff] %v3088_v5  ;;  %v3616_v24 = vsel %vm909_vm14, %v7710_v52, %v7712_v30  ;;  %v3696_v52 = vsel %vm1022_vm11, %v7722_v42, %v7724_v47  ;;  %v3824_v42 = vsel %vm1135_vm0, %v7736_v53, %v7734_v3 }
 0x3e8   :  { %3796 = vrot.lane.b32.xlu0 %v3756_v29, %s6269_s25  ;;  %v3826_v29 = vsel %vm1135_vm0, %v7730_v51, %v7728_v50  ;;  %v3622_v19 = vadd.f32 %v3616_v24, %v3494_v27  ;;  %v3905_v50 = vsel %vm1264_vm12, %v7746_v41, %v7742_v8  ;;  %v3964_v27 = vrot.slane %v3932_v12, 4 }
 0x3e9   :  { %v7760_v57 = vpop.permute.xlu1 %3866  ;;  %v3092_v33 = vpop.f32.mrb[50].mxu0  ;;  %v3828_v11 = vadd.f32 %v3826_v29, %v3700_v35  ;;  %v3933_v35 = vld [vmem:[#allocation2 + $0x1c8] sm:$0xf0] }
 0x3ea   :  { %v7774_v31 = vpop.permute.xlu0 %3994  ;;  %3248 = vst [vmem:[#allocation2 + $0x160] sm:$0xff] %v3092_v33  ;;  %v3094_v62 = vpop.f32.mrb[51].mxu0  ;;  %v3621_v33 = vadd.f32 %v3617_v14, %v3493_v34  ;;  %v3702_v9 = vadd.f32 %v3696_v52, %v3622_v19  ;;  %v3904_v53 = vsel %vm1264_vm12, %v7742_v8, %v7760_v57  ;;  %v7844_v14 = vld [vmem:[#allocation9 + $0x1] ss:$2 sm:$0xff] }
 0x3eb   :  { %3798 = vrot.lane.b32.xlu1 %v3757_v36, %s6269_s25  ;;  %3249 = vst [vmem:[#allocation2 + $0x168] sm:$0xff] %v3094_v62  ;;  %v3908_v55 = vadd.f32 %v3906_v25, %v3828_v11  ;;  %v3855_v34 = vld [vmem:[#allocation2 + $0x1d8] sm:$0xf] }
 0x3ec   :  { %3800 = vrot.lane.b32.xlu0 %v3758_v26, %s6269_s25  ;;  %v3854_v26 = vld [vmem:[#allocation2 + $0x1d0] sm:$0xf]  ;;  %v3701_v40 = vadd.f32 %v3697_v28, %v3621_v33  ;;  %v4175_v33 = vrot.slane %v7844_v14, %v7398_v49 }
 0x3ed   :  { %v7790_v32 = vpop.permute.xlu1 %3988  ;;  %v3098_v21 = vpop.f32.mrb[52].mxu0 }
 0x3ee   :  { %v7804_v10 = vpop.permute.xlu0 %4070  ;;  %3264 = vst [vmem:[#allocation2 + $0x1e0] sm:$0xff] %v3098_v21  ;;  %v3100_v5 = vpop.f32.mrb[53].mxu0  ;;  %v4034_v62 = vsel %vm1377_vm1, %v7790_v32, %v7752_v18 }
 0x3ef   :  { %3802 = vrot.lane.b32.xlu1 %v3759_v23, %s6269_s25  ;;  %3265 = vst [vmem:[#allocation2 + $0x1e8] sm:$0xff] %v3100_v5  ;;  %v3829_v23 = vadd.f32 %v3825_v58, %v3701_v40  ;;  %v4036_v21 = vadd.f32 %v4034_v62, %v3908_v55  ;;  %v3935_v40 = vld [vmem:[#allocation2 + $0x1d8] sm:$0xf0] }
 0x3f0   :  { %3876 = vrot.lane.b32.xlu0 %v3852_v22, %s6285_s15  ;;  %v3175_v36 = vpop.f32.mrb[46].mxu1  ;;  %v3830_v22 = vadd.f32 %v3824_v42, %v3702_v9  ;;  %v3965_v42 = vrot.slane %v3933_v35, 4 }
 0x3f1   :  { %v3993_v39 = vpop.permute.xlu1 %3992  ;;  %3218 = vst [vmem:[#allocation2 + $0x70] sm:$0xff] %v3175_v36  ;;  %v3177_v63 = vpop.f32.mrb[47].mxu1  ;;  %v3909_v28 = vadd.f32 %v3905_v50, %v3829_v23  ;;  %v3934_v36 = vld [vmem:[#allocation2 + $0x1d0] sm:$0xf0]  ;;  %v4183_v50 = vrot.slane %v7844_v14, %v7431_v48 }
 0x3f2   :  { %v7832_v37 = vpop.permute.xlu0 %4074  ;;  %3219 = vst [vmem:[#allocation2 + $0x78] sm:$0xff] %v3177_v63  ;;  %v3104_v60 = vpop.f32.mrb[54].mxu0  ;;  %v4032_v41 = vsel %vm1377_vm1, %v3993_v39, %v7774_v31  ;;  %v4033_v8 = vsel %vm1377_vm1, %v7752_v18, %v3993_v39  ;;  %v3910_v52 = vadd.f32 %v3904_v53, %v3830_v22 }
 0x3f3   :  { %3878 = vrot.lane.b32.xlu1 %v3853_v54, %s6285_s15  ;;  %3280 = vst [vmem:[#allocation2 + $0x260] sm:$0xf] %v3104_v60  ;;  %v3106_v59 = vpop.f32.mrb[55].mxu0  ;;  %v4037_v11 = vadd.f32 %v4033_v8, %v3909_v28  ;;  %v3966_v60 = vrot.slane %v3934_v36, 4  ;;  %v3313_v36 = vld [vmem:[#allocation2 + $0x68] sm:$0xf0] }
 0x3f4   :  { %3880 = vrot.lane.b32.xlu0 %v3854_v26, %s6285_s15  ;;  %v3181_v46 = vpop.f32.mrb[48].mxu1  ;;  %3281 = vst [vmem:[#allocation2 + $0x268] sm:$0xf] %v3106_v59  ;;  %v4038_v39 = vadd.f32 %v4032_v41, %v3910_v52  ;;  %v4179_v59 = vrot.slane %v7844_v14, %v7403_v0 }
 0x3f5   :  { %v7846_v24 = vpop.permute.xlu1 %4068  ;;  %3234 = vst [vmem:[#allocation2 + $0xf0] sm:$0xff] %v3181_v46  ;;  %v3183_v29 = vpop.f32.mrb[49].mxu1 }
 0x3f6   :  { %9125 = vst [vmem:[#allocation16_spill] sm:$0xff] %v7846_v24  ;;  %v4114_v5 = vsel %vm1490_vm15, %v7846_v24, %v7804_v10  ;;  %3235 = vst [vmem:[#allocation2 + $0xf8] sm:$0xff] %v3183_v29  ;;  %v7862_v18 = vpop.permute.xlu0 %3374  ;;  %v4060_v29 = vld [vmem:[#allocation2 + $0x240] sm:$0xf] }
 0x3f7   :  { %v4116_v25 = vadd.f32 %v4114_v5, %v4036_v21  ;;  %3882 = vrot.lane.b32.xlu1 %v3855_v34, %s6285_s15  ;;  %v3967_v21 = vrot.slane %v3935_v40, 4 }
 0x3f8   :  { %4004 = vrot.lane.b32.xlu0 %v3964_v27, %s6286_s6  ;;  %v3187_v19 = vpop.f32.mrb[50].mxu1 }
 0x3f9   :  { %v4138_v26 = vadd.f32 %v7676_v56, %v4116_v25  ;;  %v4073_v63 = vpop.permute.xlu1 %4072  ;;  %3250 = vst [vmem:[#allocation2 + $0x170] sm:$0xff] %v3187_v19  ;;  %v3189_v58 = vpop.f32.mrb[51].mxu1  ;;  %v4062_v25 = vld [vmem:[#allocation2 + $0x250] sm:$0xf] }
 0x3fa   :  { %v4112_v62 = vsel %vm1490_vm15, %v4073_v63, %v7832_v37  ;;  %v4113_v54 = vsel %vm1490_vm15, %v7804_v10, %v4073_v63  ;;  %3251 = vst [vmem:[#allocation2 + $0x178] sm:$0xff] %v3189_v58  ;;  %v3315_v63 = vld [vmem:[#allocation2 + $0x78] sm:$0xf0]  ;;  %v4063_v58 = vld [vmem:[#allocation2 + $0x258] sm:$0xf] }
 0x3fb   :  { %v4154_v9 = vmax.f32 %v4138_v26, 0.0  ;;  %v4117_v55 = vadd.f32 %v4113_v54, %v4037_v11  ;;  %v4118_v12 = vadd.f32 %v4112_v62, %v4038_v39  ;;  %4006 = vrot.lane.b32.xlu1 %v3965_v42, %s6286_s6  ;;  %v4061_v11 = vld [vmem:[#allocation2 + $0x248] sm:$0xf]  ;;  %v3345_v39 = vrot.slane %v3313_v36, 4  ;;  %v3312_v62 = vld [vmem:[#allocation2 + $0x60] sm:$0xf0] }
 0x3fc   :  { %4008 = vrot.lane.b32.xlu0 %v3966_v60, %s6286_s6  ;;  %v3193_v53 = vpop.f32.mrb[52].mxu1  ;;  %v3347_v54 = vrot.slane %v3315_v63, 4  ;;  %v3344_v40 = vrot.slane %v3312_v62, 4  ;;  %v3520_v36 = vld [vmem:[#allocation2 + $0xe0] sm:$0xf0] }
 0x3fd   :  { %v7877_v46 = vmul.f32 %v4175_v33, %v4154_v9  ;;  %v4139_v10 = vadd.f32 %v7676_v56, %v4117_v55  ;;  %v4140_v23 = vadd.f32 %v7676_v56, %v4118_v12  ;;  %v7881_v22 = vpop.permute.xlu1 %3372  ;;  %3266 = vst [vmem:[#allocation2 + $0x1f0] sm:$0xff] %v3193_v53  ;;  %v3195_v41 = vpop.f32.mrb[53].mxu1  ;;  %v3314_v55 = vld [vmem:[#allocation2 + $0x70] sm:$0xf0] }
 0x3fe   :  { %v7883_v8 = vpop.permute.xlu0 %3378  ;;  %3267 = vst [vmem:[#allocation2 + $0x1f8] sm:$0xff] %v3195_v41  ;;  %v3521_v41 = vld [vmem:[#allocation2 + $0xe8] sm:$0xf0]  ;;  %v3522_v62 = vld [vmem:[#allocation2 + $0xf0] sm:$0xf0] }
 0x3ff   :  { %4268 = vst [vmem:[#allocation2] sm:$0xf] %v7877_v46  ;;  %v4155_v5 = vmax.f32 %v4139_v10, 0.0  ;;  %v4156_v34 = vmax.f32 %v4140_v23, 0.0  ;;  %4010 = vrot.lane.b32.xlu1 %v3967_v21, %s6286_s6  ;;  %v3443_v23 = vld [vmem:[#allocation2 + $0xf8] sm:$0xf] }
 0x400   :  { %4084 = vrot.lane.b32.xlu0 %v4060_v29, %s6267_s23  ;;  %v3199_v27 = vpop.f32.mrb[54].mxu1  ;;  %v3440_v29 = vld [vmem:[#allocation2 + $0xe0] sm:$0xf] }
 0x401   :  { %v7888_v35 = vmul.f32 %v4179_v59, %v4155_v5  ;;  %v7890_v28 = vmul.f32 %v4183_v50, %v4156_v34  ;;  %v7892_v52 = vpop.permute.xlu1 %3376  ;;  %3282 = vst [vmem:[#allocation2 + $0x270] sm:$0xf] %v3199_v27  ;;  %v3201_v33 = vpop.f32.mrb[55].mxu1  ;;  %v3346_v59 = vrot.slane %v3314_v55, 4  ;;  %v3441_v50 = vld [vmem:[#allocation2 + $0xe8] sm:$0xf] }
 0x402   :  { %v7894_v19 = vpop.permute.xlu0 %3454  ;;  %3283 = vst [vmem:[#allocation2 + $0x278] sm:$0xf] %v3201_v33  ;;  %v3442_v27 = vld [vmem:[#allocation2 + $0xf0] sm:$0xf]  ;;  %v3523_v33 = vld [vmem:[#allocation2 + $0xf8] sm:$0xf0] }
 0x403   :  { %4269 = vst [vmem:[#allocation2 + $0x8] sm:$0xf] %v7888_v35  ;;  %4270 = vst [vmem:[#allocation2 + $0x10] sm:$0xf] %v7890_v28  ;;  %4086 = vrot.lane.b32.xlu1 %v4061_v11, %s6267_s23  ;;  %v3648_v55 = vld [vmem:[#allocation2 + $0x160] sm:$0xf] }
 0x404   :  { %4088 = vrot.lane.b32.xlu0 %v4062_v25, %s6267_s23  ;;  %v3553_v25 = vrot.slane %v3521_v41, 4  ;;  %v3651_v16 = vld [vmem:[#allocation2 + $0x178] sm:$0xf] }
 0x405   :  { %v3453_v26 = vpop.permute.xlu1 %3452 }
 0x406   :  { %v7900_v42 = vpop.permute.xlu0 %3458 }
 0x407   :  { %4090 = vrot.lane.b32.xlu1 %v4063_v58, %s6267_s23  ;;  %v3555_v58 = vrot.slane %v3523_v33, 4  ;;  %v3287_v33 = vld [vmem:[#allocation2 + $0x18] sm:$0xf] }
 0x408   :  { %3390 = vrot.lane.b32.xlu0 %v3345_v39, %s6282_s12  ;;  %v3552_v39 = vrot.slane %v3520_v36, 4  ;;  %v3728_v36 = vld [vmem:[#allocation2 + $0x160] sm:$0xf0] }
 0x409   :  { %v7904_v60 = vpop.permute.xlu1 %3456  ;;  %v3760_v24 = vrot.slane %v3728_v36, 4 }
 0x40a   :  { %v7906_v9 = vpop.permute.xlu0 %3582 }
 0x40b   :  { %3388 = vrot.lane.b32.xlu1 %v3344_v40, %s6282_s12  ;;  %v3554_v40 = vrot.slane %v3522_v62, 4 }
 0x40c   :  { %3394 = vrot.lane.b32.xlu0 %v3347_v54, %s6282_s12 }
 0x40d   :  { %v3581_v12 = vpop.permute.xlu1 %3580 }
 0x40e   :  { %v7910_v53 = vpop.permute.xlu0 %3586 }
 0x40f   :  { %3392 = vrot.lane.b32.xlu1 %v3346_v59, %s6282_s12 }
 0x410   :  { %3470 = vrot.lane.b32.xlu0 %v3441_v50, %s6270_s26 }
 0x411   :  { %v7914_v10 = vpop.permute.xlu1 %3584 }
 0x412   :  { %v7916_v21 = vpop.permute.xlu0 %3662 }
 0x413   :  { %3468 = vrot.lane.b32.xlu1 %v3440_v29, %s6270_s26  ;;  %v3407_v29 = vsel %vm667_vm13, %v7688_v61, %v7881_v22  ;;  %v3486_v61 = vsel %vm780_vm10, %v3453_v26, %v7894_v19 }
 0x414   :  { %3474 = vrot.lane.b32.xlu0 %v3443_v23, %s6270_s26  ;;  %v3650_v23 = vld [vmem:[#allocation2 + $0x170] sm:$0xf]  ;;  %v3415_v62 = vadd.f32 %v3407_v29, %v3287_v33  ;;  %v3731_v33 = vld [vmem:[#allocation2 + $0x178] sm:$0xf0] }
 0x415   :  { %v3661_v5 = vpop.permute.xlu1 %3660 }
 0x416   :  { %v7920_v34 = vpop.permute.xlu0 %3666 }
 0x417   :  { %3472 = vrot.lane.b32.xlu1 %v3442_v27, %s6270_s26  ;;  %v3649_v27 = vld [vmem:[#allocation2 + $0x168] sm:$0xf] }
 0x418   :  { %3598 = vrot.lane.b32.xlu0 %v3553_v25, %s6284_s14  ;;  %v3406_v25 = vsel %vm667_vm13, %v7881_v22, %v7862_v18  ;;  %v3615_v22 = vsel %vm909_vm14, %v7712_v30, %v3581_v12  ;;  %v3695_v30 = vsel %vm1022_vm11, %v7724_v47, %v3661_v5  ;;  %v3404_v47 = vsel %vm667_vm13, %v7892_v52, %v7883_v8 }
 0x419   :  { %v7924_v11 = vpop.permute.xlu1 %3664 }
 0x41a   :  { %v3789_v63 = vpop.permute.xlu0 %3788 }
 0x41b   :  { %3596 = vrot.lane.b32.xlu1 %v3552_v39, %s6284_s14  ;;  %v3487_v39 = vsel %vm780_vm10, %v7700_v38, %v3453_v26  ;;  %v3730_v38 = vld [vmem:[#allocation2 + $0x170] sm:$0xf0]  ;;  %v3614_v26 = vsel %vm909_vm14, %v3581_v12, %v7906_v9 }
 0x41c   :  { %3602 = vrot.lane.b32.xlu0 %v3555_v58, %s6284_s14  ;;  %v3288_v58 = vld [vmem:[#allocation2 + $0x20] sm:$0xf]  ;;  %v3495_v29 = vadd.f32 %v3487_v39, %v3415_v62  ;;  %v3762_v12 = vrot.slane %v3730_v38, 4  ;;  %v3290_v38 = vld [vmem:[#allocation2 + $0x30] sm:$0xf] }
 0x41d   :  { %v7928_v54 = vpop.permute.xlu1 %3790  ;;  %v3416_v1 = vadd.f32 %v3406_v25, %v3288_v58  ;;  %v3289_v58 = vld [vmem:[#allocation2 + $0x28] sm:$0xf] }
 0x41e   :  { %v7930_v59 = vpop.permute.xlu0 %3792  ;;  %v3623_v39 = vadd.f32 %v3615_v22, %v3495_v29  ;;  %v3822_v22 = vsel %vm1135_vm0, %v3789_v63, %v7928_v54 }
 0x41f   :  { %3600 = vrot.lane.b32.xlu1 %v3554_v40, %s6284_s14  ;;  %v3496_v25 = vadd.f32 %v3486_v61, %v3416_v1  ;;  %v3823_v61 = vsel %vm1135_vm0, %v7734_v3, %v3789_v63  ;;  %v3484_v3 = vsel %vm780_vm10, %v7904_v60, %v7900_v42  ;;  %v3693_v63 = vsel %vm1022_vm11, %v7916_v21, %v7924_v11 }
 0x420   :  { %3676 = vrot.lane.b32.xlu0 %v3648_v55, %s6283_s13  ;;  %v3729_v55 = vld [vmem:[#allocation2 + $0x168] sm:$0xf0] }
 0x421   :  { %v7934_v50 = vpop.permute.xlu1 %3794  ;;  %v3761_v36 = vrot.slane %v3729_v55, 4  ;;  %v3624_v62 = vadd.f32 %v3614_v26, %v3496_v25  ;;  %v3418_v26 = vadd.f32 %v3404_v47, %v3290_v38  ;;  %v3857_v38 = vld [vmem:[#allocation2 + $0x1e8] sm:$0xf] }
 0x422   :  { %v3869_v41 = vpop.permute.xlu0 %3868 }
 0x423   :  { %3678 = vrot.lane.b32.xlu1 %v3649_v27, %s6283_s13 }
 0x424   :  { %3680 = vrot.lane.b32.xlu0 %v3650_v23, %s6283_s13  ;;  %v3405_v23 = vsel %vm667_vm13, %v7862_v18, %v7892_v52  ;;  %v3485_v18 = vsel %vm780_vm10, %v7894_v19, %v7904_v60  ;;  %v3613_v19 = vsel %vm909_vm14, %v7906_v9, %v7914_v10  ;;  %v3763_v52 = vrot.slane %v3731_v33, 4  ;;  %v3856_v60 = vld [vmem:[#allocation2 + $0x1e0] sm:$0xf] }
 0x425   :  { %v3871_v40 = vpop.permute.xlu1 %3870  ;;  %v3903_v9 = vsel %vm1264_vm12, %v7760_v57, %v3869_v41  ;;  %v3612_v57 = vsel %vm909_vm14, %v7914_v10, %v7910_v53  ;;  %v3692_v10 = vsel %vm1022_vm11, %v7924_v11, %v7920_v34 }
 0x426   :  { %v7955_v27 = vpop.permute.xlu0 %3872 }
 0x427   :  { %3682 = vrot.lane.b32.xlu1 %v3651_v16, %s6283_s13  ;;  %v3694_v16 = vsel %vm1022_vm11, %v3661_v5, %v7916_v21  ;;  %v3703_v5 = vadd.f32 %v3695_v30, %v3623_v39  ;;  %v3902_v30 = vsel %vm1264_vm12, %v3869_v41, %v3871_v40  ;;  %v3498_v21 = vadd.f32 %v3484_v3, %v3418_v26 }
 0x428   :  { %3804 = vrot.lane.b32.xlu0 %v3760_v24, %s6269_s25  ;;  %v3417_v24 = vadd.f32 %v3405_v23, %v3289_v58  ;;  %v3704_v29 = vadd.f32 %v3694_v16, %v3624_v62  ;;  %v3821_v41 = vsel %vm1135_vm0, %v7928_v54, %v7930_v59  ;;  %v3901_v54 = vsel %vm1264_vm12, %v3871_v40, %v7955_v27 }
 0x429   :  { %v3997_v1 = vpop.permute.xlu1 %3996  ;;  %v3831_v25 = vadd.f32 %v3823_v61, %v3703_v5  ;;  %v3820_v5 = vsel %vm1135_vm0, %v7930_v59, %v7934_v50 }
 0x42a   :  { %v3999_v55 = vpop.permute.xlu0 %3998  ;;  %v3497_v23 = vadd.f32 %v3485_v18, %v3417_v24  ;;  %v3832_v58 = vadd.f32 %v3822_v22, %v3704_v29  ;;  %v4031_v18 = vsel %vm1377_vm1, %v7774_v31, %v3997_v1  ;;  %v3626_v24 = vadd.f32 %v3612_v57, %v3498_v21 }
 0x42b   :  { %3806 = vrot.lane.b32.xlu1 %v3761_v36, %s6269_s25  ;;  %v3911_v16 = vadd.f32 %v3903_v9, %v3831_v25  ;;  %v3936_v9 = vld [vmem:[#allocation2 + $0x1e0] sm:$0xf0] }
 0x42c   :  { %3808 = vrot.lane.b32.xlu0 %v3762_v12, %s6269_s25  ;;  %v3625_v33 = vadd.f32 %v3613_v19, %v3497_v23  ;;  %v4030_v12 = vsel %vm1377_vm1, %v3997_v1, %v3999_v55  ;;  %v3912_v31 = vadd.f32 %v3902_v30, %v3832_v58  ;;  %v3858_v19 = vld [vmem:[#allocation2 + $0x1f0] sm:$0xf]  ;;  %v3706_v3 = vadd.f32 %v3692_v10, %v3626_v24 }
 0x42d   :  { %v8005_v36 = vpop.permute.xlu1 %3874  ;;  %v4039_v62 = vadd.f32 %v4031_v18, %v3911_v16  ;;  %v4191_v30 = vrot.slane %v7844_v14, %v7468_v44  ;;  %v3859_v18 = vld [vmem:[#allocation2 + $0x1f8] sm:$0xf]  ;;  %v3968_v21 = vrot.slane %v3936_v9, 4 }
 0x42e   :  { %v4001_v39 = vpop.permute.xlu0 %4000  ;;  %v3705_v47 = vadd.f32 %v3693_v63, %v3625_v33  ;;  %v4040_v22 = vadd.f32 %v4030_v12, %v3912_v31  ;;  %v3900_v59 = vsel %vm1264_vm12, %v7955_v27, %v8005_v36  ;;  %v3834_v63 = vadd.f32 %v3820_v5, %v3706_v3 }
 0x42f   :  { %3810 = vrot.lane.b32.xlu1 %v3763_v52, %s6269_s25  ;;  %v4029_v40 = vsel %vm1377_vm1, %v3999_v55, %v4001_v39  ;;  %v4187_v55 = vrot.slane %v7844_v14, %v7438_v4 }
 0x430   :  { %3884 = vrot.lane.b32.xlu0 %v3856_v60, %s6285_s15  ;;  %v3833_v1 = vadd.f32 %v3821_v41, %v3705_v47  ;;  %v3937_v41 = vld [vmem:[#allocation2 + $0x1e8] sm:$0xf0]  ;;  %v3914_v16 = vadd.f32 %v3900_v59, %v3834_v63  ;;  %v3938_v47 = vld [vmem:[#allocation2 + $0x1f0] sm:$0xf0]  ;;  %v4064_v59 = vld [vmem:[#allocation2 + $0x260] sm:$0xf] }
 0x431   :  { %v4077_v61 = vpop.permute.xlu1 %4076 }
 0x432   :  { %v4111_v11 = vsel %vm1490_vm15, %v7832_v37, %v4077_v61  ;;  %v4079_v52 = vpop.permute.xlu0 %4078  ;;  %v3913_v26 = vadd.f32 %v3901_v54, %v3833_v1 }
 0x433   :  { %v4119_v23 = vadd.f32 %v4111_v11, %v4039_v62  ;;  %v4110_v29 = vsel %vm1490_vm15, %v4077_v61, %v4079_v52  ;;  %3886 = vrot.lane.b32.xlu1 %v3857_v38, %s6285_s15  ;;  %v3939_v38 = vld [vmem:[#allocation2 + $0x1f8] sm:$0xf0] }
 0x434   :  { %v4120_v37 = vadd.f32 %v4110_v29, %v4040_v22  ;;  %3888 = vrot.lane.b32.xlu0 %v3858_v19, %s6285_s15  ;;  %v4041_v57 = vadd.f32 %v4029_v40, %v3913_v26  ;;  %v3969_v19 = vrot.slane %v3937_v41, 4  ;;  %v3971_v26 = vrot.slane %v3939_v38, 4 }
 0x435   :  { %v4141_v25 = vadd.f32 %v7676_v56, %v4119_v23  ;;  %v8051_v60 = vpop.permute.xlu1 %4002  ;;  %v4199_v23 = vrot.slane %v7844_v14, %v7497_v2  ;;  %v3294_v2 = vld [vmem:[#allocation2 + $0x50] sm:$0xf] }
 0x436   :  { %v4142_v33 = vadd.f32 %v7676_v56, %v4120_v37  ;;  %v4028_v27 = vsel %vm1377_vm1, %v4001_v39, %v8051_v60  ;;  %v4081_v58 = vpop.permute.xlu0 %4080  ;;  %v4195_v39 = vrot.slane %v7844_v14, %v7472_v6 }
 0x437   :  { %v4157_v12 = vmax.f32 %v4141_v25, 0.0  ;;  %v4109_v10 = vsel %vm1490_vm15, %v4079_v52, %v4081_v58  ;;  %3890 = vrot.lane.b32.xlu1 %v3859_v18, %s6285_s15  ;;  %v4042_v62 = vadd.f32 %v4028_v27, %v3914_v16  ;;  %v3970_v52 = vrot.slane %v3938_v47, 4  ;;  %v4065_v27 = vld [vmem:[#allocation2 + $0x268] sm:$0xf] }
 0x438   :  { %v4158_v31 = vmax.f32 %v4142_v33, 0.0  ;;  %v4121_v24 = vadd.f32 %v4109_v10, %v4041_v57  ;;  %4012 = vrot.lane.b32.xlu0 %v3968_v21, %s6286_s6  ;;  %v4066_v57 = vld [vmem:[#allocation2 + $0x270] sm:$0xf]  ;;  %v4067_v21 = vld [vmem:[#allocation2 + $0x278] sm:$0xf] }
 0x439   :  { %v8061_v54 = vmul.f32 %v4187_v55, %v4157_v12  ;;  %v8065_v61 = vpop.permute.xlu1 %4082 }
 0x43a   :  { %v8067_v1 = vmul.f32 %v4191_v30, %v4158_v31  ;;  %v4143_v5 = vadd.f32 %v7676_v56, %v4121_v24  ;;  %v4108_v22 = vsel %vm1490_vm15, %v4081_v58, %v8065_v61  ;;  %v8073_v11 = vpop.permute.xlu0 %3382 }
 0x43b   :  { %4271 = vst [vmem:[#allocation2 + $0x18] sm:$0xf] %v8061_v54  ;;  %v4122_v3 = vadd.f32 %v4108_v22, %v4042_v62  ;;  %4014 = vrot.lane.b32.xlu1 %v3969_v19, %s6286_s6 }
 0x43c   :  { %4272 = vst [vmem:[#allocation2 + $0x20] sm:$0xf] %v8067_v1  ;;  %v4159_v40 = vmax.f32 %v4143_v5, 0.0  ;;  %4016 = vrot.lane.b32.xlu0 %v3970_v52, %s6286_s6 }
 0x43d   :  { %v4144_v29 = vadd.f32 %v7676_v56, %v4122_v3  ;;  %v3381_v9 = vpop.permute.xlu1 %3380 }
 0x43e   :  { %v8082_v37 = vmul.f32 %v4195_v39, %v4159_v40  ;;  %v8084_v63 = vpop.permute.xlu0 %3386  ;;  %v3403_v3 = vsel %vm667_vm13, %v7883_v8, %v3381_v9  ;;  %v3291_v40 = vld [vmem:[#allocation2 + $0x38] sm:$0xf] }
 0x43f   :  { %v4160_v55 = vmax.f32 %v4144_v29, 0.0  ;;  %4018 = vrot.lane.b32.xlu1 %v3971_v26, %s6286_s6  ;;  %v3402_v26 = vsel %vm667_vm13, %v3381_v9, %v8073_v11 }
 0x440   :  { %4273 = vst [vmem:[#allocation2 + $0x28] sm:$0xf] %v8082_v37  ;;  %4092 = vrot.lane.b32.xlu0 %v4064_v59, %s6267_s23  ;;  %v3419_v59 = vadd.f32 %v3403_v3, %v3291_v40  ;;  %v3293_v3 = vld [vmem:[#allocation2 + $0x48] sm:$0xf] }
 0x441   :  { %v8089_v25 = vmul.f32 %v4199_v23, %v4160_v55  ;;  %v3385_v30 = vpop.permute.xlu1 %3384 }
 0x442   :  { %v3463_v33 = vpop.permute.xlu0 %3462  ;;  %v3401_v8 = vsel %vm667_vm13, %v8073_v11, %v3385_v30 }
 0x443   :  { %4274 = vst [vmem:[#allocation2 + $0x30] sm:$0xf] %v8089_v25  ;;  %4094 = vrot.lane.b32.xlu1 %v4065_v27, %s6267_s23 }
 0x444   :  { %4096 = vrot.lane.b32.xlu0 %v4066_v57, %s6267_s23 }
 0x445   :  { %v3461_v58 = vpop.permute.xlu1 %3460 }
 0x446   :  { %v8094_v18 = vpop.permute.xlu0 %3466  ;;  %v3483_v23 = vsel %vm780_vm10, %v7900_v42, %v3461_v58  ;;  %v3292_v42 = vld [vmem:[#allocation2 + $0x40] sm:$0xf]  ;;  %v3482_v27 = vsel %vm780_vm10, %v3461_v58, %v3463_v33  ;;  %v3421_v58 = vadd.f32 %v3401_v8, %v3293_v3 }
 0x447   :  { %4098 = vrot.lane.b32.xlu1 %v4067_v21, %s6267_s23  ;;  %v3499_v21 = vadd.f32 %v3483_v23, %v3419_v59  ;;  %v3420_v9 = vadd.f32 %v3402_v26, %v3292_v42 }
 0x448   :  { %4286 = vrot.lane.b32.xlu0 %v7888_v35, %s6282_s12 }
 0x449   :  { %v3465_v41 = vpop.permute.xlu1 %3464  ;;  %v3500_v42 = vadd.f32 %v3482_v27, %v3420_v9 }
 0x44a   :  { %v3591_v16 = vpop.permute.xlu0 %3590  ;;  %v3481_v11 = vsel %vm780_vm10, %v3463_v33, %v3465_v41 }
 0x44b   :  { %4460 = vrot.lane.b32.xlu1 %v7877_v46, %s6284_s14  ;;  %v3501_v8 = vadd.f32 %v3481_v11, %v3421_v58 }
 0x44c   :  { %4462 = vrot.lane.b32.xlu0 %v7888_v35, %s6284_s14 }
 0x44d   :  { %v3589_v12 = vpop.permute.xlu1 %3588 }
 0x44e   :  { %v8103_v10 = vpop.permute.xlu0 %3594  ;;  %v3611_v57 = vsel %vm909_vm14, %v7910_v53, %v3589_v12  ;;  %v3610_v23 = vsel %vm909_vm14, %v3589_v12, %v3591_v16 }
 0x44f   :  { %4638 = vrot.lane.b32.xlu1 %v7888_v35, %s6269_s25  ;;  %v3627_v59 = vadd.f32 %v3611_v57, %v3499_v21  ;;  %v3628_v27 = vadd.f32 %v3610_v23, %v3500_v42 }
 0x450   :  { %4284 = vrot.lane.b32.xlu0 %v7877_v46, %s6282_s12 }
 0x451   :  { %v3593_v47 = vpop.permute.xlu1 %3592 }
 0x452   :  { %v3669_v31 = vpop.permute.xlu0 %3668  ;;  %v3609_v33 = vsel %vm909_vm14, %v3591_v16, %v3593_v47 }
 0x453   :  { %4814 = vrot.lane.b32.xlu1 %v7888_v35, %s6286_s6  ;;  %v3691_v53 = vsel %vm1022_vm11, %v7920_v34, %v3669_v31  ;;  %v3629_v9 = vadd.f32 %v3609_v33, %v3501_v8 }
 0x454   :  { %4398 = vrot.lane.b32.xlu0 %v7888_v35, %s6270_s26  ;;  %v3707_v12 = vadd.f32 %v3691_v53, %v3627_v59 }
 0x455   :  { %v3671_v24 = vpop.permute.xlu1 %3670 }
 0x456   :  { %v8113_v62 = vpop.permute.xlu0 %3672  ;;  %v3690_v57 = vsel %vm1022_vm11, %v3669_v31, %v3671_v24 }
 0x457   :  { %4636 = vrot.lane.b32.xlu1 %v7877_v46, %s6269_s25  ;;  %v3708_v53 = vadd.f32 %v3690_v57, %v3628_v27 }
 0x458   :  { %4396 = vrot.lane.b32.xlu0 %v7877_v46, %s6270_s26 }
 0x459   :  { %v8119_v39 = vpop.permute.xlu1 %3674 }
 0x45a   :  { %v3797_v19 = vpop.permute.xlu0 %3796 }
 0x45b   :  { %4574 = vrot.lane.b32.xlu1 %v7888_v35, %s6283_s13  ;;  %v3819_v34 = vsel %vm1135_vm0, %v7934_v50, %v3797_v19  ;;  %v3689_v50 = vsel %vm1022_vm11, %v3671_v24, %v8113_v62 }
 0x45c   :  { %4812 = vrot.lane.b32.xlu0 %v7877_v46, %s6286_s6  ;;  %v3835_v31 = vadd.f32 %v3819_v34, %v3707_v12 }
 0x45d   :  { %v3799_v5 = vpop.permute.xlu1 %3798 }
 0x45e   :  { %v8125_v22 = vpop.permute.xlu0 %3800  ;;  %v3818_v3 = vsel %vm1135_vm0, %v3797_v19, %v3799_v5  ;;  %v3688_v19 = vsel %vm1022_vm11, %v8113_v62, %v8119_v39 }
 0x45f   :  { %4750 = vrot.lane.b32.xlu1 %v7888_v35, %s6285_s15  ;;  %v3817_v24 = vsel %vm1135_vm0, %v3799_v5, %v8125_v22  ;;  %v3836_v23 = vadd.f32 %v3818_v3, %v3708_v53 }
 0x460   :  { %4748 = vrot.lane.b32.xlu0 %v7877_v46, %s6285_s15 }
 0x461   :  { %v8131_v52 = vpop.permute.xlu1 %3802 }
 0x462   :  { %v3877_v38 = vpop.permute.xlu0 %3876  ;;  %v3816_v62 = vsel %vm1135_vm0, %v8125_v22, %v8131_v52 }
 0x463   :  { %4572 = vrot.lane.b32.xlu1 %v7877_v46, %s6283_s13 }
 0x464   :  { %4640 = vrot.lane.b32.xlu0 %v7890_v28, %s6269_s25 }
 0x465   :  { %v3879_v29 = vpop.permute.xlu1 %3878 }
 0x466   :  { %v8146_v55 = vpop.permute.xlu0 %3880  ;;  %v3898_v58 = vsel %vm1264_vm12, %v3877_v38, %v3879_v29 }
 0x467   :  { %4926 = vrot.lane.b32.xlu1 %v7888_v35, %s6267_s23  ;;  %v3400_v35 = vsel %vm667_vm13, %v3385_v30, %v8084_v63  ;;  %v3480_v30 = vsel %vm780_vm10, %v3465_v41, %v8094_v18  ;;  %v3608_v41 = vsel %vm909_vm14, %v3593_v47, %v8103_v10  ;;  %v3709_v47 = vadd.f32 %v3689_v50, %v3629_v9  ;;  %v8243_v9 = vld [vmem:[#allocation9 + $0x11] ss:$2 sm:$0xff] }
 0x468   :  { %4816 = vrot.lane.b32.xlu0 %v7890_v28, %s6286_s6  ;;  %v3422_v16 = vadd.f32 %v3400_v35, %v3294_v2  ;;  %v3916_v8 = vadd.f32 %v3898_v58, %v3836_v23  ;;  %v4203_v50 = vrot.slane %v7844_v14, %v7501_v7  ;;  %v4211_v58 = vrot.slane %v8243_v9, %v7403_v0 }
 0x469   :  { %v8165_v40 = vpop.permute.xlu1 %3882  ;;  %v3837_v42 = vadd.f32 %v3817_v24, %v3709_v47 }
 0x46a   :  { %v4005_v26 = vpop.permute.xlu0 %4004  ;;  %v3502_v11 = vadd.f32 %v3480_v30, %v3422_v16  ;;  %v3896_v22 = vsel %vm1264_vm12, %v8146_v55, %v8165_v40 }
 0x46b   :  { %4924 = vrot.lane.b32.xlu1 %v7877_v46, %s6267_s23  ;;  %v3899_v46 = vsel %vm1264_vm12, %v8005_v36, %v3877_v38  ;;  %v4027_v36 = vsel %vm1377_vm1, %v8051_v60, %v4005_v26  ;;  %v3897_v60 = vsel %vm1264_vm12, %v3879_v29, %v8146_v55 }
 0x46c   :  { %4576 = vrot.lane.b32.xlu0 %v7890_v28, %s6283_s13  ;;  %v3915_v35 = vadd.f32 %v3899_v46, %v3835_v31  ;;  %v3630_v5 = vadd.f32 %v3608_v41, %v3502_v11  ;;  %v3917_v57 = vadd.f32 %v3897_v60, %v3837_v42 }
 0x46d   :  { %v4007_v21 = vpop.permute.xlu1 %4006 }
 0x46e   :  { %v4009_v2 = vpop.permute.xlu0 %4008  ;;  %v4043_v33 = vadd.f32 %v4027_v36, %v3915_v35  ;;  %v4026_v38 = vsel %vm1377_vm1, %v4005_v26, %v4007_v21  ;;  %v3710_v30 = vadd.f32 %v3688_v19, %v3630_v5  ;;  %v4207_v36 = vrot.slane %v8243_v9, %v7398_v49 }
 0x46f   :  { %4288 = vrot.lane.b32.xlu1 %v7890_v28, %s6282_s12  ;;  %v4025_v12 = vsel %vm1377_vm1, %v4007_v21, %v4009_v2  ;;  %v4044_v27 = vadd.f32 %v4026_v38, %v3916_v8 }
 0x470   :  { %4752 = vrot.lane.b32.xlu0 %v7890_v28, %s6285_s15  ;;  %v3838_v16 = vadd.f32 %v3816_v62, %v3710_v30 }
 0x471   :  { %v8216_v59 = vpop.permute.xlu1 %4010 }
 0x472   :  { %v4085_v34 = vpop.permute.xlu0 %4084  ;;  %v4024_v21 = vsel %vm1377_vm1, %v4009_v2, %v8216_v59  ;;  %v3918_v3 = vadd.f32 %v3896_v22, %v3838_v16 }
 0x473   :  { %v4107_v29 = vsel %vm1490_vm15, %v8065_v61, %v4085_v34  ;;  %4464 = vrot.lane.b32.xlu1 %v7890_v28, %s6284_s14  ;;  %v4045_v61 = vadd.f32 %v4025_v12, %v3917_v57 }
 0x474   :  { %v4123_v26 = vadd.f32 %v4107_v29, %v4043_v33  ;;  %4928 = vrot.lane.b32.xlu0 %v7890_v28, %s6267_s23  ;;  %v4046_v2 = vadd.f32 %v4024_v21, %v3918_v3  ;;  %v4215_v33 = vrot.slane %v8243_v9, %v7431_v48 }
 0x475   :  { %v4087_v46 = vpop.permute.xlu1 %4086 }
 0x476   :  { %v4145_v41 = vadd.f32 %v7676_v56, %v4123_v26  ;;  %v4106_v55 = vsel %vm1490_vm15, %v4085_v34, %v4087_v46  ;;  %v4089_v31 = vpop.permute.xlu0 %4088 }
 0x477   :  { %v4124_v11 = vadd.f32 %v4106_v55, %v4044_v27  ;;  %v4105_v53 = vsel %vm1490_vm15, %v4087_v46, %v4089_v31  ;;  %4400 = vrot.lane.b32.xlu1 %v7890_v28, %s6270_s26 }
 0x478   :  { %v4161_v14 = vmax.f32 %v4145_v41, 0.0  ;;  %v4125_v24 = vadd.f32 %v4105_v53, %v4045_v61  ;;  %4290 = vrot.lane.b32.xlu0 %v8061_v54, %s6282_s12 }
 0x479   :  { %v4146_v47 = vadd.f32 %v7676_v56, %v4124_v11  ;;  %v8256_v19 = vpop.permute.xlu1 %4090 }
 0x47a   :  { %v8258_v35 = vmul.f32 %v4203_v50, %v4161_v14  ;;  %v4147_v28 = vadd.f32 %v7676_v56, %v4125_v24  ;;  %v4104_v5 = vsel %vm1490_vm15, %v4089_v31, %v8256_v19  ;;  %v8266_v23 = vpop.permute.xlu0 %3390 }
 0x47b   :  { %v4162_v60 = vmax.f32 %v4146_v47, 0.0  ;;  %v4126_v42 = vadd.f32 %v4104_v5, %v4046_v2  ;;  %4642 = vrot.lane.b32.xlu1 %v8061_v54, %s6269_s25  ;;  %v3299_v5 = vld [vmem:[#allocation2 + $0x78] sm:$0xf] }
 0x47c   :  { %4275 = vst [vmem:[#allocation2 + $0x38] sm:$0xf] %v8258_v35  ;;  %v4163_v62 = vmax.f32 %v4147_v28, 0.0  ;;  %4466 = vrot.lane.b32.xlu0 %v8061_v54, %s6284_s14 }
 0x47d   :  { %v8273_v0 = vmul.f32 %v4207_v36, %v4162_v60  ;;  %v4148_v38 = vadd.f32 %v7676_v56, %v4126_v42  ;;  %v3389_v34 = vpop.permute.xlu1 %3388  ;;  %v3295_v36 = vld [vmem:[#allocation2 + $0x58] sm:$0xf] }
 0x47e   :  { %v8278_v30 = vmul.f32 %v4211_v58, %v4163_v62  ;;  %v3395_v8 = vpop.permute.xlu0 %3394  ;;  %v3399_v14 = vsel %vm667_vm13, %v8084_v63, %v3389_v34  ;;  %v3398_v24 = vsel %vm667_vm13, %v3389_v34, %v8266_v23  ;;  %v3296_v58 = vld [vmem:[#allocation2 + $0x60] sm:$0xf]  ;;  %v3298_v34 = vld [vmem:[#allocation2 + $0x70] sm:$0xf] }
 0x47f   :  { %4276 = vst [vmem:[#allocation2 + $0x40] sm:$0xf] %v8273_v0  ;;  %v4164_v12 = vmax.f32 %v4148_v38, 0.0  ;;  %4818 = vrot.lane.b32.xlu1 %v8061_v54, %s6286_s6  ;;  %v3411_v2 = vsel %vm667_vm13, %v3395_v8, %v7680_v13  ;;  %v3423_v28 = vadd.f32 %v3399_v14, %v3295_v36 }
 0x480   :  { %4277 = vst [vmem:[#allocation2 + $0x48] sm:$0xf] %v8278_v30  ;;  %4402 = vrot.lane.b32.xlu0 %v8061_v54, %s6270_s26  ;;  %v3427_v38 = vadd.f32 %v3411_v2, %v3299_v5 }
 0x481   :  { %v8286_v29 = vmul.f32 %v4215_v33, %v4164_v12  ;;  %v3393_v48 = vpop.permute.xlu1 %3392  ;;  %v3424_v33 = vadd.f32 %v3398_v24, %v3296_v58 }
 0x482   :  { %v3471_v57 = vpop.permute.xlu0 %3470  ;;  %v3396_v60 = vsel %vm667_vm13, %v3393_v48, %v3395_v8  ;;  %v3397_v42 = vsel %vm667_vm13, %v8266_v23, %v3393_v48  ;;  %v3297_v8 = vld [vmem:[#allocation2 + $0x68] sm:$0xf] }
 0x483   :  { %4278 = vst [vmem:[#allocation2 + $0x50] sm:$0xf] %v8286_v29  ;;  %4578 = vrot.lane.b32.xlu1 %v8061_v54, %s6283_s13  ;;  %v3426_v14 = vadd.f32 %v3396_v60, %v3298_v34 }
 0x484   :  { %4644 = vrot.lane.b32.xlu0 %v8067_v1, %s6269_s25 }
 0x485   :  { %v3469_v22 = vpop.permute.xlu1 %3468 }
 0x486   :  { %v3475_v26 = vpop.permute.xlu0 %3474  ;;  %v3479_v47 = vsel %vm780_vm10, %v8094_v18, %v3469_v22  ;;  %v3478_v13 = vsel %vm780_vm10, %v3469_v22, %v3471_v57 }
 0x487   :  { %4754 = vrot.lane.b32.xlu1 %v8061_v54, %s6285_s15  ;;  %v3503_v12 = vadd.f32 %v3479_v47, %v3423_v28  ;;  %v3491_v23 = vsel %vm780_vm10, %v3475_v26, %v7692_v43  ;;  %v3504_v24 = vadd.f32 %v3478_v13, %v3424_v33 }
 0x488   :  { %4820 = vrot.lane.b32.xlu0 %v8067_v1, %s6286_s6 }
 0x489   :  { %v3473_v16 = vpop.permute.xlu1 %3472 }
 0x48a   :  { %v3599_v27 = vpop.permute.xlu0 %3598  ;;  %v3476_v48 = vsel %vm780_vm10, %v3473_v16, %v3475_v26  ;;  %v3477_v22 = vsel %vm780_vm10, %v3471_v57, %v3473_v16  ;;  %v3507_v16 = vadd.f32 %v3491_v23, %v3427_v38 }
 0x48b   :  { %4930 = vrot.lane.b32.xlu1 %v8061_v54, %s6267_s23  ;;  %v3506_v28 = vadd.f32 %v3476_v48, %v3426_v14 }
 0x48c   :  { %4580 = vrot.lane.b32.xlu0 %v8067_v1, %s6283_s13 }
 0x48d   :  { %v3597_v50 = vpop.permute.xlu1 %3596 }
 0x48e   :  { %v8301_v46 = vpop.permute.xlu0 %3602  ;;  %v3607_v18 = vsel %vm909_vm14, %v8103_v10, %v3597_v50  ;;  %v3425_v10 = vadd.f32 %v3397_v42, %v3297_v8  ;;  %v3606_v43 = vsel %vm909_vm14, %v3597_v50, %v3599_v27 }
 0x48f   :  { %4292 = vrot.lane.b32.xlu1 %v8067_v1, %s6282_s12  ;;  %v3631_v47 = vadd.f32 %v3607_v18, %v3503_v12  ;;  %v3619_v57 = vsel %vm909_vm14, %v8301_v46, %v7704_v15  ;;  %v3632_v60 = vadd.f32 %v3606_v43, %v3504_v24 }
 0x490   :  { %4756 = vrot.lane.b32.xlu0 %v8067_v1, %s6285_s15  ;;  %v3505_v58 = vadd.f32 %v3477_v22, %v3425_v10 }
 0x491   :  { %v3601_v61 = vpop.permute.xlu1 %3600 }
 0x492   :  { %v3677_v21 = vpop.permute.xlu0 %3676  ;;  %v3604_v50 = vsel %vm909_vm14, %v3601_v61, %v8301_v46 }
 0x493   :  { %4468 = vrot.lane.b32.xlu1 %v8067_v1, %s6284_s14  ;;  %v3687_v2 = vsel %vm1022_vm11, %v8119_v39, %v3677_v21  ;;  %v3634_v18 = vadd.f32 %v3604_v50, %v3506_v28 }
 0x494   :  { %4932 = vrot.lane.b32.xlu0 %v8067_v1, %s6267_s23  ;;  %v3711_v15 = vadd.f32 %v3687_v2, %v3631_v47  ;;  %v4219_v47 = vrot.slane %v8243_v9, %v7438_v4 }
 0x495   :  { %v3679_v54 = vpop.permute.xlu1 %3678 }
 0x496   :  { %v8311_v41 = vpop.permute.xlu0 %3680 }
 0x497   :  { %4404 = vrot.lane.b32.xlu1 %v8067_v1, %s6270_s26  ;;  %v3685_v5 = vsel %vm1022_vm11, %v3679_v54, %v8311_v41 }
 0x498   :  { %4646 = vrot.lane.b32.xlu0 %v8082_v37, %s6269_s25 }
 0x499   :  { %v8317_v55 = vpop.permute.xlu1 %3682 }
 0x49a   :  { %v8319_v31 = vpop.permute.xlu0 %3804 }
 0x49b   :  { %4294 = vrot.lane.b32.xlu1 %v8082_v37, %s6282_s12  ;;  %v3815_v39 = vsel %vm1135_vm0, %v8131_v52, %v8319_v31  ;;  %v3635_v52 = vadd.f32 %v3619_v57, %v3507_v16 }
 0x49c   :  { %4822 = vrot.lane.b32.xlu0 %v8082_v37, %s6286_s6 }
 0x49d   :  { %v3807_v3 = vpop.permute.xlu1 %3806 }
 0x49e   :  { %v8325_v11 = vpop.permute.xlu0 %3808 }
 0x49f   :  { %4470 = vrot.lane.b32.xlu1 %v8082_v37, %s6284_s14  ;;  %v3813_v33 = vsel %vm1135_vm0, %v3807_v3, %v8325_v11 }
 0x4a0   :  { %4582 = vrot.lane.b32.xlu0 %v8082_v37, %s6283_s13 }
 0x4a1   :  { %v8331_v1 = vpop.permute.xlu1 %3810 }
 0x4a2   :  { %v8333_v53 = vpop.permute.xlu0 %3884 }
 0x4a3   :  { %4406 = vrot.lane.b32.xlu1 %v8082_v37, %s6270_s26  ;;  %v3895_v13 = vsel %vm1264_vm12, %v8165_v40, %v8333_v53 }
 0x4a4   :  { %4758 = vrot.lane.b32.xlu0 %v8082_v37, %s6285_s15 }
 0x4a5   :  { %v3887_v63 = vpop.permute.xlu1 %3886 }
 0x4a6   :  { %v8358_v62 = vpop.permute.xlu0 %3888 }
 0x4a7   :  { %4648 = vrot.lane.b32.xlu1 %v8089_v25, %s6269_s25  ;;  %v3893_v12 = vsel %vm1264_vm12, %v3887_v63, %v8358_v62 }
 0x4a8   :  { %4934 = vrot.lane.b32.xlu0 %v8082_v37, %s6267_s23  ;;  %v3605_v37 = vsel %vm909_vm14, %v3599_v27, %v3601_v61  ;;  %v3686_v27 = vsel %vm1022_vm11, %v3677_v21, %v3679_v54  ;;  %v3684_v61 = vsel %vm1022_vm11, %v8311_v41, %v8317_v55  ;;  %v3839_v21 = vadd.f32 %v3815_v39, %v3711_v15 }
 0x4a9   :  { %v3891_v36 = vpop.permute.xlu1 %3890  ;;  %v3633_v42 = vadd.f32 %v3605_v37, %v3505_v58  ;;  %v3814_v54 = vsel %vm1135_vm0, %v8319_v31, %v3807_v3  ;;  %v3712_v34 = vadd.f32 %v3686_v27, %v3632_v60  ;;  %v3699_v41 = vsel %vm1022_vm11, %v8317_v55, %v7716_v45 }
 0x4aa   :  { %v4013_v26 = vpop.permute.xlu0 %4012  ;;  %v3919_v31 = vadd.f32 %v3895_v13, %v3839_v21  ;;  %v3894_v3 = vsel %vm1264_vm12, %v8333_v53, %v3887_v63  ;;  %v3812_v45 = vsel %vm1135_vm0, %v8325_v11, %v8331_v1  ;;  %v3827_v53 = vsel %vm1135_vm0, %v8331_v1, %v7730_v51 }
 0x4ab   :  { %4824 = vrot.lane.b32.xlu1 %v8089_v25, %s6286_s6  ;;  %v3713_v8 = vadd.f32 %v3685_v5, %v3633_v42  ;;  %v4023_v40 = vsel %vm1377_vm1, %v8216_v59, %v4013_v26  ;;  %v3714_v59 = vadd.f32 %v3684_v61, %v3634_v18  ;;  %v3840_v23 = vadd.f32 %v3814_v54, %v3712_v34 }
 0x4ac   :  { %4296 = vrot.lane.b32.xlu0 %v8089_v25, %s6282_s12  ;;  %v4047_v22 = vadd.f32 %v4023_v40, %v3919_v31  ;;  %v3715_v24 = vadd.f32 %v3699_v41, %v3635_v52  ;;  %v3892_v51 = vsel %vm1264_vm12, %v8358_v62, %v3891_v36  ;;  %v3907_v1 = vsel %vm1264_vm12, %v3891_v36, %v7740_v20  ;;  %v9127_v40 = vld [vmem:[#allocation15_spill] sm:$0xff] }
 0x4ad   :  { %v4015_v46 = vpop.permute.xlu1 %4014  ;;  %v3841_v48 = vadd.f32 %v3813_v33, %v3713_v8  ;;  %v3920_v2 = vadd.f32 %v3894_v3, %v3840_v23  ;;  %v3842_v37 = vadd.f32 %v3812_v45, %v3714_v59  ;;  %v4223_v60 = vrot.slane %v8243_v9, %v7468_v44  ;;  %v9126_v44 = vld [vmem:[#allocation16_spill] sm:$0xff] }
 0x4ae   :  { %v4017_v38 = vpop.permute.xlu0 %4016  ;;  %v4022_v63 = vsel %vm1377_vm1, %v4013_v26, %v4015_v46  ;;  %v4231_v41 = vrot.slane %v8243_v9, %v9127_v40  ;;  %v4235_v3 = vrot.slane %v8243_v9, %v7501_v7 }
 0x4af   :  { %4584 = vrot.lane.b32.xlu1 %v8089_v25, %s6283_s13  ;;  %v4021_v10 = vsel %vm1377_vm1, %v4015_v46, %v4017_v38  ;;  %v3921_v43 = vadd.f32 %v3893_v12, %v3841_v48  ;;  %v4048_v26 = vadd.f32 %v4022_v63, %v3920_v2  ;;  %v3922_v39 = vadd.f32 %v3892_v51, %v3842_v37 }
 0x4b0   :  { %4472 = vrot.lane.b32.xlu0 %v8089_v25, %s6284_s14  ;;  %v4227_v46 = vrot.slane %v8243_v9, %v7472_v6 }
 0x4b1   :  { %v4019_v55 = vpop.permute.xlu1 %4018  ;;  %v4049_v16 = vadd.f32 %v4021_v10, %v3921_v43 }
 0x4b2   :  { %v4093_v14 = vpop.permute.xlu0 %4092  ;;  %v4020_v28 = vsel %vm1377_vm1, %v4017_v38, %v4019_v55  ;;  %v4035_v62 = vsel %vm1377_vm1, %v4019_v55, %v7790_v32 }
 0x4b3   :  { %v4103_v11 = vsel %vm1490_vm15, %v8256_v19, %v4093_v14  ;;  %4760 = vrot.lane.b32.xlu1 %v8089_v25, %s6285_s15  ;;  %v3843_v19 = vadd.f32 %v3827_v53, %v3715_v24  ;;  %v4050_v52 = vadd.f32 %v4020_v28, %v3922_v39 }
 0x4b4   :  { %v4127_v57 = vadd.f32 %v4103_v11, %v4047_v22  ;;  %4408 = vrot.lane.b32.xlu0 %v8089_v25, %s6270_s26 }
 0x4b5   :  { %v4095_v58 = vpop.permute.xlu1 %4094  ;;  %v3923_v50 = vadd.f32 %v3907_v1, %v3843_v19 }
 0x4b6   :  { %v4149_v20 = vadd.f32 %v7676_v56, %v4127_v57  ;;  %v4102_v4 = vsel %vm1490_vm15, %v4093_v14, %v4095_v58  ;;  %v4097_v36 = vpop.permute.xlu0 %4096 }
 0x4b7   :  { %v4128_v15 = vadd.f32 %v4102_v4, %v4048_v26  ;;  %v4101_v27 = vsel %vm1490_vm15, %v4095_v58, %v4097_v36  ;;  %4936 = vrot.lane.b32.xlu1 %v8089_v25, %s6267_s23  ;;  %v4051_v42 = vadd.f32 %v4035_v62, %v3923_v50 }
 0x4b8   :  { %v4165_v5 = vmax.f32 %v4149_v20, 0.0  ;;  %v4129_v32 = vadd.f32 %v4101_v27, %v4049_v16  ;;  %4650 = vrot.lane.b32.xlu0 %v8258_v35, %s6269_s25 }
 0x4b9   :  { %v4150_v13 = vadd.f32 %v7676_v56, %v4128_v15  ;;  %v4099_v61 = vpop.permute.xlu1 %4098 }
 0x4ba   :  { %v8478_v21 = vmul.f32 %v4219_v47, %v4165_v5  ;;  %v4151_v25 = vadd.f32 %v7676_v56, %v4129_v32  ;;  %v4100_v54 = vsel %vm1490_vm15, %v4097_v36, %v4099_v61  ;;  %v4115_v33 = vsel %vm1490_vm15, %v4099_v61, %v9126_v44  ;;  %v8486_v38 = vpop.permute.xlu0 %4286 }
 0x4bb   :  { %v4166_v18 = vmax.f32 %v4150_v13, 0.0  ;;  %v4130_v34 = vadd.f32 %v4100_v54, %v4050_v52  ;;  %v4131_v8 = vadd.f32 %v4115_v33, %v4051_v42  ;;  %4298 = vrot.lane.b32.xlu1 %v8258_v35, %s6282_s12 }
 0x4bc   :  { %4279 = vst [vmem:[#allocation2 + $0x58] sm:$0xf] %v8478_v21  ;;  %v4167_v6 = vmax.f32 %v4151_v25, 0.0  ;;  %4826 = vrot.lane.b32.xlu0 %v8258_v35, %s6286_s6 }
 0x4bd   :  { %v8495_v31 = vmul.f32 %v4223_v60, %v4166_v18  ;;  %v4152_v12 = vadd.f32 %v7676_v56, %v4130_v34  ;;  %v4153_v59 = vadd.f32 %v7676_v56, %v4131_v8  ;;  %v8501_v23 = vpop.permute.xlu1 %4460 }
 0x4be   :  { %v8503_v48 = vmul.f32 %v4227_v46, %v4167_v6  ;;  %v8505_v45 = vpop.permute.xlu0 %4462 }
 0x4bf   :  { %4280 = vst [vmem:[#allocation2 + $0x60] sm:$0xf] %v8495_v31  ;;  %v4168_v55 = vmax.f32 %v4152_v12, 0.0  ;;  %v4169_v53 = vmax.f32 %v4153_v59, 0.0  ;;  %v4506_v22 = vsel %vm909_vm14, %v8501_v23, %v8505_v45  ;;  %4474 = vrot.lane.b32.xlu1 %v8258_v35, %s6284_s14 }
 0x4c0   :  { %4281 = vst [vmem:[#allocation2 + $0x68] sm:$0xf] %v8503_v48  ;;  %v4524_v7 = vrot.slane %v4506_v22, 4  ;;  %4586 = vrot.lane.b32.xlu0 %v8258_v35, %s6283_s13 }
 0x4c1   :  { %v8517_v56 = vmul.f32 %v4231_v41, %v4168_v55  ;;  %v8519_v9 = vmul.f32 %v4235_v3, %v4169_v53  ;;  %v4639_v63 = vpop.permute.xlu1 %4638 }
 0x4c2   :  { %4556 = vst [vmem:[#allocation2 + $0x80] sm:$0xf0] %v4524_v7  ;;  %v8521_v10 = vpop.permute.xlu0 %4284 }
 0x4c3   :  { %4282 = vst [vmem:[#allocation2 + $0x70] sm:$0xf] %v8517_v56  ;;  %4283 = vst [vmem:[#allocation2 + $0x78] sm:$0xf] %v8519_v9  ;;  %v4330_v14 = vsel %vm667_vm13, %v8521_v10, %v8486_v38  ;;  %4410 = vrot.lane.b32.xlu1 %v8258_v35, %s6270_s26 }
 0x4c4   :  { %v4348_v24 = vrot.slane %v4330_v14, 4  ;;  %4762 = vrot.lane.b32.xlu0 %v8258_v35, %s6285_s15 }
 0x4c5   :  { %v4815_v2 = vpop.permute.xlu1 %4814 }
 0x4c6   :  { %4380 = vst [vmem:[#allocation2] sm:$0xf0] %v4348_v24  ;;  %v8533_v43 = vpop.permute.xlu0 %4398 }
 0x4c7   :  { %4652 = vrot.lane.b32.xlu1 %v8273_v0, %s6269_s25 }
 0x4c8   :  { %4938 = vrot.lane.b32.xlu0 %v8258_v35, %s6267_s23 }
 0x4c9   :  { %v8539_v11 = vpop.permute.xlu1 %4636 }
 0x4ca   :  { %v4682_v51 = vsel %vm1135_vm0, %v8539_v11, %v4639_v63  ;;  %v8544_v1 = vpop.permute.xlu0 %4396 }
 0x4cb   :  { %v4700_v47 = vrot.slane %v4682_v51, 4  ;;  %v4442_v57 = vsel %vm780_vm10, %v8544_v1, %v8533_v43  ;;  %4828 = vrot.lane.b32.xlu1 %v8273_v0, %s6286_s6 }
 0x4cc   :  { %4444 = vst [vmem:[#allocation2 + $0x80] sm:$0xf] %v4442_v57  ;;  %4300 = vrot.lane.b32.xlu0 %v8273_v0, %s6282_s12 }
 0x4cd   :  { %4732 = vst [vmem:[#allocation2 + $0x100] sm:$0xf0] %v4700_v47  ;;  %v4575_v35 = vpop.permute.xlu1 %4574  ;;  %v4989_v57 = vld [vmem:[#allocation2] sm:$0xff] }
 0x4ce   :  { %v8554_v37 = vpop.permute.xlu0 %4812 }
 0x4cf   :  { %v4858_v19 = vsel %vm1377_vm1, %v8554_v37, %v4815_v2  ;;  %4588 = vrot.lane.b32.xlu1 %v8273_v0, %s6283_s13 }
 0x4d0   :  { %v4876_v26 = vrot.slane %v4858_v19, 4  ;;  %4476 = vrot.lane.b32.xlu0 %v8273_v0, %s6284_s14 }
 0x4d1   :  { %v4751_v16 = vpop.permute.xlu1 %4750 }
 0x4d2   :  { %4908 = vst [vmem:[#allocation2 + $0x180] sm:$0xf0] %v4876_v26  ;;  %v8563_v58 = vpop.permute.xlu0 %4748 }
 0x4d3   :  { %v4794_v28 = vsel %vm1264_vm12, %v8563_v58, %v4751_v16  ;;  %4764 = vrot.lane.b32.xlu1 %v8273_v0, %s6285_s15  ;;  %v5005_v7 = vld [vmem:[#allocation2 + $0x80] sm:$0xff] }
 0x4d4   :  { %4796 = vst [vmem:[#allocation2 + $0x180] sm:$0xf] %v4794_v28  ;;  %4412 = vrot.lane.b32.xlu0 %v8273_v0, %s6270_s26 }
 0x4d5   :  { %v8572_v62 = vpop.permute.xlu1 %4572 }
 0x4d6   :  { %v4618_v20 = vsel %vm1022_vm11, %v8572_v62, %v4575_v35  ;;  %v4641_v4 = vpop.permute.xlu0 %4640 }
 0x4d7   :  { %4620 = vst [vmem:[#allocation2 + $0x100] sm:$0xf] %v4618_v20  ;;  %v4681_v36 = vsel %vm1135_vm0, %v4639_v63, %v4641_v4  ;;  %4940 = vrot.lane.b32.xlu1 %v8273_v0, %s6267_s23 }
 0x4d8   :  { %v4701_v39 = vrot.slane %v4681_v36, 4  ;;  %4302 = vrot.lane.b32.xlu0 %v8278_v30, %s6282_s12 }
 0x4d9   :  { %v4927_v50 = vpop.permute.xlu1 %4926 }
 0x4da   :  { %4733 = vst [vmem:[#allocation2 + $0x108] sm:$0xf0] %v4701_v39  ;;  %v4817_v15 = vpop.permute.xlu0 %4816 }
 0x4db   :  { %v4857_v27 = vsel %vm1377_vm1, %v4815_v2, %v4817_v15  ;;  %4942 = vrot.lane.b32.xlu1 %v8278_v30, %s6267_s23  ;;  %v5037_v39 = vld [vmem:[#allocation2 + $0x180] sm:$0xff] }
 0x4dc   :  { %v4877_v5 = vrot.slane %v4857_v27, 4  ;;  %4478 = vrot.lane.b32.xlu0 %v8278_v30, %s6284_s14 }
 0x4dd   :  { %v8589_v60 = vpop.permute.xlu1 %4924 }
 0x4de   :  { %4909 = vst [vmem:[#allocation2 + $0x188] sm:$0xf0] %v4877_v5  ;;  %v4970_v0 = vsel %vm1490_vm15, %v8589_v60, %v4927_v50  ;;  %v8594_v32 = vpop.permute.xlu0 %4576  ;;  %v5021_v28 = vld [vmem:[#allocation2 + $0x100] sm:$0xff] }
 0x4df   :  { %4972 = vst [vmem:[#allocation2 + $0x200] sm:$0xf] %v4970_v0  ;;  %v4617_v52 = vsel %vm1022_vm11, %v4575_v35, %v8594_v32  ;;  %4304 = vrot.lane.b32.xlu1 %v8286_v29, %s6282_s12  ;;  %v6035_v35 = vpack.c.bf16 %v5005_v7, %v4989_v57 }
 0x4e0   :  { %4621 = vst [vmem:[#allocation2 + $0x108] sm:$0xf] %v4617_v52  ;;  %4414 = vrot.lane.b32.xlu0 %v8278_v30, %s6270_s26 }
 0x4e1   :  { %v4289_v42 = vpop.permute.xlu1 %4288 }
 0x4e2   :  { %v4329_v13 = vsel %vm667_vm13, %v8486_v38, %v4289_v42  ;;  %v8606_v46 = vpop.permute.xlu0 %4752 }
 0x4e3   :  { %v4349_v61 = vrot.slane %v4329_v13, 4  ;;  %v4793_v25 = vsel %vm1264_vm12, %v4751_v16, %v8606_v46  ;;  %4480 = vrot.lane.b32.xlu1 %v8286_v29, %s6284_s14 }
 0x4e4   :  { %4797 = vst [vmem:[#allocation2 + $0x188] sm:$0xf] %v4793_v25  ;;  %4654 = vrot.lane.b32.xlu0 %v8278_v30, %s6269_s25 }
 0x4e5   :  { %4381 = vst [vmem:[#allocation2 + $0x8] sm:$0xf0] %v4349_v61  ;;  %v4465_v54 = vpop.permute.xlu1 %4464 }
 0x4e6   :  { %v4505_v44 = vsel %vm909_vm14, %v8505_v45, %v4465_v54  ;;  %v8618_v33 = vpop.permute.xlu0 %4928 }
 0x4e7   :  { %v4525_v38 = vrot.slane %v4505_v44, 4  ;;  %v4969_v18 = vsel %vm1490_vm15, %v4927_v50, %v8618_v33  ;;  %4416 = vrot.lane.b32.xlu1 %v8286_v29, %s6270_s26  ;;  %v5022_v19 = vld [vmem:[#allocation2 + $0x108] sm:$0xff]  ;;  %v9128_v44 = vmov 0.0  }
 0x4e8   :  { %4973 = vst [vmem:[#allocation2 + $0x208] sm:$0xf] %v4969_v18  ;;  %4830 = vrot.lane.b32.xlu0 %v8278_v30, %s6286_s6 }
 0x4e9   :  { %4557 = vst [vmem:[#allocation2 + $0x88] sm:$0xf0] %v4525_v38  ;;  %v4401_v34 = vpop.permute.xlu1 %4400 }
 0x4ea   :  { %v4441_v8 = vsel %vm780_vm10, %v8533_v43, %v4401_v34  ;;  %v8630_v6 = vpop.permute.xlu0 %4290 }
 0x4eb   :  { %4445 = vst [vmem:[#allocation2 + $0x88] sm:$0xf] %v4441_v8  ;;  %v4328_v40 = vsel %vm667_vm13, %v4289_v42, %v8630_v6  ;;  %4656 = vrot.lane.b32.xlu1 %v8286_v29, %s6269_s25  ;;  %v5038_v43 = vld [vmem:[#allocation2 + $0x188] sm:$0xff]  ;;  %v8683_v42 = vld [vmem:[%s9110_s3] sm:$0x1] }
 0x4ec   :  { %v4350_v41 = vrot.slane %v4328_v40, 4  ;;  %4590 = vrot.lane.b32.xlu0 %v8278_v30, %s6283_s13  ;;  %v4990_v24 = vld [vmem:[#allocation2 + $0x8] sm:$0xff]  ;;  %v6037_v16 = vpack.c.bf16 %v5038_v43, %v5022_v19 }
 0x4ed   :  { %v4643_v3 = vpop.permute.xlu1 %4642 }
 0x4ee   :  { %4382 = vst [vmem:[#allocation2 + $0x10] sm:$0xf0] %v4350_v41  ;;  %v4680_v12 = vsel %vm1135_vm0, %v4641_v4, %v4643_v3  ;;  %v8641_v59 = vpop.permute.xlu0 %4466 }
 0x4ef   :  { %v4702_v45 = vrot.slane %v4680_v12, 4  ;;  %v4504_v55 = vsel %vm909_vm14, %v4465_v54, %v8641_v59  ;;  %4832 = vrot.lane.b32.xlu1 %v8286_v29, %s6286_s6 }
 0x4f0   :  { %v4526_v53 = vrot.slane %v4504_v55, 4  ;;  %4766 = vrot.lane.b32.xlu0 %v8278_v30, %s6285_s15 }
 0x4f1   :  { %4734 = vst [vmem:[#allocation2 + $0x110] sm:$0xf0] %v4702_v45  ;;  %v4819_v22 = vpop.permute.xlu1 %4818 }
 0x4f2   :  { %4558 = vst [vmem:[#allocation2 + $0x90] sm:$0xf0] %v4526_v53  ;;  %v4856_v63 = vsel %vm1377_vm1, %v4817_v15, %v4819_v22  ;;  %v8652_v14 = vpop.permute.xlu0 %4402  ;;  %v5006_v2 = vld [vmem:[#allocation2 + $0x88] sm:$0xff]  ;;  %v6039_v15 = vpack.c.bf16 %v5037_v39, %v5021_v28 }
 0x4f3   :  { %v4878_v51 = vrot.slane %v4856_v63, 4  ;;  %v4440_v47 = vsel %vm780_vm10, %v4401_v34, %v8652_v14  ;;  %4592 = vrot.lane.b32.xlu1 %v8286_v29, %s6283_s13  ;;  %v6033_v30 = vpack.c.bf16 %v5006_v2, %v4990_v24 }
 0x4f4   :  { %4446 = vst [vmem:[#allocation2 + $0x90] sm:$0xf] %v4440_v47  ;;  %4944 = vrot.lane.b32.xlu0 %v8286_v29, %s6267_s23 }
 0x4f5   :  { %4910 = vst [vmem:[#allocation2 + $0x190] sm:$0xf0] %v4878_v51  ;;  %6034 = vmatprep.subr.bf16.mxu0 %v6033_v30  ;;  %v4579_v26 = vpop.permute.xlu1 %4578 }
 0x4f6   :  { %v4616_v20 = vsel %vm1022_vm11, %v8594_v32, %v4579_v26  ;;  %v4645_v4 = vpop.permute.xlu0 %4644  ;;  %6036 = vmatpush1.bf16.msra.mxu0 %v6035_v35  ;;  %v5054_v32 = vld [vmem:[#allocation2 + $0x208] sm:$0xf] }
 0x4f7   :  { %4622 = vst [vmem:[#allocation2 + $0x110] sm:$0xf] %v4616_v20  ;;  %v4679_v36 = vsel %vm1135_vm0, %v4643_v3, %v4645_v4  ;;  %4768 = vrot.lane.b32.xlu1 %v8286_v29, %s6285_s15  ;;  %6038 = vmatprep.subr.bf16.mxu0 %v6037_v16  ;;  %v4991_v20 = vld [vmem:[#allocation2 + $0x10] sm:$0xff] }
 0x4f8   :  { %v4703_v50 = vrot.slane %v4679_v36, 4  ;;  %4306 = vrot.lane.b32.xlu0 %v8478_v21, %s6282_s12 }
 0x4f9   :  { %v4755_v27 = vpop.permute.xlu1 %4754 }
 0x4fa   :  { %4735 = vst [vmem:[#allocation2 + $0x118] sm:$0xf0] %v4703_v50  ;;  %v4792_v5 = vsel %vm1264_vm12, %v8606_v46, %v4755_v27  ;;  %v4821_v0 = vpop.permute.xlu0 %4820  ;;  %6040 = vmatpush1.bf16.msra.mxu0 %v6039_v15  ;;  %v5053_v46 = vld [vmem:[#allocation2 + $0x200] sm:$0xf] }
 0x4fb   :  { %4798 = vst [vmem:[#allocation2 + $0x190] sm:$0xf] %v4792_v5  ;;  %v4855_v29 = vsel %vm1377_vm1, %v4819_v22, %v4821_v0  ;;  %4946 = vrot.lane.b32.xlu1 %v8478_v21, %s6267_s23  ;;  %5897 = vmatprep.subr.msk.mxu0 %vm5083_vm7, %v5054_v32  ;;  %v5007_v47 = vld [vmem:[#allocation2 + $0x90] sm:$0xff] }
 0x4fc   :  { %v4879_v52 = vrot.slane %v4855_v29, 4  ;;  %4482 = vrot.lane.b32.xlu0 %v8478_v21, %s6284_s14 }
 0x4fd   :  { %v4931_v13 = vpop.permute.xlu1 %4930 }
 0x4fe   :  { %4911 = vst [vmem:[#allocation2 + $0x198] sm:$0xf0] %v4879_v52  ;;  %v4968_v61 = vsel %vm1490_vm15, %v8618_v33, %v4931_v13  ;;  %v4581_v25 = vpop.permute.xlu0 %4580  ;;  %5898 = vmatpush1.msk.msra.mxu0 %vm5083_vm7, %v5053_v46  ;;  %v5023_v32 = vld [vmem:[#allocation2 + $0x110] sm:$0xff] }
 0x4ff   :  { %4974 = vst [vmem:[#allocation2 + $0x210] sm:$0xf] %v4968_v61  ;;  %v4615_v54 = vsel %vm1022_vm11, %v4579_v26, %v4581_v25  ;;  %4308 = vrot.lane.b32.xlu1 %v8495_v31, %s6282_s12  ;;  %5899 = vmatmul.mubr.msk.f32.vlgmr.msra.gmra.mrb[56].mxu0 %vm5079_vm8, %v8683_v42 }
 0x500   :  { %4623 = vst [vmem:[#allocation2 + $0x118] sm:$0xf] %v4615_v54  ;;  %4418 = vrot.lane.b32.xlu0 %v8478_v21, %s6270_s26  ;;  %5338 = vmatprep.mubr.f32.mxu0 %v9128_v44 }
 0x501   :  { %v4293_v33 = vpop.permute.xlu1 %4292 }
 0x502   :  { %v4327_v38 = vsel %vm667_vm13, %v8630_v6, %v4293_v33  ;;  %v4757_v18 = vpop.permute.xlu0 %4756  ;;  %v5039_v15 = vld [vmem:[#allocation2 + $0x190] sm:$0xff] }
 0x503   :  { %v4351_v34 = vrot.slane %v4327_v38, 4  ;;  %v4791_v8 = vsel %vm1264_vm12, %v4755_v27, %v4757_v18  ;;  %4484 = vrot.lane.b32.xlu1 %v8495_v31, %s6284_s14  ;;  %v6047_v29 = vpack.c.bf16 %v5039_v15, %v5023_v32 }
 0x504   :  { %4799 = vst [vmem:[#allocation2 + $0x198] sm:$0xf] %v4791_v8  ;;  %4658 = vrot.lane.b32.xlu0 %v8478_v21, %s6269_s25 }
 0x505   :  { %4383 = vst [vmem:[#allocation2 + $0x18] sm:$0xf0] %v4351_v34  ;;  %v4469_v40 = vpop.permute.xlu1 %4468 }
 0x506   :  { %v4503_v41 = vsel %vm909_vm14, %v8641_v59, %v4469_v40  ;;  %v8710_v3 = vpop.permute.xlu0 %4932  ;;  %v5055_v38 = vld [vmem:[#allocation2 + $0x210] sm:$0xf] }
 0x507   :  { %v4527_v6 = vrot.slane %v4503_v41, 4  ;;  %v4967_v12 = vsel %vm1490_vm15, %v4931_v13, %v8710_v3  ;;  %4420 = vrot.lane.b32.xlu1 %v8495_v31, %s6270_s26  ;;  %v5024_v36 = vld [vmem:[#allocation2 + $0x118] sm:$0xff] }
 0x508   :  { %4975 = vst [vmem:[#allocation2 + $0x218] sm:$0xf] %v4967_v12  ;;  %4834 = vrot.lane.b32.xlu0 %v8478_v21, %s6286_s6 }
 0x509   :  { %4559 = vst [vmem:[#allocation2 + $0x98] sm:$0xf0] %v4527_v6  ;;  %v4405_v45 = vpop.permute.xlu1 %4404 }
 0x50a   :  { %v4439_v59 = vsel %vm780_vm10, %v8652_v14, %v4405_v45  ;;  %v4647_v55 = vpop.permute.xlu0 %4646 }
 0x50b   :  { %4447 = vst [vmem:[#allocation2 + $0x98] sm:$0xf] %v4439_v59  ;;  %v4678_v53 = vsel %vm1135_vm0, %v4645_v4, %v4647_v55  ;;  %4660 = vrot.lane.b32.xlu1 %v8495_v31, %s6269_s25  ;;  %v5040_v26 = vld [vmem:[#allocation2 + $0x198] sm:$0xff]  ;;  %v6043_v4 = vpack.c.bf16 %v5007_v47, %v4991_v20 }
 0x50c   :  { %v4704_v22 = vrot.slane %v4678_v53, 4  ;;  %4594 = vrot.lane.b32.xlu0 %v8478_v21, %s6283_s13  ;;  %v4992_v35 = vld [vmem:[#allocation2 + $0x18] sm:$0xff]  ;;  %v6045_v50 = vpack.c.bf16 %v5040_v26, %v5024_v36 }
 0x50d   :  { %v4295_v7 = vpop.permute.xlu1 %4294 }
 0x50e   :  { %4736 = vst [vmem:[#allocation2 + $0x120] sm:$0xf0] %v4704_v22  ;;  %v4326_v63 = vsel %vm667_vm13, %v4293_v33, %v4295_v7  ;;  %v4823_v24 = vpop.permute.xlu0 %4822 }
 0x50f   :  { %v4352_v2 = vrot.slane %v4326_v63, 4  ;;  %v4854_v14 = vsel %vm1377_vm1, %v4821_v0, %v4823_v24  ;;  %4836 = vrot.lane.b32.xlu1 %v8495_v31, %s6286_s6  ;;  %v5056_v61 = vld [vmem:[#allocation2 + $0x218] sm:$0xf] }
 0x510   :  { %v4880_v43 = vrot.slane %v4854_v14, 4  ;;  %4770 = vrot.lane.b32.xlu0 %v8478_v21, %s6285_s15 }
 0x511   :  { %4384 = vst [vmem:[#allocation2 + $0x20] sm:$0xf0] %v4352_v2  ;;  %v8736_v51 = vpop.permute.xlu1 %4470 }
 0x512   :  { %4912 = vst [vmem:[#allocation2 + $0x1a0] sm:$0xf0] %v4880_v43  ;;  %v4502_v30 = vsel %vm909_vm14, %v4469_v40, %v8736_v51  ;;  %v4583_v57 = vpop.permute.xlu0 %4582  ;;  %v5008_v19 = vld [vmem:[#allocation2 + $0x98] sm:$0xff] }
 0x513   :  { %v4528_v16 = vrot.slane %v4502_v30, 4  ;;  %v4614_v28 = vsel %vm1022_vm11, %v4581_v25, %v4583_v57  ;;  %4596 = vrot.lane.b32.xlu1 %v8495_v31, %s6283_s13  ;;  %v6041_v21 = vpack.c.bf16 %v5008_v19, %v4992_v35 }
 0x514   :  { %4624 = vst [vmem:[#allocation2 + $0x120] sm:$0xf] %v4614_v28  ;;  %4310 = vrot.lane.b32.xlu0 %v8503_v48, %s6282_s12 }
 0x515   :  { %4560 = vst [vmem:[#allocation2 + $0xa0] sm:$0xf0] %v4528_v16  ;;  %6042 = vmatprep.subr.bf16.mxu1 %v6041_v21  ;;  %v4407_v39 = vpop.permute.xlu1 %4406 }
 0x516   :  { %v4438_v27 = vsel %vm780_vm10, %v4405_v45, %v4407_v39  ;;  %v4759_v5 = vpop.permute.xlu0 %4758  ;;  %6044 = vmatpush1.bf16.msra.mxu1 %v6043_v4 }
 0x517   :  { %4448 = vst [vmem:[#allocation2 + $0xa0] sm:$0xf] %v4438_v27  ;;  %v4790_v0 = vsel %vm1264_vm12, %v4757_v18, %v4759_v5  ;;  %4772 = vrot.lane.b32.xlu1 %v8495_v31, %s6285_s15  ;;  %6046 = vmatprep.subr.bf16.mxu1 %v6045_v50 }
 0x518   :  { %4800 = vst [vmem:[#allocation2 + $0x1a0] sm:$0xf] %v4790_v0  ;;  %4422 = vrot.lane.b32.xlu0 %v8503_v48, %s6270_s26  ;;  %v4993_v20 = vld [vmem:[#allocation2 + $0x20] sm:$0xff] }
 0x519   :  { %v4649_v52 = vpop.permute.xlu1 %4648 }
 0x51a   :  { %v4677_v13 = vsel %vm1135_vm0, %v4647_v55, %v4649_v52  ;;  %v4935_v46 = vpop.permute.xlu0 %4934  ;;  %6048 = vmatpush1.bf16.msra.mxu1 %v6047_v29 }
 0x51b   :  { %v4705_v25 = vrot.slane %v4677_v13, 4  ;;  %v4966_v54 = vsel %vm1490_vm15, %v8710_v3, %v4935_v46  ;;  %4486 = vrot.lane.b32.xlu1 %v8503_v48, %s6284_s14  ;;  %5900 = vmatprep.subr.msk.mxu1 %vm5083_vm7, %v5056_v61  ;;  %v5025_v29 = vld [vmem:[#allocation2 + $0x120] sm:$0xff] }
 0x51c   :  { %4976 = vst [vmem:[#allocation2 + $0x220] sm:$0xf] %v4966_v54  ;;  %4948 = vrot.lane.b32.xlu0 %v8495_v31, %s6267_s23 }
 0x51d   :  { %4737 = vst [vmem:[#allocation2 + $0x128] sm:$0xf0] %v4705_v25  ;;  %v4825_v33 = vpop.permute.xlu1 %4824 }
 0x51e   :  { %v4853_v18 = vsel %vm1377_vm1, %v4823_v24, %v4825_v33  ;;  %v4297_v34 = vpop.permute.xlu0 %4296  ;;  %5901 = vmatpush1.msk.msra.mxu1 %vm5083_vm7, %v5055_v38  ;;  %v5009_v30 = vld [vmem:[#allocation2 + $0xa0] sm:$0xff] }
 0x51f   :  { %v4881_v8 = vrot.slane %v4853_v18, 4  ;;  %v4325_v40 = vsel %vm667_vm13, %v4295_v7, %v4297_v34  ;;  %4662 = vrot.lane.b32.xlu1 %v8503_v48, %s6269_s25  ;;  %5902 = vmatmul.mubr.msk.f32.vlgmr.msra.gmra.mrb[56].mxu1 %vm5079_vm8, %v8683_v42  ;;  %v6051_v36 = vpack.c.bf16 %v5009_v30, %v4993_v20 }
 0x520   :  { %v4353_v31 = vrot.slane %v4325_v40, 4  ;;  %4838 = vrot.lane.b32.xlu0 %v8503_v48, %s6286_s6  ;;  %5409 = vmatprep.mubr.f32.mxu1 %v9128_v44 }
 0x521   :  { %4913 = vst [vmem:[#allocation2 + $0x1a8] sm:$0xf0] %v4881_v8  ;;  %v4585_v41 = vpop.permute.xlu1 %4584 }
 0x522   :  { %4385 = vst [vmem:[#allocation2 + $0x28] sm:$0xf0] %v4353_v31  ;;  %v4613_v3 = vsel %vm1022_vm11, %v4583_v57, %v4585_v41  ;;  %v4473_v6 = vpop.permute.xlu0 %4472 }
 0x523   :  { %4625 = vst [vmem:[#allocation2 + $0x128] sm:$0xf] %v4613_v3  ;;  %v4501_v12 = vsel %vm909_vm14, %v8736_v51, %v4473_v6  ;;  %4598 = vrot.lane.b32.xlu1 %v8503_v48, %s6283_s13 }
 0x524   :  { %v4529_v45 = vrot.slane %v4501_v12, 4  ;;  %4774 = vrot.lane.b32.xlu0 %v8503_v48, %s6285_s15 }
 0x525   :  { %v4761_v59 = vpop.permute.xlu1 %4760 }
 0x526   :  { %4561 = vst [vmem:[#allocation2 + $0xa8] sm:$0xf0] %v4529_v45  ;;  %v4789_v55 = vsel %vm1264_vm12, %v4759_v5, %v4761_v59  ;;  %v4409_v53 = vpop.permute.xlu0 %4408  ;;  %v5041_v5 = vld [vmem:[#allocation2 + $0x1a0] sm:$0xff] }
 0x527   :  { %4801 = vst [vmem:[#allocation2 + $0x1a8] sm:$0xf] %v4789_v55  ;;  %v4437_v22 = vsel %vm780_vm10, %v4407_v39, %v4409_v53  ;;  %4312 = vrot.lane.b32.xlu1 %v8517_v56, %s6282_s12  ;;  %v6055_v13 = vpack.c.bf16 %v5041_v5, %v5025_v29 }
 0x528   :  { %4449 = vst [vmem:[#allocation2 + $0xa8] sm:$0xf] %v4437_v22  ;;  %4314 = vrot.lane.b32.xlu0 %v8519_v9, %s6282_s12 }
 0x529   :  { %v4937_v7 = vpop.permute.xlu1 %4936  ;;  %v4994_v19 = vld [vmem:[#allocation2 + $0x28] sm:$0xff] }
 0x52a   :  { %v4965_v63 = vsel %vm1490_vm15, %v4935_v46, %v4937_v7  ;;  %v4651_v24 = vpop.permute.xlu0 %4650  ;;  %v5026_v39 = vld [vmem:[#allocation2 + $0x128] sm:$0xff] }
 0x52b   :  { %4977 = vst [vmem:[#allocation2 + $0x228] sm:$0xf] %v4965_v63  ;;  %v4676_v2 = vsel %vm1135_vm0, %v4649_v52, %v4651_v24  ;;  %4490 = vrot.lane.b32.xlu1 %v8519_v9, %s6284_s14 }
 0x52c   :  { %v4706_v14 = vrot.slane %v4676_v2, 4  ;;  %4488 = vrot.lane.b32.xlu0 %v8517_v56, %s6284_s14 }
 0x52d   :  { %v8802_v43 = vpop.permute.xlu1 %4298 }
 0x52e   :  { %4738 = vst [vmem:[#allocation2 + $0x130] sm:$0xf0] %v4706_v14  ;;  %v4324_v51 = vsel %vm667_vm13, %v4297_v34, %v8802_v43  ;;  %v4827_v47 = vpop.permute.xlu0 %4826  ;;  %v5042_v16 = vld [vmem:[#allocation2 + $0x1a8] sm:$0xff]  ;;  %v5057_v34 = vld [vmem:[#allocation2 + $0x220] sm:$0xf] }
 0x52f   :  { %v4354_v57 = vrot.slane %v4324_v51, 4  ;;  %v4852_v35 = vsel %vm1377_vm1, %v4825_v33, %v4827_v47  ;;  %4424 = vrot.lane.b32.xlu1 %v8517_v56, %s6270_s26  ;;  %v5010_v26 = vld [vmem:[#allocation2 + $0xa8] sm:$0xff]  ;;  %v6053_v27 = vpack.c.bf16 %v5042_v16, %v5026_v39 }
 0x530   :  { %v4882_v28 = vrot.slane %v4852_v35, 4  ;;  %4426 = vrot.lane.b32.xlu0 %v8519_v9, %s6270_s26  ;;  %v6049_v21 = vpack.c.bf16 %v5010_v26, %v4994_v19 }
 0x531   :  { %4386 = vst [vmem:[#allocation2 + $0x30] sm:$0xf0] %v4354_v57  ;;  %v4475_v4 = vpop.permute.xlu1 %4474 }
 0x532   :  { %4914 = vst [vmem:[#allocation2 + $0x1b0] sm:$0xf0] %v4882_v28  ;;  %v4500_v50 = vsel %vm909_vm14, %v4473_v6, %v4475_v4  ;;  %v4587_v15 = vpop.permute.xlu0 %4586  ;;  %6050 = vmatprep.subr.bf16.mxu0 %v6049_v21  ;;  %v5058_v54 = vld [vmem:[#allocation2 + $0x228] sm:$0xf] }
 0x533   :  { %v4530_v0 = vrot.slane %v4500_v50, 4  ;;  %v4612_v32 = vsel %vm1022_vm11, %v4585_v41, %v4587_v15  ;;  %4666 = vrot.lane.b32.xlu1 %v8519_v9, %s6269_s25  ;;  %6052 = vmatpush1.bf16.msra.mxu0 %v6051_v36 }
 0x534   :  { %4626 = vst [vmem:[#allocation2 + $0x130] sm:$0xf] %v4612_v32  ;;  %4664 = vrot.lane.b32.xlu0 %v8517_v56, %s6269_s25  ;;  %6054 = vmatprep.subr.bf16.mxu0 %v6053_v27 }
 0x535   :  { %4562 = vst [vmem:[#allocation2 + $0xb0] sm:$0xf0] %v4530_v0  ;;  %v4411_v52 = vpop.permute.xlu1 %4410 }
 0x536   :  { %v4436_v46 = vsel %vm780_vm10, %v4409_v53, %v4411_v52  ;;  %v4763_v61 = vpop.permute.xlu0 %4762 }
 0x537   :  { %4450 = vst [vmem:[#allocation2 + $0xb0] sm:$0xf] %v4436_v46  ;;  %v4788_v25 = vsel %vm1264_vm12, %v4761_v59, %v4763_v61  ;;  %4840 = vrot.lane.b32.xlu1 %v8517_v56, %s6286_s6  ;;  %6056 = vmatpush1.bf16.msra.mxu0 %v6055_v13 }
 0x538   :  { %4802 = vst [vmem:[#allocation2 + $0x1b0] sm:$0xf] %v4788_v25  ;;  %4842 = vrot.lane.b32.xlu0 %v8519_v9, %s6286_s6  ;;  %5903 = vmatprep.subr.msk.mxu0 %vm5083_vm7, %v5058_v54  ;;  %v4995_v36 = vld [vmem:[#allocation2 + $0x30] sm:$0xff] }
 0x539   :  { %v8830_v33 = vpop.permute.xlu1 %4652 }
 0x53a   :  { %v4675_v38 = vsel %vm1135_vm0, %v4651_v24, %v8830_v33  ;;  %v4939_v18 = vpop.permute.xlu0 %4938  ;;  %v5069_v24 = vld [vmem:[#allocation3] sm:$0x1] }
 0x53b   :  { %v4707_v8 = vrot.slane %v4675_v38, 4  ;;  %v4964_v40 = vsel %vm1490_vm15, %v4937_v7, %v4939_v18  ;;  %4602 = vrot.lane.b32.xlu1 %v8519_v9, %s6283_s13  ;;  %5904 = vmatpush1.msk.msra.mxu0 %vm5083_vm7, %v5057_v34  ;;  %v5027_v13 = vld [vmem:[#allocation2 + $0x130] sm:$0xff] }
 0x53c   :  { %4978 = vst [vmem:[#allocation2 + $0x230] sm:$0xf] %v4964_v40  ;;  %4600 = vrot.lane.b32.xlu0 %v8517_v56, %s6283_s13  ;;  %5905 = vmatmul.mubr.msk.f32.vlgmr.msra.gmra.mrb[58].mxu0 %vm5079_vm8, %v8683_v42 }
 0x53d   :  { %4739 = vst [vmem:[#allocation2 + $0x138] sm:$0xf0] %v4707_v8  ;;  %v8844_v31 = vpop.permute.xlu1 %4828  ;;  %5480 = vmatprep.mubr.f32.mxu0 %v9128_v44 }
 0x53e   :  { %v4851_v41 = vsel %vm1377_vm1, %v4827_v47, %v8844_v31  ;;  %v4301_v3 = vpop.permute.xlu0 %4300  ;;  %v5011_v19 = vld [vmem:[#allocation2 + $0xb0] sm:$0xff] }
 0x53f   :  { %v4883_v6 = vrot.slane %v4851_v41, 4  ;;  %v4323_v12 = vsel %vm667_vm13, %v8802_v43, %v4301_v3  ;;  %4776 = vrot.lane.b32.xlu1 %v8517_v56, %s6285_s15  ;;  %v6059_v50 = vpack.c.bf16 %v5011_v19, %v4995_v36  ;;  %v5043_v32 = vld [vmem:[#allocation2 + $0x1b0] sm:$0xff] }
 0x540   :  { %v4355_v45 = vrot.slane %v4323_v12, 4  ;;  %4778 = vrot.lane.b32.xlu0 %v8519_v9, %s6285_s15 }
 0x541   :  { %4915 = vst [vmem:[#allocation2 + $0x1b8] sm:$0xf0] %v4883_v6  ;;  %v8857_v59 = vpop.permute.xlu1 %4588 }
 0x542   :  { %4387 = vst [vmem:[#allocation2 + $0x38] sm:$0xf0] %v4355_v45  ;;  %v4611_v55 = vsel %vm1022_vm11, %v4587_v15, %v8857_v59  ;;  %v4477_v53 = vpop.permute.xlu0 %4476 }
 0x543   :  { %4627 = vst [vmem:[#allocation2 + $0x138] sm:$0xf] %v4611_v55  ;;  %v4499_v22 = vsel %vm909_vm14, %v4475_v4, %v4477_v53  ;;  %4950 = vrot.lane.b32.xlu1 %v8503_v48, %s6267_s23  ;;  %v5059_v6 = vld [vmem:[#allocation2 + $0x230] sm:$0xf] }
 0x544   :  { %v4531_v7 = vrot.slane %v4499_v22, 4  ;;  %4952 = vrot.lane.b32.xlu0 %v8517_v56, %s6267_s23 }
 0x545   :  { %v8868_v63 = vpop.permute.xlu1 %4764 }
 0x546   :  { %4563 = vst [vmem:[#allocation2 + $0xb8] sm:$0xf0] %v4531_v7  ;;  %v4787_v2 = vsel %vm1264_vm12, %v4763_v61, %v8868_v63  ;;  %v4413_v14 = vpop.permute.xlu0 %4412  ;;  %v6063_v61 = vpack.c.bf16 %v5043_v32, %v5027_v13 }
 0x547   :  { %4803 = vst [vmem:[#allocation2 + $0x1b8] sm:$0xf] %v4787_v2  ;;  %v4435_v43 = vsel %vm780_vm10, %v4411_v52, %v4413_v14  ;;  %4954 = vrot.lane.b32.xlu1 %v8519_v9, %s6267_s23 }
 0x548   :  { %4451 = vst [vmem:[#allocation2 + $0xb8] sm:$0xf] %v4435_v43  ;;  %5072 = vperm.xlu0 %6144, %v5069_v24  }
 0x549   :  { %v4941_v48 = vpop.permute.xlu1 %4940  ;;  %v4996_v16 = vld [vmem:[#allocation2 + $0x38] sm:$0xff] }
 0x54a   :  { %v4963_v56 = vsel %vm1490_vm15, %v4939_v18, %v4941_v48  ;;  %v4303_v51 = vpop.permute.xlu0 %4302  ;;  %v5028_v15 = vld [vmem:[#allocation2 + $0x138] sm:$0xff] }
 0x54b   :  { %4979 = vst [vmem:[#allocation2 + $0x238] sm:$0xf] %v4963_v56  ;;  %v4322_v47 = vsel %vm667_vm13, %v4301_v3, %v4303_v51 }
 0x54c   :  { %v4356_v30 = vrot.slane %v4322_v47, 4 }
 0x54d   :  { %v8881_v57 = vpop.permute.xlu1 %4942 }
 0x54e   :  { %4388 = vst [vmem:[#allocation2 + $0x40] sm:$0xf0] %v4356_v30  ;;  %v4962_v35 = vsel %vm1490_vm15, %v4941_v48, %v8881_v57  ;;  %v4479_v9 = vpop.permute.xlu0 %4478  ;;  %v5044_v21 = vld [vmem:[#allocation2 + $0x1b8] sm:$0xff] }
 0x54f   :  { %4980 = vst [vmem:[#allocation2 + $0x240] sm:$0xf] %v4962_v35  ;;  %v4498_v26 = vsel %vm909_vm14, %v4477_v53, %v4479_v9  ;;  %v5012_v28 = vld [vmem:[#allocation2 + $0xb8] sm:$0xff]  ;;  %v6061_v0 = vpack.c.bf16 %v5044_v21, %v5028_v15 }
 0x550   :  { %v4532_v20 = vrot.slane %v4498_v26, 4  ;;  %v6057_v4 = vpack.c.bf16 %v5012_v28, %v4996_v16 }
 0x551   :  { %v8888_v39 = vpop.permute.xlu1 %4304 }
 0x552   :  { %4564 = vst [vmem:[#allocation2 + $0xc0] sm:$0xf0] %v4532_v20  ;;  %v4321_v27 = vsel %vm667_vm13, %v4303_v51, %v8888_v39  ;;  %v4415_v5 = vpop.permute.xlu0 %4414  ;;  %6058 = vmatprep.subr.bf16.mxu1 %v6057_v4  ;;  %v5060_v34 = vld [vmem:[#allocation2 + $0x238] sm:$0xf] }
 0x553   :  { %v4357_v29 = vrot.slane %v4321_v27, 4  ;;  %v4434_v52 = vsel %vm780_vm10, %v4413_v14, %v4415_v5  ;;  %6060 = vmatpush1.bf16.msra.mxu1 %v6059_v50 }
 0x554   :  { %4452 = vst [vmem:[#allocation2 + $0xc0] sm:$0xf] %v4434_v52  ;;  %6062 = vmatprep.subr.bf16.mxu1 %v6061_v0 }
 0x555   :  { %4389 = vst [vmem:[#allocation2 + $0x48] sm:$0xf0] %v4357_v29  ;;  %v8895_v46 = vpop.permute.xlu1 %4480  ;;  %v4997_v30 = vld [vmem:[#allocation2 + $0x40] sm:$0xff] }
 0x556   :  { %v4497_v25 = vsel %vm909_vm14, %v4479_v9, %v8895_v46  ;;  %v4655_v54 = vpop.permute.xlu0 %4654 }
 0x557   :  { %v4533_v38 = vrot.slane %v4497_v25, 4  ;;  %v4674_v18 = vsel %vm1135_vm0, %v8830_v33, %v4655_v54  ;;  %6064 = vmatpush1.bf16.msra.mxu1 %v6063_v61 }
 0x558   :  { %v4708_v8 = vrot.slane %v4674_v18, 4  ;;  %5906 = vmatprep.subr.msk.mxu1 %vm5083_vm7, %v5060_v34 }
 0x559   :  { %4565 = vst [vmem:[#allocation2 + $0xc8] sm:$0xf0] %v4533_v38  ;;  %v4417_v40 = vpop.permute.xlu1 %4416 }
 0x55a   :  { %4740 = vst [vmem:[#allocation2 + $0x140] sm:$0xf0] %v4708_v8  ;;  %v4433_v41 = vsel %vm780_vm10, %v4415_v5, %v4417_v40  ;;  %v4831_v3 = vpop.permute.xlu0 %4830 }
 0x55b   :  { %4453 = vst [vmem:[#allocation2 + $0xc8] sm:$0xf] %v4433_v41  ;;  %v4850_v12 = vsel %vm1377_vm1, %v8844_v31, %v4831_v3  ;;  %5907 = vmatpush1.msk.msra.mxu1 %vm5083_vm7, %v5059_v6  ;;  %v5013_v24 = vld [vmem:[#allocation2 + $0xc0] sm:$0xff] }
 0x55c   :  { %v4884_v33 = vrot.slane %v4850_v12, 4  ;;  %5908 = vmatmul.mubr.msk.f32.vlgmr.msra.gmra.mrb[58].mxu1 %vm5079_vm8, %v8683_v42  ;;  %v4998_v43 = vld [vmem:[#allocation2 + $0x48] sm:$0xff]  ;;  %v5061_v6 = vld [vmem:[#allocation2 + $0x240] sm:$0xf] }
 0x55d   :  { %v8912_v45 = vpop.permute.xlu1 %4656  ;;  %5551 = vmatprep.mubr.f32.mxu1 %v9128_v44 }
 0x55e   :  { %4916 = vst [vmem:[#allocation2 + $0x1c0] sm:$0xf0] %v4884_v33  ;;  %v4673_v55 = vsel %vm1135_vm0, %v4655_v54, %v8912_v45  ;;  %v4591_v53 = vpop.permute.xlu0 %4590 }
 0x55f   :  { %v4709_v22 = vrot.slane %v4673_v55, 4  ;;  %v4610_v31 = vsel %vm1022_vm11, %v8857_v59, %v4591_v53  ;;  %v6067_v59 = vpack.c.bf16 %v5013_v24, %v4997_v30 }
 0x560   :  { %4628 = vst [vmem:[#allocation2 + $0x140] sm:$0xf] %v4610_v31 }
 0x561   :  { %4741 = vst [vmem:[#allocation2 + $0x148] sm:$0xf0] %v4709_v22  ;;  %v8921_v7 = vpop.permute.xlu1 %4832 }
 0x562   :  { %v4849_v2 = vsel %vm1377_vm1, %v4831_v3, %v8921_v7  ;;  %v4767_v14 = vpop.permute.xlu0 %4766  ;;  %v5014_v48 = vld [vmem:[#allocation2 + $0xc8] sm:$0xff] }
 0x563   :  { %v4885_v56 = vrot.slane %v4849_v2, 4  ;;  %v4786_v51 = vsel %vm1264_vm12, %v8868_v63, %v4767_v14  ;;  %v6065_v47 = vpack.c.bf16 %v5014_v48, %v4998_v43 }
 0x564   :  { %4804 = vst [vmem:[#allocation2 + $0x1c0] sm:$0xf] %v4786_v51 }
 0x565   :  { %4917 = vst [vmem:[#allocation2 + $0x1c8] sm:$0xf0] %v4885_v56  ;;  %6066 = vmatprep.subr.bf16.mxu0 %v6065_v47  ;;  %v4593_v35 = vpop.permute.xlu1 %4592 }
 0x566   :  { %v4609_v9 = vsel %vm1022_vm11, %v4591_v53, %v4593_v35  ;;  %v4945_v19 = vpop.permute.xlu0 %4944  ;;  %6068 = vmatpush1.bf16.msra.mxu0 %v6067_v59 }
 0x567   :  { %4629 = vst [vmem:[#allocation2 + $0x148] sm:$0xf] %v4609_v9  ;;  %v4961_v26 = vsel %vm1490_vm15, %v8881_v57, %v4945_v19  ;;  %v5029_v25 = vld [vmem:[#allocation2 + $0x140] sm:$0xff] }
 0x568   :  { %4981 = vst [vmem:[#allocation2 + $0x248] sm:$0xf] %v4961_v26 }
 0x569   :  { %v8934_v16 = vpop.permute.xlu1 %4768 }
 0x56a   :  { %v4785_v63 = vsel %vm1264_vm12, %v4767_v14, %v8934_v16  ;;  %v4307_v28 = vpop.permute.xlu0 %4306 }
 0x56b   :  { %4805 = vst [vmem:[#allocation2 + $0x1c8] sm:$0xf] %v4785_v63  ;;  %v4320_v21 = vsel %vm667_vm13, %v8888_v39, %v4307_v28  ;;  %v5045_v5 = vld [vmem:[#allocation2 + $0x1c0] sm:$0xff] }
 0x56c   :  { %v4358_v20 = vrot.slane %v4320_v21, 4 }
 0x56d   :  { %v8942_v4 = vpop.permute.xlu1 %4946 }
 0x56e   :  { %4390 = vst [vmem:[#allocation2 + $0x50] sm:$0xf0] %v4358_v20  ;;  %v4960_v57 = vsel %vm1490_vm15, %v4945_v19, %v8942_v4  ;;  %v4483_v36 = vpop.permute.xlu0 %4482  ;;  %v5030_v32 = vld [vmem:[#allocation2 + $0x148] sm:$0xff] }
 0x56f   :  { %4982 = vst [vmem:[#allocation2 + $0x250] sm:$0xf] %v4960_v57  ;;  %v4496_v50 = vsel %vm909_vm14, %v8895_v46, %v4483_v36  ;;  %v6071_v46 = vpack.c.bf16 %v5045_v5, %v5029_v25  ;;  %v5062_v34 = vld [vmem:[#allocation2 + $0x248] sm:$0xf] }
 0x570   :  { %v4534_v15 = vrot.slane %v4496_v50, 4 }
 0x571   :  { %v8950_v27 = vpop.permute.xlu1 %4308 }
 0x572   :  { %4566 = vst [vmem:[#allocation2 + $0xd0] sm:$0xf0] %v4534_v15  ;;  %v4319_v39 = vsel %vm667_vm13, %v4307_v28, %v8950_v27  ;;  %v4419_v0 = vpop.permute.xlu0 %4418  ;;  %v5046_v29 = vld [vmem:[#allocation2 + $0x1c8] sm:$0xff] }
 0x573   :  { %v4359_v52 = vrot.slane %v4319_v39, 4  ;;  %v4432_v13 = vsel %vm780_vm10, %v4417_v40, %v4419_v0  ;;  %v6069_v61 = vpack.c.bf16 %v5046_v29, %v5030_v32 }
 0x574   :  { %4454 = vst [vmem:[#allocation2 + $0xd0] sm:$0xf] %v4432_v13 }
 0x575   :  { %4391 = vst [vmem:[#allocation2 + $0x58] sm:$0xf0] %v4359_v52  ;;  %6070 = vmatprep.subr.bf16.mxu0 %v6069_v61  ;;  %v4485_v54 = vpop.permute.xlu1 %4484  ;;  %v4999_v9 = vld [vmem:[#allocation2 + $0x50] sm:$0xff] }
 0x576   :  { %v4495_v38 = vsel %vm909_vm14, %v4483_v36, %v4485_v54  ;;  %v4659_v18 = vpop.permute.xlu0 %4658  ;;  %6072 = vmatpush1.bf16.msra.mxu0 %v6071_v46 }
 0x577   :  { %v4535_v8 = vrot.slane %v4495_v38, 4  ;;  %v4672_v41 = vsel %vm1135_vm0, %v8912_v45, %v4659_v18  ;;  %5909 = vmatprep.subr.msk.mxu0 %vm5083_vm7, %v5062_v34 }
 0x578   :  { %v4710_v40 = vrot.slane %v4672_v41, 4 }
 0x579   :  { %4567 = vst [vmem:[#allocation2 + $0xd8] sm:$0xf0] %v4535_v8  ;;  %v4421_v3 = vpop.permute.xlu1 %4420 }
 0x57a   :  { %4742 = vst [vmem:[#allocation2 + $0x150] sm:$0xf0] %v4710_v40  ;;  %v4431_v12 = vsel %vm780_vm10, %v4419_v0, %v4421_v3  ;;  %v4835_v33 = vpop.permute.xlu0 %4834  ;;  %5910 = vmatpush1.msk.msra.mxu0 %vm5083_vm7, %v5061_v6 }
 0x57b   :  { %4455 = vst [vmem:[#allocation2 + $0xd8] sm:$0xf] %v4431_v12  ;;  %v4848_v55 = vsel %vm1377_vm1, %v8921_v7, %v4835_v33  ;;  %5911 = vmatmul.mubr.msk.f32.vlgmr.msra.gmra.mrb[60].mxu0 %vm5079_vm8, %v8683_v42  ;;  %v5015_v7 = vld [vmem:[#allocation2 + $0xd0] sm:$0xff] }
 0x57c   :  { %v4886_v45 = vrot.slane %v4848_v55, 4  ;;  %5622 = vmatprep.mubr.f32.mxu0 %v9128_v44  ;;  %v5000_v56 = vld [vmem:[#allocation2 + $0x58] sm:$0xff]  ;;  %v6075_v19 = vpack.c.bf16 %v5015_v7, %v4999_v9  ;;  %v5063_v12 = vld [vmem:[#allocation2 + $0x250] sm:$0xf] }
 0x57d   :  { %v4661_v53 = vpop.permute.xlu1 %4660 }
 0x57e   :  { %4918 = vst [vmem:[#allocation2 + $0x1d0] sm:$0xf0] %v4886_v45  ;;  %v4671_v22 = vsel %vm1135_vm0, %v4659_v18, %v4661_v53  ;;  %v4595_v31 = vpop.permute.xlu0 %4594 }
 0x57f   :  { %v4711_v24 = vrot.slane %v4671_v22, 4  ;;  %v4608_v2 = vsel %vm1022_vm11, %v4593_v35, %v4595_v31 }
 0x580   :  { %4630 = vst [vmem:[#allocation2 + $0x150] sm:$0xf] %v4608_v2 }
 0x581   :  { %4743 = vst [vmem:[#allocation2 + $0x158] sm:$0xf0] %v4711_v24  ;;  %v4837_v14 = vpop.permute.xlu1 %4836 }
 0x582   :  { %v4847_v43 = vsel %vm1377_vm1, %v4835_v33, %v4837_v14  ;;  %v4771_v48 = vpop.permute.xlu0 %4770  ;;  %v5016_v51 = vld [vmem:[#allocation2 + $0xd8] sm:$0xff] }
 0x583   :  { %v4887_v47 = vrot.slane %v4847_v43, 4  ;;  %v4784_v30 = vsel %vm1264_vm12, %v8934_v16, %v4771_v48  ;;  %v6073_v59 = vpack.c.bf16 %v5016_v51, %v5000_v56 }
 0x584   :  { %4806 = vst [vmem:[#allocation2 + $0x1d0] sm:$0xf] %v4784_v30 }
 0x585   :  { %4919 = vst [vmem:[#allocation2 + $0x1d8] sm:$0xf0] %v4887_v47  ;;  %6074 = vmatprep.subr.bf16.mxu1 %v6073_v59  ;;  %v4597_v35 = vpop.permute.xlu1 %4596 }
 0x586   :  { %v4607_v26 = vsel %vm1022_vm11, %v4595_v31, %v4597_v35  ;;  %v4311_v63 = vpop.permute.xlu0 %4310  ;;  %6076 = vmatpush1.bf16.msra.mxu1 %v6075_v19 }
 0x587   :  { %4631 = vst [vmem:[#allocation2 + $0x158] sm:$0xf] %v4607_v26  ;;  %v4318_v28 = vsel %vm667_vm13, %v8950_v27, %v4311_v63 }
 0x588   :  { %v4360_v21 = vrot.slane %v4318_v28, 4 }
 0x589   :  { %v4773_v20 = vpop.permute.xlu1 %4772 }
 0x58a   :  { %4392 = vst [vmem:[#allocation2 + $0x60] sm:$0xf0] %v4360_v21  ;;  %v4783_v16 = vsel %vm1264_vm12, %v4771_v48, %v4773_v20  ;;  %v8988_v57 = vpop.permute.xlu0 %4422 }
 0x58b   :  { %4807 = vst [vmem:[#allocation2 + $0x1d8] sm:$0xf] %v4783_v16  ;;  %v4430_v36 = vsel %vm780_vm10, %v4421_v3, %v8988_v57  ;;  %v5047_v32 = vld [vmem:[#allocation2 + $0x1d0] sm:$0xff] }
 0x58c   :  { %4456 = vst [vmem:[#allocation2 + $0xe0] sm:$0xf] %v4430_v36 }
 0x58d   :  { %v4487_v50 = vpop.permute.xlu1 %4486 }
 0x58e   :  { %v4494_v15 = vsel %vm909_vm14, %v4485_v54, %v4487_v50  ;;  %v8995_v5 = vpop.permute.xlu0 %4948  ;;  %v5032_v13 = vld [vmem:[#allocation2 + $0x158] sm:$0xff] }
 0x58f   :  { %v4536_v27 = vrot.slane %v4494_v15, 4  ;;  %v4959_v39 = vsel %vm1490_vm15, %v8942_v4, %v8995_v5  ;;  %v5031_v4 = vld [vmem:[#allocation2 + $0x150] sm:$0xff] }
 0x590   :  { %4983 = vst [vmem:[#allocation2 + $0x258] sm:$0xf] %v4959_v39  ;;  %v6079_v18 = vpack.c.bf16 %v5047_v32, %v5031_v4 }
 0x591   :  { %4568 = vst [vmem:[#allocation2 + $0xe0] sm:$0xf0] %v4536_v27  ;;  %v9001_v0 = vpop.permute.xlu1 %4662  ;;  %v5001_v16 = vld [vmem:[#allocation2 + $0x60] sm:$0xff] }
 0x592   :  { %v4670_v29 = vsel %vm1135_vm0, %v4661_v53, %v9001_v0  ;;  %v9006_v52 = vpop.permute.xlu0 %4838  ;;  %v5048_v61 = vld [vmem:[#allocation2 + $0x1d8] sm:$0xff] }
 0x593   :  { %v4712_v25 = vrot.slane %v4670_v29, 4  ;;  %v4846_v46 = vsel %vm1377_vm1, %v4837_v14, %v9006_v52  ;;  %v6077_v54 = vpack.c.bf16 %v5048_v61, %v5032_v13 }
 0x594   :  { %v4888_v38 = vrot.slane %v4846_v46, 4 }
 0x595   :  { %4744 = vst [vmem:[#allocation2 + $0x160] sm:$0xf0] %v4712_v25  ;;  %6078 = vmatprep.subr.bf16.mxu1 %v6077_v54  ;;  %v9011_v34 = vpop.permute.xlu1 %4598 }
 0x596   :  { %4920 = vst [vmem:[#allocation2 + $0x1e0] sm:$0xf0] %v4888_v38  ;;  %v4606_v8 = vsel %vm1022_vm11, %v4597_v35, %v9011_v34  ;;  %v9016_v41 = vpop.permute.xlu0 %4774  ;;  %6080 = vmatpush1.bf16.msra.mxu1 %v6079_v18 }
 0x597   :  { %4632 = vst [vmem:[#allocation2 + $0x160] sm:$0xf] %v4606_v8  ;;  %v4782_v40 = vsel %vm1264_vm12, %v4773_v20, %v9016_v41  ;;  %v5064_v3 = vld [vmem:[#allocation2 + $0x258] sm:$0xf] }
 0x598   :  { %4808 = vst [vmem:[#allocation2 + $0x1e0] sm:$0xf] %v4782_v40  ;;  %5912 = vmatprep.subr.msk.mxu1 %vm5083_vm7, %v5064_v3  ;;  %v5017_v28 = vld [vmem:[#allocation2 + $0xe0] sm:$0xff] }
 0x599   :  { %v4313_v6 = vpop.permute.xlu1 %4312  ;;  %v6083_v15 = vpack.c.bf16 %v5017_v28, %v5001_v16  ;;  %v6289_v28 = vmov 1966171168  }
 0x59a   :  { %v4317_v33 = vsel %vm667_vm13, %v4311_v63, %v4313_v6  ;;  %v4315_v55 = vpop.permute.xlu0 %4314  ;;  %5913 = vmatpush1.msk.msra.mxu1 %vm5083_vm7, %v5063_v12 }
 0x59b   :  { %v4361_v45 = vrot.slane %v4317_v33, 4  ;;  %v4316_v53 = vsel %vm667_vm13, %v4313_v6, %v4315_v55  ;;  %v4331_v22 = vsel %vm667_vm13, %v4315_v55, %v8521_v10  ;;  %5914 = vmatmul.mubr.msk.f32.vlgmr.msra.gmra.mrb[60].mxu1 %vm5079_vm8, %v8683_v42 }
 0x59c   :  { %v4362_v31 = vrot.slane %v4316_v53, 4  ;;  %v4363_v24 = vrot.slane %v4331_v22, 4  ;;  %5693 = vmatprep.mubr.f32.mxu1 %v9128_v44 }
 0x59d   :  { %4393 = vst [vmem:[#allocation2 + $0x68] sm:$0xf0] %v4361_v45  ;;  %v4491_v2 = vpop.permute.xlu1 %4490 }
 0x59e   :  { %4394 = vst [vmem:[#allocation2 + $0x70] sm:$0xf0] %v4362_v31  ;;  %4395 = vst [vmem:[#allocation2 + $0x78] sm:$0xf0] %v4363_v24  ;;  %v4507_v14 = vsel %vm909_vm14, %v4491_v2, %v8501_v23  ;;  %v4489_v7 = vpop.permute.xlu0 %4488  ;;  %v5033_v22 = vld [vmem:[#allocation2 + $0x160] sm:$0xff] }
 0x59f   :  { %v4539_v43 = vrot.slane %v4507_v14, 4  ;;  %v4492_v10 = vsel %vm909_vm14, %v4489_v7, %v4491_v2  ;;  %v4493_v42 = vsel %vm909_vm14, %v4487_v50, %v4489_v7  ;;  %v5049_v31 = vld [vmem:[#allocation2 + $0x1e0] sm:$0xff] }
 0x5a0   :  { %v4537_v48 = vrot.slane %v4493_v42, 4  ;;  %v4538_v56 = vrot.slane %v4492_v10, 4 }
 0x5a1   :  { %4571 = vst [vmem:[#allocation2 + $0xf8] sm:$0xf0] %v4539_v43  ;;  %v4425_v44 = vpop.permute.xlu1 %4424 }
 0x5a2   :  { %4569 = vst [vmem:[#allocation2 + $0xe8] sm:$0xf0] %v4537_v48  ;;  %4570 = vst [vmem:[#allocation2 + $0xf0] sm:$0xf0] %v4538_v56  ;;  %v4429_v51 = vsel %vm780_vm10, %v8988_v57, %v4425_v44  ;;  %v4427_v47 = vpop.permute.xlu0 %4426  ;;  %v6087_v48 = vpack.c.bf16 %v5049_v31, %v5033_v22 }
 0x5a3   :  { %4457 = vst [vmem:[#allocation2 + $0xe8] sm:$0xf] %v4429_v51  ;;  %v4428_v23 = vsel %vm780_vm10, %v4425_v44, %v4427_v47  ;;  %v4443_v30 = vsel %vm780_vm10, %v4427_v47, %v8544_v1 }
 0x5a4   :  { %4458 = vst [vmem:[#allocation2 + $0xf0] sm:$0xf] %v4428_v23  ;;  %4459 = vst [vmem:[#allocation2 + $0xf8] sm:$0xf] %v4443_v30  ;;  %v5002_v36 = vld [vmem:[#allocation2 + $0x68] sm:$0xff] }
 0x5a5   :  { %v4667_v59 = vpop.permute.xlu1 %4666  ;;  %v5004_v27 = vld [vmem:[#allocation2 + $0x78] sm:$0xff]  ;;  %v5003_v61 = vld [vmem:[#allocation2 + $0x70] sm:$0xff]  ;;  %v6148_v23 = vld [vmem:[%s9110_s3] sm:$0x1] }
 0x5a6   :  { %v4683_v9 = vsel %vm1135_vm0, %v4667_v59, %v8539_v11  ;;  %v4665_v19 = vpop.permute.xlu0 %4664 }
 0x5a7   :  { %v4715_v35 = vrot.slane %v4683_v9, 4  ;;  %v4668_v26 = vsel %vm1135_vm0, %v4665_v19, %v4667_v59  ;;  %v4669_v63 = vsel %vm1135_vm0, %v9001_v0, %v4665_v19 }
 0x5a8   :  { %v4713_v21 = vrot.slane %v4669_v63, 4  ;;  %v4714_v20 = vrot.slane %v4668_v26, 4 }
 0x5a9   :  { %4747 = vst [vmem:[#allocation2 + $0x178] sm:$0xf0] %v4715_v35  ;;  %v4841_v1 = vpop.permute.xlu1 %4840 }
 0x5aa   :  { %4745 = vst [vmem:[#allocation2 + $0x168] sm:$0xf0] %v4713_v21  ;;  %4746 = vst [vmem:[#allocation2 + $0x170] sm:$0xf0] %v4714_v20  ;;  %v4845_v11 = vsel %vm1377_vm1, %v9006_v52, %v4841_v1  ;;  %v4843_v57 = vpop.permute.xlu0 %4842  ;;  %v5018_v50 = vld [vmem:[#allocation2 + $0xe8] sm:$0xff]  ;;  %v5721_v21 = vunpack.c.l.s4 %v6289_v28 }
 0x5ab   :  { %v4889_v39 = vrot.slane %v4845_v11, 4  ;;  %v4844_v0 = vsel %vm1377_vm1, %v4841_v1, %v4843_v57  ;;  %v4859_v32 = vsel %vm1377_vm1, %v4843_v57, %v8554_v37  ;;  %v6081_v29 = vpack.c.bf16 %v5018_v50, %v5002_v36  ;;  %v5020_v13 = vld [vmem:[#allocation2 + $0xf8] sm:$0xff]  ;;  %v5019_v25 = vld [vmem:[#allocation2 + $0xf0] sm:$0xff] }
 0x5ac   :  { %v4890_v46 = vrot.slane %v4844_v0, 4  ;;  %v4891_v54 = vrot.slane %v4859_v32, 4  ;;  %v6089_v52 = vpack.c.bf16 %v5020_v13, %v5004_v27  ;;  %v6091_v4 = vpack.c.bf16 %v5019_v25, %v5003_v61  ;;  %v9129_v57 = vld [vmem:[#allocation14_spill] sm:$0xff] }
 0x5ad   :  { %4921 = vst [vmem:[#allocation2 + $0x1e8] sm:$0xf0] %v4889_v39  ;;  %6082 = vmatprep.subr.bf16.mxu0 %v6081_v29  ;;  %v4603_v38 = vpop.permute.xlu1 %4602  ;;  %v5722_v20 = vunpack.c.0.s8 %v5721_v21 }
 0x5ae   :  { %4922 = vst [vmem:[#allocation2 + $0x1f0] sm:$0xf0] %v4890_v46  ;;  %4923 = vst [vmem:[#allocation2 + $0x1f8] sm:$0xf0] %v4891_v54  ;;  %v4619_v18 = vsel %vm1022_vm11, %v4603_v38, %v8572_v62  ;;  %v4601_v8 = vpop.permute.xlu0 %4600  ;;  %6084 = vmatpush1.bf16.msra.mxu0 %v6083_v15  ;;  %6090 = vmatprep.subr.bf16.mxu1 %v6089_v52 }
 0x5af   :  { %4635 = vst [vmem:[#allocation2 + $0x178] sm:$0xf] %v4619_v18  ;;  %v4604_v37 = vsel %vm1022_vm11, %v4601_v8, %v4603_v38  ;;  %v4605_v40 = vsel %vm1022_vm11, %v9011_v34, %v4601_v8  ;;  %6092 = vmatpush1.bf16.msra.mxu1 %v6091_v4  ;;  %v5725_v36 = vsub.s32 %v5722_v20, %v9129_v57 }
 0x5b0   :  { %4633 = vst [vmem:[#allocation2 + $0x168] sm:$0xf] %v4605_v40  ;;  %4634 = vst [vmem:[#allocation2 + $0x170] sm:$0xf] %v4604_v37 }
 0x5b1   :  { %v4777_v3 = vpop.permute.xlu1 %4776 }
 0x5b2   :  { %v4781_v6 = vsel %vm1264_vm12, %v9016_v41, %v4777_v3  ;;  %v4779_v62 = vpop.permute.xlu0 %4778 }
 0x5b3   :  { %4809 = vst [vmem:[#allocation2 + $0x1e8] sm:$0xf] %v4781_v6  ;;  %v4780_v12 = vsel %vm1264_vm12, %v4777_v3, %v4779_v62  ;;  %v4795_v33 = vsel %vm1264_vm12, %v4779_v62, %v8563_v58 }
 0x5b4   :  { %4810 = vst [vmem:[#allocation2 + $0x1f0] sm:$0xf] %v4780_v12  ;;  %4811 = vst [vmem:[#allocation2 + $0x1f8] sm:$0xf] %v4795_v33 }
 0x5b5   :  { %v4951_v34 = vpop.permute.xlu1 %4950 }
 0x5b6   :  { %v4958_v55 = vsel %vm1490_vm15, %v8995_v5, %v4951_v34  ;;  %v4953_v45 = vpop.permute.xlu0 %4952  ;;  %v5036_v7 = vld [vmem:[#allocation2 + $0x178] sm:$0xff] }
 0x5b7   :  { %4984 = vst [vmem:[#allocation2 + $0x260] sm:$0xf] %v4958_v55  ;;  %v4957_v41 = vsel %vm1490_vm15, %v4951_v34, %v4953_v45  ;;  %v5034_v2 = vld [vmem:[#allocation2 + $0x168] sm:$0xff]  ;;  %v5035_v10 = vld [vmem:[#allocation2 + $0x170] sm:$0xff] }
 0x5b8   :  { %4985 = vst [vmem:[#allocation2 + $0x268] sm:$0xf] %v4957_v41 }
 0x5b9   :  { %v4955_v53 = vpop.permute.xlu1 %4954 }
 0x5ba   :  { %v4956_v24 = vsel %vm1490_vm15, %v4953_v45, %v4955_v53  ;;  %v4971_v58 = vsel %vm1490_vm15, %v4955_v53, %v8589_v60  ;;  %v5050_v14 = vld [vmem:[#allocation2 + $0x1e8] sm:$0xff] }
 0x5bb   :  { %4986 = vst [vmem:[#allocation2 + $0x270] sm:$0xf] %v4956_v24  ;;  %4987 = vst [vmem:[#allocation2 + $0x278] sm:$0xf] %v4971_v58  ;;  %v6085_v5 = vpack.c.bf16 %v5050_v14, %v5034_v2  ;;  %v5052_v43 = vld [vmem:[#allocation2 + $0x1f8] sm:$0xff]  ;;  %v5051_v42 = vld [vmem:[#allocation2 + $0x1f0] sm:$0xff] }
 0x5bc   :  { %v6093_v56 = vpack.c.bf16 %v5052_v43, %v5036_v7  ;;  %v6095_v44 = vpack.c.bf16 %v5051_v42, %v5035_v10 }
 0x5bd   :  { %6086 = vmatprep.subr.bf16.mxu0 %v6085_v5 }
 0x5be   :  { %6088 = vmatpush1.bf16.msra.mxu0 %v6087_v48  ;;  %6094 = vmatprep.subr.bf16.mxu1 %v6093_v56  ;;  %v5065_v17 = vld [vmem:[#allocation2 + $0x260] sm:$0xf] }
 0x5bf   :  { %6096 = vmatpush1.bf16.msra.mxu1 %v6095_v44  ;;  %v5066_v51 = vld [vmem:[#allocation2 + $0x268] sm:$0xf] }
 0x5c0   :  { %5915 = vmatprep.subr.msk.mxu0 %vm5083_vm7, %v5066_v51 }
 0x5c2   :  { %5916 = vmatpush1.msk.msra.mxu0 %vm5083_vm7, %v5065_v17  ;;  %v5068_v60 = vld [vmem:[#allocation2 + $0x278] sm:$0xf]  ;;  %v5067_v47 = vld [vmem:[#allocation2 + $0x270] sm:$0xf] }
 0x5c3   :  { %5917 = vmatmul.mubr.msk.f32.vlgmr.msra.gmra.mrb[62].mxu0 %vm5079_vm8, %v6148_v23  ;;  %5918 = vmatprep.subr.msk.mxu1 %vm5083_vm7, %v5068_v60 }
 0x5c4   :  { %5919 = vmatpush1.msk.msra.mxu1 %vm5083_vm7, %v5067_v47 }
 0x5c5   :  { %5920 = vmatmul.mubr.msk.f32.vlgmr.msra.gmra.mrb[62].mxu1 %vm5079_vm8, %v6148_v23 }
 0x5c7   :  { %v5073_v30 = vpop.permute.xlu0 %5072 }
 0x5c8   :  { %v5078_v59 = vrot.slane %v5073_v30, %v7398_v49 }
 0x5d2   :  { %v5198_v9 = vpop.f32.mrb[56].mxu0 }
 0x5d3   :  { %v5199_v19 = vadd.f32 %v5198_v9, %v5078_v59  ;;  %v5200_v35 = vpop.f32.mrb[57].mxu0 }
 0x5d4   :  { %v5201_v26 = vadd.f32 %v5200_v35, %v5078_v59 }
 0x5d6   :  { %v5716_v63 = vcombine.low %v5199_v19, %v5201_v26 }
 0x5d8   :  { %v5726_v27 = vrot.slane %v5716_v63, %v5725_v36 }
 0x5f2   :  { %v5269_v1 = vpop.f32.mrb[56].mxu1 }
 0x5f3   :  { %v5270_v16 = vadd.f32 %v5269_v1, %v5078_v59  ;;  %v5271_v11 = vpop.f32.mrb[57].mxu1 }
 0x5f4   :  { %v5272_v50 = vadd.f32 %v5271_v11, %v5078_v59 }
 0x5f6   :  { %v5717_v15 = vcombine.low %v5270_v16, %v5272_v50 }
 0x5f8   :  { %v5733_v39 = vrot.slane %v5717_v15, %v5725_v36 }
 0x5fa   :  { %v5748_v0 = vcombine.low %v5726_v27, %v5733_v39 }
 0x5fc   :  { %v5756_v37 = vrot.slane %v5748_v0, %v5725_v36 }
 0x60f   :  { %v5340_v32 = vpop.f32.mrb[58].mxu0 }
 0x610   :  { %v5341_v49 = vadd.f32 %v5340_v32, %v5078_v59  ;;  %v5342_v29 = vpop.f32.mrb[59].mxu0 }
 0x611   :  { %v5343_v13 = vadd.f32 %v5342_v29, %v5078_v59 }
 0x613   :  { %v5718_v61 = vcombine.low %v5341_v49, %v5343_v13 }
 0x615   :  { %v5740_v38 = vrot.slane %v5718_v61, %v5725_v36 }
 0x62f   :  { %v5411_v25 = vpop.f32.mrb[58].mxu1 }
 0x630   :  { %v5412_v46 = vadd.f32 %v5411_v25, %v5078_v59  ;;  %v5413_v54 = vpop.f32.mrb[59].mxu1 }
 0x631   :  { %v5414_v52 = vadd.f32 %v5413_v54, %v5078_v59 }
 0x633   :  { %v5719_v4 = vcombine.low %v5412_v46, %v5414_v52 }
 0x635   :  { %v5747_v18 = vrot.slane %v5719_v4, %v5725_v36 }
 0x637   :  { %v5749_v8 = vcombine.low %v5740_v38, %v5747_v18 }
 0x639   :  { %v5763_v40 = vrot.slane %v5749_v8, %v5725_v36 }
 0x63b   :  { %v5764_v3 = vcombine.low %v5756_v37, %v5763_v40 }
 0x63d   :  { %5816 = vst [vmem:[%s9115_s8] sm:$0xff] %v5764_v3 }
 0x64e   :  { %v5482_v6 = vpop.f32.mrb[60].mxu0 }
 0x64f   :  { %v5483_v62 = vadd.f32 %v5482_v6, %v5078_v59  ;;  %v5484_v12 = vpop.f32.mrb[61].mxu0 }
 0x650   :  { %v5485_v33 = vadd.f32 %v5484_v12, %v5078_v59 }
 0x652   :  { %v5765_v34 = vcombine.low %v5483_v62, %v5485_v33 }
 0x654   :  { %v5775_v31 = vrot.slane %v5765_v34, %v5725_v36 }
 0x66e   :  { %v5553_v55 = vpop.f32.mrb[60].mxu1 }
 0x66f   :  { %v5554_v45 = vadd.f32 %v5553_v55, %v5078_v59  ;;  %v5555_v41 = vpop.f32.mrb[61].mxu1 }
 0x670   :  { %v5556_v53 = vadd.f32 %v5555_v41, %v5078_v59 }
 0x672   :  { %v5766_v22 = vcombine.low %v5554_v45, %v5556_v53 }
 0x674   :  { %v5782_v24 = vrot.slane %v5766_v22, %v5725_v36 }
 0x676   :  { %v5797_v58 = vcombine.low %v5775_v31, %v5782_v24 }
 0x678   :  { %v5805_v47 = vrot.slane %v5797_v58, %v5725_v36 }
 0x696   :  { %v5624_v2 = vpop.f32.mrb[62].mxu0 }
 0x697   :  { %v5625_v14 = vadd.f32 %v5624_v2, %v5078_v59  ;;  %v5626_v7 = vpop.f32.mrb[63].mxu0 }
 0x698   :  { %v5627_v5 = vadd.f32 %v5626_v7, %v5078_v59  ;;  %v5695_v43 = vpop.f32.mrb[62].mxu1 }
 0x699   :  { %v5696_v10 = vadd.f32 %v5695_v43, %v5078_v59  ;;  %v5697_v42 = vpop.f32.mrb[63].mxu1 }
 0x69a   :  { %v5767_v48 = vcombine.low %v5625_v14, %v5627_v5  ;;  %v5698_v56 = vadd.f32 %v5697_v42, %v5078_v59 }
 0x69c   :  { %v5768_v44 = vcombine.low %v5696_v10, %v5698_v56  ;;  %v5789_v51 = vrot.slane %v5767_v48, %v5725_v36 }
 0x69e   :  { %v5796_v17 = vrot.slane %v5768_v44, %v5725_v36 }
 0x6a0   :  { %v5798_v60 = vcombine.low %v5789_v51, %v5796_v17 }
 0x6a2   :  { %v5812_v23 = vrot.slane %v5798_v60, %v5725_v36 }
 0x6a4   :  { %v5813_v30 = vcombine.low %v5805_v47, %v5812_v23 }
 0x6a6   :  { %5817 = vst [vmem:[%s9115_s8 + $0x8] sm:$0xff] %v5813_v30 }
 0x6a7   :  { %5822 = vsyncpa [#allocation5], 1 }
 0x6a8   :  { %5823 = vsyncpa [#allocation7], 1 }
 0x6a9   :  { %5824 = vsyncpa [#allocation10], 1 }

</bundles_post_ra>
